<compile_context>
chip_gen: v7x
topology: tpu7x:2x2x1
jax: 0.10.0
libtpu: 0.0.40
codegen_flags: <defaults>
</compile_context>

<pallas_src>
import jax
import jax.numpy as jnp
from jax import lax
from jax.experimental import pallas as pl
from jax.experimental.pallas import tpu as pltpu

INPUT_SIZE = 32
HIDDEN = 128
NUM_LAYERS = 3
FC1_DIM = 64
OUT_DIM = 28
OUT_PAD = 128          # lane-dense padded head output width
LN_EPS = 1e-5
MAX_B_TILE = 256       # batch rows per grid step (keeps scratch ~7 MiB/tile)


# ------------------------------ Fused kernel ----------------------------------
def fused_rnn_kernel(x_ref,
                     wih0_ref, whh0_ref, b0_ref,
                     wih1_hbm, whh1_hbm, b1_hbm,
                     wih2_hbm, whh2_hbm, b2_hbm,
                     w1_ref, fb1_ref, gamma_ref, beta_ref,
                     w2_ref, fb2_ref,
                     out_ref,
                     act_ref, gx_ref,
                     wih1_v, whh1_v, b1_v,
                     wih2_v, whh2_v, b2_v,
                     dma_sem):
    """3-layer LSTM over the full sequence + head, all VMEM-resident.

    x_ref:   (T, Bt, INPUT_SIZE)  time-major input tile (batch padded)
    act_ref: (T, Bt, H)           scratch, reused for every layer's h_t sequence
    gx_ref:  (T, Bt, 4H)          scratch, hoisted input-projection slab
    out_ref: (Bt, OUT_PAD)        lane-dense padded head output tile
    """
    T, Bt, _ = x_ref.shape
    H = HIDDEN

    # Kick off layer-1/2 weight DMAs now; they complete under layer-0 compute.
    cps = [
        pltpu.make_async_copy(wih1_hbm, wih1_v, dma_sem.at[0]),
        pltpu.make_async_copy(whh1_hbm, whh1_v, dma_sem.at[1]),
        pltpu.make_async_copy(b1_hbm, b1_v, dma_sem.at[2]),
        pltpu.make_async_copy(wih2_hbm, wih2_v, dma_sem.at[3]),
        pltpu.make_async_copy(whh2_hbm, whh2_v, dma_sem.at[4]),
        pltpu.make_async_copy(b2_hbm, b2_v, dma_sem.at[5]),
    ]
    for cp in cps:
        cp.start()

    def lstm_layer(inp_bf16, wih, whh_ref, b, store_all):
        # Hoist the x-path (no sequential dependence) off the critical path:
        # one well-shaped (T*Bt, Din) @ (Din, 4H) bf16 matmul, f32 accumulate.
        gx = jnp.dot(inp_bf16, wih, preferred_element_type=jnp.float32) + b
        gx_ref[...] = gx.reshape(T, Bt, 4 * H)

        def step(t, carry):
            h, c = carry
            gates = gx_ref[t] + jnp.dot(h.astype(jnp.bfloat16), whh_ref[...],
                                        preferred_element_type=jnp.float32)
            # Gate columns were repacked offline to [i, f, o, g]:
            sig = jax.nn.sigmoid(gates[:, :3 * H])          # one contiguous EUP slab
            g_g = jnp.tanh(gates[:, 3 * H:])
            i_g = sig[:, 0 * H:1 * H]
            f_g = sig[:, 1 * H:2 * H]
            o_g = sig[:, 2 * H:3 * H]
            c_new = f_g * c + i_g * g_g
            h_new = o_g * jnp.tanh(c_new)
            if store_all:
                act_ref[t] = h_new
            return (h_new, c_new)

        h0 = jnp.zeros((Bt, H), jnp.float32)
        c0 = jnp.zeros((Bt, H), jnp.float32)
        # T is static and small: fully unroll so stores / EUP pushes / next-step
        # matmul can co-issue across iterations.
        h_last, _ = lax.fori_loop(0, T, step, (h0, c0), unroll=True)
        return h_last

    # Layer 0 (INPUT_SIZE -> H): next layer needs every timestep.
    lstm_layer(x_ref[...].reshape(T * Bt, INPUT_SIZE).astype(jnp.bfloat16),
               wih0_ref[...], whh0_ref, b0_ref[...], store_all=True)

    # Layer 1 (H -> H): its gx is computed from act_ref BEFORE the loop rewrites
    # it, so the same scratch is safely reused. Wait on its weight DMAs here.
    inp1 = act_ref[...].reshape(T * Bt, H).astype(jnp.bfloat16)
    cps[0].wait(); cps[1].wait(); cps[2].wait()
    lstm_layer(inp1, wih1_v[...], whh1_v, b1_v[...], store_all=True)

    # Layer 2 (H -> H): only h[T-1] feeds the head -> skip per-timestep stores.
    inp2 = act_ref[...].reshape(T * Bt, H).astype(jnp.bfloat16)
    cps[3].wait(); cps[4].wait(); cps[5].wait()
    h_last = lstm_layer(inp2, wih2_v[...], whh2_v, b2_v[...], store_all=False)

    # Head: fc1 -> LayerNorm(64) -> ReLU -> (Dropout = identity at eval) -> out.
    z = (jnp.dot(h_last.astype(jnp.bfloat16), w1_ref[...],
                 preferred_element_type=jnp.float32) + fb1_ref[...])
    mean = jnp.mean(z, axis=-1, keepdims=True)
    var = jnp.mean((z - mean) ** 2, axis=-1, keepdims=True)
    zn = (z - mean) * lax.rsqrt(var + LN_EPS)
    zn = zn * gamma_ref[...] + beta_ref[...]
    a = jnp.maximum(zn, 0.0)
    # TODO(synk): Dropout(p=0.3) is identity in eval mode; training-mode dropout not modeled.
    out_ref[...] = (jnp.dot(a.astype(jnp.bfloat16), w2_ref[...],
                            preferred_element_type=jnp.float32) + fb2_ref[...])


# ------------------------------- pallas_call -----------------------------------
def fused_forward_padded(x_tm, params, b_tile):
    T, Bp, _ = x_tm.shape
    assert Bp % b_tile == 0
    grid = (Bp // b_tile,)
    l0, l1, l2 = params["lstm"]

    def _const(shape):
        # Weight stays VMEM-resident across batch tiles (constant block index).
        return pl.BlockSpec(shape, lambda i: (0, 0))

    def _any():
        # Raw HBM ref; DMA'd manually inside the kernel (overlapped with compute).
        return pl.BlockSpec(memory_space=pl.ANY)

    return pl.pallas_call(
        fused_rnn_kernel,
        out_shape=jax.ShapeDtypeStruct((Bp, OUT_PAD), jnp.float32),
        grid_spec=pltpu.PrefetchScalarGridSpec(
            num_scalar_prefetch=0,
            grid=grid,
            in_specs=[
                pl.BlockSpec((T, b_tile, INPUT_SIZE), lambda i: (0, i, 0)),  # x
                _const((INPUT_SIZE, 4 * HIDDEN)),        # wih0 (resident)
                _const((HIDDEN, 4 * HIDDEN)),            # whh0
                _const((1, 4 * HIDDEN)),                 # b0
                _any(), _any(), _any(),                  # layer-1 weights (manual DMA)
                _any(), _any(), _any(),                  # layer-2 weights (manual DMA)
                _const((HIDDEN, FC1_DIM)),               # w1
                _const((1, FC1_DIM)),                    # b1
                _const((1, FC1_DIM)),                    # gamma
                _const((1, FC1_DIM)),                    # beta
                _const((FC1_DIM, OUT_PAD)),              # w2 (padded)
                _const((1, OUT_PAD)),                    # b2 (padded)
            ],
            out_specs=pl.BlockSpec((b_tile, OUT_PAD), lambda i: (i, 0)),
            scratch_shapes=[
                pltpu.VMEM((T, b_tile, HIDDEN), jnp.float32),        # act_ref
                pltpu.VMEM((T, b_tile, 4 * HIDDEN), jnp.float32),    # gx_ref
                pltpu.VMEM((HIDDEN, 4 * HIDDEN), jnp.bfloat16),      # wih1_v
                pltpu.VMEM((HIDDEN, 4 * HIDDEN), jnp.bfloat16),      # whh1_v
                pltpu.VMEM((1, 4 * HIDDEN), jnp.float32),            # b1_v
                pltpu.VMEM((HIDDEN, 4 * HIDDEN), jnp.bfloat16),      # wih2_v
                pltpu.VMEM((HIDDEN, 4 * HIDDEN), jnp.bfloat16),      # whh2_v
                pltpu.VMEM((1, 4 * HIDDEN), jnp.float32),            # b2_v
                pltpu.SemaphoreType.DMA((6,)),
            ]),
        compiler_params=pltpu.CompilerParams(
            dimension_semantics=("parallel",)),
    )(x_tm,
      l0["wih"], l0["whh"], l0["b"],
      l1["wih"], l1["whh"], l1["b"],
      l2["wih"], l2["whh"], l2["b"],
      params["w1"], params["b1"], params["gamma"], params["beta"],
      params["w2p"], params["b2p"])


# ------------------------------ Parameter init --------------------------------
def _reorder_gates(w):
    # PyTorch packs gates as [i, f, g, o] along axis 0; repack to [i, f, o, g] so
    # one sigmoid covers a contiguous 3H slab and one tanh covers the last H.
    i, f, g, o = jnp.split(w, 4, axis=0)
    return jnp.concatenate([i, f, o, g], axis=0)


def init_params(key):
    params = {"lstm": []}
    bound = float(HIDDEN) ** -0.5
    for layer in range(NUM_LAYERS):
        din = INPUT_SIZE if layer == 0 else HIDDEN
        key, k1, k2, k3, k4 = jax.random.split(key, 5)
        wih = jax.random.uniform(k1, (4 * HIDDEN, din), jnp.float32, -bound, bound)
        whh = jax.random.uniform(k2, (4 * HIDDEN, HIDDEN), jnp.float32, -bound, bound)
        bih = jax.random.uniform(k3, (4 * HIDDEN,), jnp.float32, -bound, bound)
        bhh = jax.random.uniform(k4, (4 * HIDDEN,), jnp.float32, -bound, bound)
        params["lstm"].append({
            # pre-transposed (din, 4H)/(H, 4H), gate order [i,f,o,g], bf16 MXU operands
            "wih": jnp.transpose(_reorder_gates(wih)).astype(jnp.bfloat16),
            "whh": jnp.transpose(_reorder_gates(whh)).astype(jnp.bfloat16),
            # fused f32 bias, same gate order
            "b": _reorder_gates(bih + bhh).reshape(1, 4 * HIDDEN),
        })
    key, k1, k2, k3, k4 = jax.random.split(key, 5)
    b1_bound = float(HIDDEN) ** -0.5
    b2_bound = float(FC1_DIM) ** -0.5
    params["w1"] = jax.random.uniform(
        k1, (HIDDEN, FC1_DIM), jnp.float32, -b1_bound, b1_bound).astype(jnp.bfloat16)
    params["b1"] = jax.random.uniform(k2, (1, FC1_DIM), jnp.float32, -b1_bound, b1_bound)
    params["gamma"] = jnp.ones((1, FC1_DIM), jnp.float32)
    params["beta"] = jnp.zeros((1, FC1_DIM), jnp.float32)
    w2 = jax.random.uniform(k3, (FC1_DIM, OUT_DIM), jnp.float32, -b2_bound, b2_bound)
    b2 = jax.random.uniform(k4, (1, OUT_DIM), jnp.float32, -b2_bound, b2_bound)
    # Zero-pad head output columns to 128 for unmasked lane-dense stores.
    params["w2p"] = jnp.pad(w2, ((0, 0), (0, OUT_PAD - OUT_DIM))).astype(jnp.bfloat16)
    params["b2p"] = jnp.pad(b2, ((0, 0), (0, OUT_PAD - OUT_DIM)))
    return params


# --------------------------------- Forward ------------------------------------
def _batch_tiling(B):
    Bp = ((B + 7) // 8) * 8                                  # full-sublane batch
    if Bp <= MAX_B_TILE:
        return Bp, Bp                                        # single tile, grid=1
    Bp = ((Bp + MAX_B_TILE - 1) // MAX_B_TILE) * MAX_B_TILE  # tile-aligned batch
    return Bp, MAX_B_TILE


@jax.jit
def rnn_forward(x, params):
    # x: (B, T, INPUT_SIZE), batch_first like the PyTorch module.
    B, T, _ = x.shape
    Bp, b_tile = _batch_tiling(B)
    x_tm = jnp.transpose(x.astype(jnp.float32), (1, 0, 2))   # (T, B, D) time-major
    x_tm = jnp.pad(x_tm, ((0, 0), (0, Bp - B), (0, 0)))      # zero-pad batch rows
    out_p = fused_forward_padded(x_tm, params, b_tile)       # (Bp, OUT_PAD)
    return out_p[:B, :OUT_DIM]                               # (B, 28)


if __name__ == "__main__":
    key = jax.random.PRNGKey(0)
    key, pkey, xkey = jax.random.split(key, 3)
    params = init_params(pkey)
    B, T = 2, 8
    x = jax.random.normal(xkey, (B, T, INPUT_SIZE), jnp.float32)
    out = rnn_forward(x, params)
    jax.block_until_ready(out)
    assert out.shape == (B, OUT_DIM) and out.dtype == jnp.float32
    print("KERNEL_OK")
</pallas_src>

<mosaic_0001>
module attributes {stable_mosaic.version = 11 : i64} {
  func.func @fused_rnn_kernel(%arg0: i32, %arg1: memref<8x8x32xf32, #tpu.memory_space<vmem>>, %arg2: memref<32x512xbf16, #tpu.memory_space<vmem>>, %arg3: memref<128x512xbf16, #tpu.memory_space<vmem>>, %arg4: memref<1x512xf32, #tpu.memory_space<vmem>>, %arg5: memref<128x512xbf16, #tpu.memory_space<any>>, %arg6: memref<128x512xbf16, #tpu.memory_space<any>>, %arg7: memref<1x512xf32, #tpu.memory_space<any>>, %arg8: memref<128x512xbf16, #tpu.memory_space<any>>, %arg9: memref<128x512xbf16, #tpu.memory_space<any>>, %arg10: memref<1x512xf32, #tpu.memory_space<any>>, %arg11: memref<128x64xbf16, #tpu.memory_space<vmem>>, %arg12: memref<1x64xf32, #tpu.memory_space<vmem>>, %arg13: memref<1x64xf32, #tpu.memory_space<vmem>>, %arg14: memref<1x64xf32, #tpu.memory_space<vmem>>, %arg15: memref<64x128xbf16, #tpu.memory_space<vmem>>, %arg16: memref<1x128xf32, #tpu.memory_space<vmem>>, %arg17: memref<8x128xf32, #tpu.memory_space<vmem>>, %arg18: memref<8x8x128xf32, #tpu.memory_space<vmem>>, %arg19: memref<8x8x512xf32, #tpu.memory_space<vmem>>, %arg20: memref<128x512xbf16, #tpu.memory_space<vmem>>, %arg21: memref<128x512xbf16, #tpu.memory_space<vmem>>, %arg22: memref<1x512xf32, #tpu.memory_space<vmem>>, %arg23: memref<128x512xbf16, #tpu.memory_space<vmem>>, %arg24: memref<128x512xbf16, #tpu.memory_space<vmem>>, %arg25: memref<1x512xf32, #tpu.memory_space<vmem>>, %arg26: memref<6x!tpu.dma_semaphore, #tpu.memory_space<semaphore_mem>>) attributes {dimension_semantics = [#tpu.dimension_semantics<parallel>], iteration_bounds = array<i64: 1>, scalar_prefetch = 0 : i64, scratch_operands = 9 : i64, tpu.core_type = #tpu.core_type<tc>, window_params = [{transform_indices = @transform_0, window_bounds = array<i64: 8, 8, 32>}, {pipeline_mode = #tpu.pipeline_mode<synchronous>, transform_indices = @transform_1, window_bounds = array<i64: 32, 512>}, {pipeline_mode = #tpu.pipeline_mode<synchronous>, transform_indices = @transform_2, window_bounds = array<i64: 128, 512>}, {pipeline_mode = #tpu.pipeline_mode<synchronous>, transform_indices = @transform_3, window_bounds = array<i64: 1, 512>}, {}, {}, {}, {}, {}, {}, {pipeline_mode = #tpu.pipeline_mode<synchronous>, transform_indices = @transform_10, window_bounds = array<i64: 128, 64>}, {pipeline_mode = #tpu.pipeline_mode<synchronous>, transform_indices = @transform_11, window_bounds = array<i64: 1, 64>}, {pipeline_mode = #tpu.pipeline_mode<synchronous>, transform_indices = @transform_12, window_bounds = array<i64: 1, 64>}, {pipeline_mode = #tpu.pipeline_mode<synchronous>, transform_indices = @transform_13, window_bounds = array<i64: 1, 64>}, {pipeline_mode = #tpu.pipeline_mode<synchronous>, transform_indices = @transform_14, window_bounds = array<i64: 64, 128>}, {pipeline_mode = #tpu.pipeline_mode<synchronous>, transform_indices = @transform_15, window_bounds = array<i64: 1, 128>}, {transform_indices = @transform_16, window_bounds = array<i64: 8, 128>}]} {
    %c0_i32 = arith.constant 0 : i32
    %0 = tpu.memref_slice %arg26[%c0_i32] : memref<6x!tpu.dma_semaphore, #tpu.memory_space<semaphore_mem>> -> memref<1x!tpu.dma_semaphore, #tpu.memory_space<semaphore_mem>>
    %1 = tpu.memref_squeeze %0 : memref<1x!tpu.dma_semaphore, #tpu.memory_space<semaphore_mem>> -> memref<!tpu.dma_semaphore, #tpu.memory_space<semaphore_mem>>
    tpu.enqueue_dma source(%arg5 : memref<128x512xbf16, #tpu.memory_space<any>>) target(%arg20 : memref<128x512xbf16, #tpu.memory_space<vmem>>) target_semaphore(%1 : memref<!tpu.dma_semaphore, #tpu.memory_space<semaphore_mem>>)
    %c1_i32 = arith.constant 1 : i32
    %2 = tpu.memref_slice %arg26[%c1_i32] : memref<6x!tpu.dma_semaphore, #tpu.memory_space<semaphore_mem>> -> memref<1x!tpu.dma_semaphore, #tpu.memory_space<semaphore_mem>>
    %3 = tpu.memref_squeeze %2 : memref<1x!tpu.dma_semaphore, #tpu.memory_space<semaphore_mem>> -> memref<!tpu.dma_semaphore, #tpu.memory_space<semaphore_mem>>
    tpu.enqueue_dma source(%arg6 : memref<128x512xbf16, #tpu.memory_space<any>>) target(%arg21 : memref<128x512xbf16, #tpu.memory_space<vmem>>) target_semaphore(%3 : memref<!tpu.dma_semaphore, #tpu.memory_space<semaphore_mem>>)
    %c2_i32 = arith.constant 2 : i32
    %4 = tpu.memref_slice %arg26[%c2_i32] : memref<6x!tpu.dma_semaphore, #tpu.memory_space<semaphore_mem>> -> memref<1x!tpu.dma_semaphore, #tpu.memory_space<semaphore_mem>>
    %5 = tpu.memref_squeeze %4 : memref<1x!tpu.dma_semaphore, #tpu.memory_space<semaphore_mem>> -> memref<!tpu.dma_semaphore, #tpu.memory_space<semaphore_mem>>
    tpu.enqueue_dma source(%arg7 : memref<1x512xf32, #tpu.memory_space<any>>) target(%arg22 : memref<1x512xf32, #tpu.memory_space<vmem>>) target_semaphore(%5 : memref<!tpu.dma_semaphore, #tpu.memory_space<semaphore_mem>>)
    %c3_i32 = arith.constant 3 : i32
    %6 = tpu.memref_slice %arg26[%c3_i32] : memref<6x!tpu.dma_semaphore, #tpu.memory_space<semaphore_mem>> -> memref<1x!tpu.dma_semaphore, #tpu.memory_space<semaphore_mem>>
    %7 = tpu.memref_squeeze %6 : memref<1x!tpu.dma_semaphore, #tpu.memory_space<semaphore_mem>> -> memref<!tpu.dma_semaphore, #tpu.memory_space<semaphore_mem>>
    tpu.enqueue_dma source(%arg8 : memref<128x512xbf16, #tpu.memory_space<any>>) target(%arg23 : memref<128x512xbf16, #tpu.memory_space<vmem>>) target_semaphore(%7 : memref<!tpu.dma_semaphore, #tpu.memory_space<semaphore_mem>>)
    %c4_i32 = arith.constant 4 : i32
    %8 = tpu.memref_slice %arg26[%c4_i32] : memref<6x!tpu.dma_semaphore, #tpu.memory_space<semaphore_mem>> -> memref<1x!tpu.dma_semaphore, #tpu.memory_space<semaphore_mem>>
    %9 = tpu.memref_squeeze %8 : memref<1x!tpu.dma_semaphore, #tpu.memory_space<semaphore_mem>> -> memref<!tpu.dma_semaphore, #tpu.memory_space<semaphore_mem>>
    tpu.enqueue_dma source(%arg9 : memref<128x512xbf16, #tpu.memory_space<any>>) target(%arg24 : memref<128x512xbf16, #tpu.memory_space<vmem>>) target_semaphore(%9 : memref<!tpu.dma_semaphore, #tpu.memory_space<semaphore_mem>>)
    %c5_i32 = arith.constant 5 : i32
    %10 = tpu.memref_slice %arg26[%c5_i32] : memref<6x!tpu.dma_semaphore, #tpu.memory_space<semaphore_mem>> -> memref<1x!tpu.dma_semaphore, #tpu.memory_space<semaphore_mem>>
    %11 = tpu.memref_squeeze %10 : memref<1x!tpu.dma_semaphore, #tpu.memory_space<semaphore_mem>> -> memref<!tpu.dma_semaphore, #tpu.memory_space<semaphore_mem>>
    tpu.enqueue_dma source(%arg10 : memref<1x512xf32, #tpu.memory_space<any>>) target(%arg25 : memref<1x512xf32, #tpu.memory_space<vmem>>) target_semaphore(%11 : memref<!tpu.dma_semaphore, #tpu.memory_space<semaphore_mem>>)
    %c0 = arith.constant 0 : index
    %c0_0 = arith.constant 0 : index
    %c0_1 = arith.constant 0 : index
    %12 = vector.load %arg1[%c0, %c0_0, %c0_1] : memref<8x8x32xf32, #tpu.memory_space<vmem>>, vector<8x8x32xf32>
    %13 = vector.shape_cast %12 : vector<8x8x32xf32> to vector<64x32xf32>
    %14 = arith.truncf %13 : vector<64x32xf32> to vector<64x32xbf16>
    %c0_2 = arith.constant 0 : index
    %c0_3 = arith.constant 0 : index
    %15 = vector.load %arg2[%c0_2, %c0_3] : memref<32x512xbf16, #tpu.memory_space<vmem>>, vector<32x512xbf16>
    %c0_4 = arith.constant 0 : index
    %c0_5 = arith.constant 0 : index
    %16 = vector.load %arg4[%c0_4, %c0_5] : memref<1x512xf32, #tpu.memory_space<vmem>>, vector<1x512xf32>
    %cst = arith.constant dense<0.000000e+00> : vector<64x512xf32>
    %17 = tpu.matmul %14, %15, %cst {dimension_numbers = #tpu.dot_dimension_numbers<[1], [0], [0], [1], [0, 0, 1, 1], [], []>} : vector<64x32xbf16>, vector<32x512xbf16>, vector<64x512xf32> -> vector<64x512xf32>
    %18 = vector.broadcast %16 : vector<1x512xf32> to vector<64x512xf32>
    %19 = arith.addf %17, %18 : vector<64x512xf32>
    %20 = vector.shape_cast %19 : vector<64x512xf32> to vector<8x8x512xf32>
    %c0_6 = arith.constant 0 : index
    %c0_7 = arith.constant 0 : index
    %c0_8 = arith.constant 0 : index
    %21 = vector.load %arg19[%c0_6, %c0_7, %c0_8] : memref<8x8x512xf32, #tpu.memory_space<vmem>>, vector<8x8x512xf32>
    tpu.vector_store %arg19[%c0_6, %c0_7, %c0_8], %20 {strides = array<i32>} : memref<8x8x512xf32, #tpu.memory_space<vmem>>, vector<8x8x512xf32>,
    %cst_9 = arith.constant 0.000000e+00 : f32
    %22 = vector.broadcast %cst_9 : f32 to vector<8x128xf32>
    %cst_10 = arith.constant 0.000000e+00 : f32
    %23 = vector.broadcast %cst_10 : f32 to vector<8x128xf32>
    %c0_i32_11 = arith.constant 0 : i32
    %24 = arith.index_cast %c0_i32_11 : i32 to index
    %c0_12 = arith.constant 0 : index
    %c0_13 = arith.constant 0 : index
    %25 = vector.load %arg19[%24, %c0_12, %c0_13] : memref<8x8x512xf32, #tpu.memory_space<vmem>>, vector<1x8x512xf32>
    %26 = vector.shape_cast %25 : vector<1x8x512xf32> to vector<8x512xf32>
    %27 = arith.truncf %22 : vector<8x128xf32> to vector<8x128xbf16>
    %c0_14 = arith.constant 0 : index
    %c0_15 = arith.constant 0 : index
    %28 = vector.load %arg3[%c0_14, %c0_15] : memref<128x512xbf16, #tpu.memory_space<vmem>>, vector<128x512xbf16>
    %cst_16 = arith.constant dense<0.000000e+00> : vector<8x512xf32>
    %29 = tpu.matmul %27, %28, %cst_16 {dimension_numbers = #tpu.dot_dimension_numbers<[1], [0], [0], [1], [0, 0, 1, 1], [], []>} : vector<8x128xbf16>, vector<128x512xbf16>, vector<8x512xf32> -> vector<8x512xf32>
    %30 = arith.addf %26, %29 : vector<8x512xf32>
    %31 = vector.extract_strided_slice %30 {offsets = [0, 0], sizes = [8, 384], strides = [1, 1]} : vector<8x512xf32> to vector<8x384xf32>
    %32 = arith.negf %31 : vector<8x384xf32>
    %33 = math.exp %32 : vector<8x384xf32>
    %cst_17 = arith.constant 1.000000e+00 : f32
    %34 = vector.broadcast %cst_17 : f32 to vector<8x384xf32>
    %35 = arith.addf %34, %33 : vector<8x384xf32>
    %36 = arith.divf %34, %35 : vector<8x384xf32>
    %37 = vector.extract_strided_slice %30 {offsets = [0, 384], sizes = [8, 128], strides = [1, 1]} : vector<8x512xf32> to vector<8x128xf32>
    %38 = math.tanh %37 : vector<8x128xf32>
    %39 = vector.extract_strided_slice %36 {offsets = [0, 0], sizes = [8, 128], strides = [1, 1]} : vector<8x384xf32> to vector<8x128xf32>
    %40 = vector.extract_strided_slice %36 {offsets = [0, 128], sizes = [8, 128], strides = [1, 1]} : vector<8x384xf32> to vector<8x128xf32>
    %41 = vector.extract_strided_slice %36 {offsets = [0, 256], sizes = [8, 128], strides = [1, 1]} : vector<8x384xf32> to vector<8x128xf32>
    %42 = arith.mulf %40, %23 : vector<8x128xf32>
    %43 = arith.mulf %39, %38 : vector<8x128xf32>
    %44 = arith.addf %42, %43 : vector<8x128xf32>
    %45 = math.tanh %44 : vector<8x128xf32>
    %46 = arith.mulf %41, %45 : vector<8x128xf32>
    %47 = arith.index_cast %c0_i32_11 : i32 to index
    %c0_18 = arith.constant 0 : index
    %c0_19 = arith.constant 0 : index
    %48 = vector.load %arg18[%47, %c0_18, %c0_19] : memref<8x8x128xf32, #tpu.memory_space<vmem>>, vector<1x8x128xf32>
    %49 = vector.shape_cast %48 : vector<1x8x128xf32> to vector<8x128xf32>
    %50 = vector.shape_cast %46 : vector<8x128xf32> to vector<1x8x128xf32>
    tpu.vector_store %arg18[%47, %c0_18, %c0_19], %50 {strides = array<i32>} : memref<8x8x128xf32, #tpu.memory_space<vmem>>, vector<1x8x128xf32>,
    %c1_i32_20 = arith.constant 1 : i32
    %51 = arith.index_cast %c1_i32_20 : i32 to index
    %c0_21 = arith.constant 0 : index
    %c0_22 = arith.constant 0 : index
    %52 = vector.load %arg19[%51, %c0_21, %c0_22] : memref<8x8x512xf32, #tpu.memory_space<vmem>>, vector<1x8x512xf32>
    %53 = vector.shape_cast %52 : vector<1x8x512xf32> to vector<8x512xf32>
    %54 = arith.truncf %46 : vector<8x128xf32> to vector<8x128xbf16>
    %c0_23 = arith.constant 0 : index
    %c0_24 = arith.constant 0 : index
    %55 = vector.load %arg3[%c0_23, %c0_24] : memref<128x512xbf16, #tpu.memory_space<vmem>>, vector<128x512xbf16>
    %cst_25 = arith.constant dense<0.000000e+00> : vector<8x512xf32>
    %56 = tpu.matmul %54, %55, %cst_25 {dimension_numbers = #tpu.dot_dimension_numbers<[1], [0], [0], [1], [0, 0, 1, 1], [], []>} : vector<8x128xbf16>, vector<128x512xbf16>, vector<8x512xf32> -> vector<8x512xf32>
    %57 = arith.addf %53, %56 : vector<8x512xf32>
    %58 = vector.extract_strided_slice %57 {offsets = [0, 0], sizes = [8, 384], strides = [1, 1]} : vector<8x512xf32> to vector<8x384xf32>
    %59 = arith.negf %58 : vector<8x384xf32>
    %60 = math.exp %59 : vector<8x384xf32>
    %cst_26 = arith.constant 1.000000e+00 : f32
    %61 = vector.broadcast %cst_26 : f32 to vector<8x384xf32>
    %62 = arith.addf %61, %60 : vector<8x384xf32>
    %63 = arith.divf %61, %62 : vector<8x384xf32>
    %64 = vector.extract_strided_slice %57 {offsets = [0, 384], sizes = [8, 128], strides = [1, 1]} : vector<8x512xf32> to vector<8x128xf32>
    %65 = math.tanh %64 : vector<8x128xf32>
    %66 = vector.extract_strided_slice %63 {offsets = [0, 0], sizes = [8, 128], strides = [1, 1]} : vector<8x384xf32> to vector<8x128xf32>
    %67 = vector.extract_strided_slice %63 {offsets = [0, 128], sizes = [8, 128], strides = [1, 1]} : vector<8x384xf32> to vector<8x128xf32>
    %68 = vector.extract_strided_slice %63 {offsets = [0, 256], sizes = [8, 128], strides = [1, 1]} : vector<8x384xf32> to vector<8x128xf32>
    %69 = arith.mulf %67, %44 : vector<8x128xf32>
    %70 = arith.mulf %66, %65 : vector<8x128xf32>
    %71 = arith.addf %69, %70 : vector<8x128xf32>
    %72 = math.tanh %71 : vector<8x128xf32>
    %73 = arith.mulf %68, %72 : vector<8x128xf32>
    %74 = arith.index_cast %c1_i32_20 : i32 to index
    %c0_27 = arith.constant 0 : index
    %c0_28 = arith.constant 0 : index
    %75 = vector.load %arg18[%74, %c0_27, %c0_28] : memref<8x8x128xf32, #tpu.memory_space<vmem>>, vector<1x8x128xf32>
    %76 = vector.shape_cast %75 : vector<1x8x128xf32> to vector<8x128xf32>
    %77 = vector.shape_cast %73 : vector<8x128xf32> to vector<1x8x128xf32>
    tpu.vector_store %arg18[%74, %c0_27, %c0_28], %77 {strides = array<i32>} : memref<8x8x128xf32, #tpu.memory_space<vmem>>, vector<1x8x128xf32>,
    %c2_i32_29 = arith.constant 2 : i32
    %78 = arith.index_cast %c2_i32_29 : i32 to index
    %c0_30 = arith.constant 0 : index
    %c0_31 = arith.constant 0 : index
    %79 = vector.load %arg19[%78, %c0_30, %c0_31] : memref<8x8x512xf32, #tpu.memory_space<vmem>>, vector<1x8x512xf32>
    %80 = vector.shape_cast %79 : vector<1x8x512xf32> to vector<8x512xf32>
    %81 = arith.truncf %73 : vector<8x128xf32> to vector<8x128xbf16>
    %c0_32 = arith.constant 0 : index
    %c0_33 = arith.constant 0 : index
    %82 = vector.load %arg3[%c0_32, %c0_33] : memref<128x512xbf16, #tpu.memory_space<vmem>>, vector<128x512xbf16>
    %cst_34 = arith.constant dense<0.000000e+00> : vector<8x512xf32>
    %83 = tpu.matmul %81, %82, %cst_34 {dimension_numbers = #tpu.dot_dimension_numbers<[1], [0], [0], [1], [0, 0, 1, 1], [], []>} : vector<8x128xbf16>, vector<128x512xbf16>, vector<8x512xf32> -> vector<8x512xf32>
    %84 = arith.addf %80, %83 : vector<8x512xf32>
    %85 = vector.extract_strided_slice %84 {offsets = [0, 0], sizes = [8, 384], strides = [1, 1]} : vector<8x512xf32> to vector<8x384xf32>
    %86 = arith.negf %85 : vector<8x384xf32>
    %87 = math.exp %86 : vector<8x384xf32>
    %cst_35 = arith.constant 1.000000e+00 : f32
    %88 = vector.broadcast %cst_35 : f32 to vector<8x384xf32>
    %89 = arith.addf %88, %87 : vector<8x384xf32>
    %90 = arith.divf %88, %89 : vector<8x384xf32>
    %91 = vector.extract_strided_slice %84 {offsets = [0, 384], sizes = [8, 128], strides = [1, 1]} : vector<8x512xf32> to vector<8x128xf32>
    %92 = math.tanh %91 : vector<8x128xf32>
    %93 = vector.extract_strided_slice %90 {offsets = [0, 0], sizes = [8, 128], strides = [1, 1]} : vector<8x384xf32> to vector<8x128xf32>
    %94 = vector.extract_strided_slice %90 {offsets = [0, 128], sizes = [8, 128], strides = [1, 1]} : vector<8x384xf32> to vector<8x128xf32>
    %95 = vector.extract_strided_slice %90 {offsets = [0, 256], sizes = [8, 128], strides = [1, 1]} : vector<8x384xf32> to vector<8x128xf32>
    %96 = arith.mulf %94, %71 : vector<8x128xf32>
    %97 = arith.mulf %93, %92 : vector<8x128xf32>
    %98 = arith.addf %96, %97 : vector<8x128xf32>
    %99 = math.tanh %98 : vector<8x128xf32>
    %100 = arith.mulf %95, %99 : vector<8x128xf32>
    %101 = arith.index_cast %c2_i32_29 : i32 to index
    %c0_36 = arith.constant 0 : index
    %c0_37 = arith.constant 0 : index
    %102 = vector.load %arg18[%101, %c0_36, %c0_37] : memref<8x8x128xf32, #tpu.memory_space<vmem>>, vector<1x8x128xf32>
    %103 = vector.shape_cast %102 : vector<1x8x128xf32> to vector<8x128xf32>
    %104 = vector.shape_cast %100 : vector<8x128xf32> to vector<1x8x128xf32>
    tpu.vector_store %arg18[%101, %c0_36, %c0_37], %104 {strides = array<i32>} : memref<8x8x128xf32, #tpu.memory_space<vmem>>, vector<1x8x128xf32>,
    %c3_i32_38 = arith.constant 3 : i32
    %105 = arith.index_cast %c3_i32_38 : i32 to index
    %c0_39 = arith.constant 0 : index
    %c0_40 = arith.constant 0 : index
    %106 = vector.load %arg19[%105, %c0_39, %c0_40] : memref<8x8x512xf32, #tpu.memory_space<vmem>>, vector<1x8x512xf32>
    %107 = vector.shape_cast %106 : vector<1x8x512xf32> to vector<8x512xf32>
    %108 = arith.truncf %100 : vector<8x128xf32> to vector<8x128xbf16>
    %c0_41 = arith.constant 0 : index
    %c0_42 = arith.constant 0 : index
    %109 = vector.load %arg3[%c0_41, %c0_42] : memref<128x512xbf16, #tpu.memory_space<vmem>>, vector<128x512xbf16>
    %cst_43 = arith.constant dense<0.000000e+00> : vector<8x512xf32>
    %110 = tpu.matmul %108, %109, %cst_43 {dimension_numbers = #tpu.dot_dimension_numbers<[1], [0], [0], [1], [0, 0, 1, 1], [], []>} : vector<8x128xbf16>, vector<128x512xbf16>, vector<8x512xf32> -> vector<8x512xf32>
    %111 = arith.addf %107, %110 : vector<8x512xf32>
    %112 = vector.extract_strided_slice %111 {offsets = [0, 0], sizes = [8, 384], strides = [1, 1]} : vector<8x512xf32> to vector<8x384xf32>
    %113 = arith.negf %112 : vector<8x384xf32>
    %114 = math.exp %113 : vector<8x384xf32>
    %cst_44 = arith.constant 1.000000e+00 : f32
    %115 = vector.broadcast %cst_44 : f32 to vector<8x384xf32>
    %116 = arith.addf %115, %114 : vector<8x384xf32>
    %117 = arith.divf %115, %116 : vector<8x384xf32>
    %118 = vector.extract_strided_slice %111 {offsets = [0, 384], sizes = [8, 128], strides = [1, 1]} : vector<8x512xf32> to vector<8x128xf32>
    %119 = math.tanh %118 : vector<8x128xf32>
    %120 = vector.extract_strided_slice %117 {offsets = [0, 0], sizes = [8, 128], strides = [1, 1]} : vector<8x384xf32> to vector<8x128xf32>
    %121 = vector.extract_strided_slice %117 {offsets = [0, 128], sizes = [8, 128], strides = [1, 1]} : vector<8x384xf32> to vector<8x128xf32>
    %122 = vector.extract_strided_slice %117 {offsets = [0, 256], sizes = [8, 128], strides = [1, 1]} : vector<8x384xf32> to vector<8x128xf32>
    %123 = arith.mulf %121, %98 : vector<8x128xf32>
    %124 = arith.mulf %120, %119 : vector<8x128xf32>
    %125 = arith.addf %123, %124 : vector<8x128xf32>
    %126 = math.tanh %125 : vector<8x128xf32>
    %127 = arith.mulf %122, %126 : vector<8x128xf32>
    %128 = arith.index_cast %c3_i32_38 : i32 to index
    %c0_45 = arith.constant 0 : index
    %c0_46 = arith.constant 0 : index
    %129 = vector.load %arg18[%128, %c0_45, %c0_46] : memref<8x8x128xf32, #tpu.memory_space<vmem>>, vector<1x8x128xf32>
    %130 = vector.shape_cast %129 : vector<1x8x128xf32> to vector<8x128xf32>
    %131 = vector.shape_cast %127 : vector<8x128xf32> to vector<1x8x128xf32>
    tpu.vector_store %arg18[%128, %c0_45, %c0_46], %131 {strides = array<i32>} : memref<8x8x128xf32, #tpu.memory_space<vmem>>, vector<1x8x128xf32>,
    %c4_i32_47 = arith.constant 4 : i32
    %132 = arith.index_cast %c4_i32_47 : i32 to index
    %c0_48 = arith.constant 0 : index
    %c0_49 = arith.constant 0 : index
    %133 = vector.load %arg19[%132, %c0_48, %c0_49] : memref<8x8x512xf32, #tpu.memory_space<vmem>>, vector<1x8x512xf32>
    %134 = vector.shape_cast %133 : vector<1x8x512xf32> to vector<8x512xf32>
    %135 = arith.truncf %127 : vector<8x128xf32> to vector<8x128xbf16>
    %c0_50 = arith.constant 0 : index
    %c0_51 = arith.constant 0 : index
    %136 = vector.load %arg3[%c0_50, %c0_51] : memref<128x512xbf16, #tpu.memory_space<vmem>>, vector<128x512xbf16>
    %cst_52 = arith.constant dense<0.000000e+00> : vector<8x512xf32>
    %137 = tpu.matmul %135, %136, %cst_52 {dimension_numbers = #tpu.dot_dimension_numbers<[1], [0], [0], [1], [0, 0, 1, 1], [], []>} : vector<8x128xbf16>, vector<128x512xbf16>, vector<8x512xf32> -> vector<8x512xf32>
    %138 = arith.addf %134, %137 : vector<8x512xf32>
    %139 = vector.extract_strided_slice %138 {offsets = [0, 0], sizes = [8, 384], strides = [1, 1]} : vector<8x512xf32> to vector<8x384xf32>
    %140 = arith.negf %139 : vector<8x384xf32>
    %141 = math.exp %140 : vector<8x384xf32>
    %cst_53 = arith.constant 1.000000e+00 : f32
    %142 = vector.broadcast %cst_53 : f32 to vector<8x384xf32>
    %143 = arith.addf %142, %141 : vector<8x384xf32>
    %144 = arith.divf %142, %143 : vector<8x384xf32>
    %145 = vector.extract_strided_slice %138 {offsets = [0, 384], sizes = [8, 128], strides = [1, 1]} : vector<8x512xf32> to vector<8x128xf32>
    %146 = math.tanh %145 : vector<8x128xf32>
    %147 = vector.extract_strided_slice %144 {offsets = [0, 0], sizes = [8, 128], strides = [1, 1]} : vector<8x384xf32> to vector<8x128xf32>
    %148 = vector.extract_strided_slice %144 {offsets = [0, 128], sizes = [8, 128], strides = [1, 1]} : vector<8x384xf32> to vector<8x128xf32>
    %149 = vector.extract_strided_slice %144 {offsets = [0, 256], sizes = [8, 128], strides = [1, 1]} : vector<8x384xf32> to vector<8x128xf32>
    %150 = arith.mulf %148, %125 : vector<8x128xf32>
    %151 = arith.mulf %147, %146 : vector<8x128xf32>
    %152 = arith.addf %150, %151 : vector<8x128xf32>
    %153 = math.tanh %152 : vector<8x128xf32>
    %154 = arith.mulf %149, %153 : vector<8x128xf32>
    %155 = arith.index_cast %c4_i32_47 : i32 to index
    %c0_54 = arith.constant 0 : index
    %c0_55 = arith.constant 0 : index
    %156 = vector.load %arg18[%155, %c0_54, %c0_55] : memref<8x8x128xf32, #tpu.memory_space<vmem>>, vector<1x8x128xf32>
    %157 = vector.shape_cast %156 : vector<1x8x128xf32> to vector<8x128xf32>
    %158 = vector.shape_cast %154 : vector<8x128xf32> to vector<1x8x128xf32>
    tpu.vector_store %arg18[%155, %c0_54, %c0_55], %158 {strides = array<i32>} : memref<8x8x128xf32, #tpu.memory_space<vmem>>, vector<1x8x128xf32>,
    %c5_i32_56 = arith.constant 5 : i32
    %159 = arith.index_cast %c5_i32_56 : i32 to index
    %c0_57 = arith.constant 0 : index
    %c0_58 = arith.constant 0 : index
    %160 = vector.load %arg19[%159, %c0_57, %c0_58] : memref<8x8x512xf32, #tpu.memory_space<vmem>>, vector<1x8x512xf32>
    %161 = vector.shape_cast %160 : vector<1x8x512xf32> to vector<8x512xf32>
    %162 = arith.truncf %154 : vector<8x128xf32> to vector<8x128xbf16>
    %c0_59 = arith.constant 0 : index
    %c0_60 = arith.constant 0 : index
    %163 = vector.load %arg3[%c0_59, %c0_60] : memref<128x512xbf16, #tpu.memory_space<vmem>>, vector<128x512xbf16>
    %cst_61 = arith.constant dense<0.000000e+00> : vector<8x512xf32>
    %164 = tpu.matmul %162, %163, %cst_61 {dimension_numbers = #tpu.dot_dimension_numbers<[1], [0], [0], [1], [0, 0, 1, 1], [], []>} : vector<8x128xbf16>, vector<128x512xbf16>, vector<8x512xf32> -> vector<8x512xf32>
    %165 = arith.addf %161, %164 : vector<8x512xf32>
    %166 = vector.extract_strided_slice %165 {offsets = [0, 0], sizes = [8, 384], strides = [1, 1]} : vector<8x512xf32> to vector<8x384xf32>
    %167 = arith.negf %166 : vector<8x384xf32>
    %168 = math.exp %167 : vector<8x384xf32>
    %cst_62 = arith.constant 1.000000e+00 : f32
    %169 = vector.broadcast %cst_62 : f32 to vector<8x384xf32>
    %170 = arith.addf %169, %168 : vector<8x384xf32>
    %171 = arith.divf %169, %170 : vector<8x384xf32>
    %172 = vector.extract_strided_slice %165 {offsets = [0, 384], sizes = [8, 128], strides = [1, 1]} : vector<8x512xf32> to vector<8x128xf32>
    %173 = math.tanh %172 : vector<8x128xf32>
    %174 = vector.extract_strided_slice %171 {offsets = [0, 0], sizes = [8, 128], strides = [1, 1]} : vector<8x384xf32> to vector<8x128xf32>
    %175 = vector.extract_strided_slice %171 {offsets = [0, 128], sizes = [8, 128], strides = [1, 1]} : vector<8x384xf32> to vector<8x128xf32>
    %176 = vector.extract_strided_slice %171 {offsets = [0, 256], sizes = [8, 128], strides = [1, 1]} : vector<8x384xf32> to vector<8x128xf32>
    %177 = arith.mulf %175, %152 : vector<8x128xf32>
    %178 = arith.mulf %174, %173 : vector<8x128xf32>
    %179 = arith.addf %177, %178 : vector<8x128xf32>
    %180 = math.tanh %179 : vector<8x128xf32>
    %181 = arith.mulf %176, %180 : vector<8x128xf32>
    %182 = arith.index_cast %c5_i32_56 : i32 to index
    %c0_63 = arith.constant 0 : index
    %c0_64 = arith.constant 0 : index
    %183 = vector.load %arg18[%182, %c0_63, %c0_64] : memref<8x8x128xf32, #tpu.memory_space<vmem>>, vector<1x8x128xf32>
    %184 = vector.shape_cast %183 : vector<1x8x128xf32> to vector<8x128xf32>
    %185 = vector.shape_cast %181 : vector<8x128xf32> to vector<1x8x128xf32>
    tpu.vector_store %arg18[%182, %c0_63, %c0_64], %185 {strides = array<i32>} : memref<8x8x128xf32, #tpu.memory_space<vmem>>, vector<1x8x128xf32>,
    %c6_i32 = arith.constant 6 : i32
    %186 = arith.index_cast %c6_i32 : i32 to index
    %c0_65 = arith.constant 0 : index
    %c0_66 = arith.constant 0 : index
    %187 = vector.load %arg19[%186, %c0_65, %c0_66] : memref<8x8x512xf32, #tpu.memory_space<vmem>>, vector<1x8x512xf32>
    %188 = vector.shape_cast %187 : vector<1x8x512xf32> to vector<8x512xf32>
    %189 = arith.truncf %181 : vector<8x128xf32> to vector<8x128xbf16>
    %c0_67 = arith.constant 0 : index
    %c0_68 = arith.constant 0 : index
    %190 = vector.load %arg3[%c0_67, %c0_68] : memref<128x512xbf16, #tpu.memory_space<vmem>>, vector<128x512xbf16>
    %cst_69 = arith.constant dense<0.000000e+00> : vector<8x512xf32>
    %191 = tpu.matmul %189, %190, %cst_69 {dimension_numbers = #tpu.dot_dimension_numbers<[1], [0], [0], [1], [0, 0, 1, 1], [], []>} : vector<8x128xbf16>, vector<128x512xbf16>, vector<8x512xf32> -> vector<8x512xf32>
    %192 = arith.addf %188, %191 : vector<8x512xf32>
    %193 = vector.extract_strided_slice %192 {offsets = [0, 0], sizes = [8, 384], strides = [1, 1]} : vector<8x512xf32> to vector<8x384xf32>
    %194 = arith.negf %193 : vector<8x384xf32>
    %195 = math.exp %194 : vector<8x384xf32>
    %cst_70 = arith.constant 1.000000e+00 : f32
    %196 = vector.broadcast %cst_70 : f32 to vector<8x384xf32>
    %197 = arith.addf %196, %195 : vector<8x384xf32>
    %198 = arith.divf %196, %197 : vector<8x384xf32>
    %199 = vector.extract_strided_slice %192 {offsets = [0, 384], sizes = [8, 128], strides = [1, 1]} : vector<8x512xf32> to vector<8x128xf32>
    %200 = math.tanh %199 : vector<8x128xf32>
    %201 = vector.extract_strided_slice %198 {offsets = [0, 0], sizes = [8, 128], strides = [1, 1]} : vector<8x384xf32> to vector<8x128xf32>
    %202 = vector.extract_strided_slice %198 {offsets = [0, 128], sizes = [8, 128], strides = [1, 1]} : vector<8x384xf32> to vector<8x128xf32>
    %203 = vector.extract_strided_slice %198 {offsets = [0, 256], sizes = [8, 128], strides = [1, 1]} : vector<8x384xf32> to vector<8x128xf32>
    %204 = arith.mulf %202, %179 : vector<8x128xf32>
    %205 = arith.mulf %201, %200 : vector<8x128xf32>
    %206 = arith.addf %204, %205 : vector<8x128xf32>
    %207 = math.tanh %206 : vector<8x128xf32>
    %208 = arith.mulf %203, %207 : vector<8x128xf32>
    %209 = arith.index_cast %c6_i32 : i32 to index
    %c0_71 = arith.constant 0 : index
    %c0_72 = arith.constant 0 : index
    %210 = vector.load %arg18[%209, %c0_71, %c0_72] : memref<8x8x128xf32, #tpu.memory_space<vmem>>, vector<1x8x128xf32>
    %211 = vector.shape_cast %210 : vector<1x8x128xf32> to vector<8x128xf32>
    %212 = vector.shape_cast %208 : vector<8x128xf32> to vector<1x8x128xf32>
    tpu.vector_store %arg18[%209, %c0_71, %c0_72], %212 {strides = array<i32>} : memref<8x8x128xf32, #tpu.memory_space<vmem>>, vector<1x8x128xf32>,
    %c7_i32 = arith.constant 7 : i32
    %213 = arith.index_cast %c7_i32 : i32 to index
    %c0_73 = arith.constant 0 : index
    %c0_74 = arith.constant 0 : index
    %214 = vector.load %arg19[%213, %c0_73, %c0_74] : memref<8x8x512xf32, #tpu.memory_space<vmem>>, vector<1x8x512xf32>
    %215 = vector.shape_cast %214 : vector<1x8x512xf32> to vector<8x512xf32>
    %216 = arith.truncf %208 : vector<8x128xf32> to vector<8x128xbf16>
    %c0_75 = arith.constant 0 : index
    %c0_76 = arith.constant 0 : index
    %217 = vector.load %arg3[%c0_75, %c0_76] : memref<128x512xbf16, #tpu.memory_space<vmem>>, vector<128x512xbf16>
    %cst_77 = arith.constant dense<0.000000e+00> : vector<8x512xf32>
    %218 = tpu.matmul %216, %217, %cst_77 {dimension_numbers = #tpu.dot_dimension_numbers<[1], [0], [0], [1], [0, 0, 1, 1], [], []>} : vector<8x128xbf16>, vector<128x512xbf16>, vector<8x512xf32> -> vector<8x512xf32>
    %219 = arith.addf %215, %218 : vector<8x512xf32>
    %220 = vector.extract_strided_slice %219 {offsets = [0, 0], sizes = [8, 384], strides = [1, 1]} : vector<8x512xf32> to vector<8x384xf32>
    %221 = arith.negf %220 : vector<8x384xf32>
    %222 = math.exp %221 : vector<8x384xf32>
    %cst_78 = arith.constant 1.000000e+00 : f32
    %223 = vector.broadcast %cst_78 : f32 to vector<8x384xf32>
    %224 = arith.addf %223, %222 : vector<8x384xf32>
    %225 = arith.divf %223, %224 : vector<8x384xf32>
    %226 = vector.extract_strided_slice %219 {offsets = [0, 384], sizes = [8, 128], strides = [1, 1]} : vector<8x512xf32> to vector<8x128xf32>
    %227 = math.tanh %226 : vector<8x128xf32>
    %228 = vector.extract_strided_slice %225 {offsets = [0, 0], sizes = [8, 128], strides = [1, 1]} : vector<8x384xf32> to vector<8x128xf32>
    %229 = vector.extract_strided_slice %225 {offsets = [0, 128], sizes = [8, 128], strides = [1, 1]} : vector<8x384xf32> to vector<8x128xf32>
    %230 = vector.extract_strided_slice %225 {offsets = [0, 256], sizes = [8, 128], strides = [1, 1]} : vector<8x384xf32> to vector<8x128xf32>
    %231 = arith.mulf %229, %206 : vector<8x128xf32>
    %232 = arith.mulf %228, %227 : vector<8x128xf32>
    %233 = arith.addf %231, %232 : vector<8x128xf32>
    %234 = math.tanh %233 : vector<8x128xf32>
    %235 = arith.mulf %230, %234 : vector<8x128xf32>
    %236 = arith.index_cast %c7_i32 : i32 to index
    %c0_79 = arith.constant 0 : index
    %c0_80 = arith.constant 0 : index
    %237 = vector.load %arg18[%236, %c0_79, %c0_80] : memref<8x8x128xf32, #tpu.memory_space<vmem>>, vector<1x8x128xf32>
    %238 = vector.shape_cast %237 : vector<1x8x128xf32> to vector<8x128xf32>
    %239 = vector.shape_cast %235 : vector<8x128xf32> to vector<1x8x128xf32>
    tpu.vector_store %arg18[%236, %c0_79, %c0_80], %239 {strides = array<i32>} : memref<8x8x128xf32, #tpu.memory_space<vmem>>, vector<1x8x128xf32>,
    %c8_i32 = arith.constant 8 : i32
    %c0_81 = arith.constant 0 : index
    %c0_82 = arith.constant 0 : index
    %c0_83 = arith.constant 0 : index
    %240 = vector.load %arg18[%c0_81, %c0_82, %c0_83] : memref<8x8x128xf32, #tpu.memory_space<vmem>>, vector<8x8x128xf32>
    %241 = vector.shape_cast %240 : vector<8x8x128xf32> to vector<64x128xf32>
    %242 = arith.truncf %241 : vector<64x128xf32> to vector<64x128xbf16>
    %c0_i32_84 = arith.constant 0 : i32
    %243 = tpu.memref_slice %arg26[%c0_i32_84] : memref<6x!tpu.dma_semaphore, #tpu.memory_space<semaphore_mem>> -> memref<1x!tpu.dma_semaphore, #tpu.memory_space<semaphore_mem>>
    %244 = tpu.memref_squeeze %243 : memref<1x!tpu.dma_semaphore, #tpu.memory_space<semaphore_mem>> -> memref<!tpu.dma_semaphore, #tpu.memory_space<semaphore_mem>>
    tpu.wait_dma2 semaphore(%244 : memref<!tpu.dma_semaphore, #tpu.memory_space<semaphore_mem>>) src(%arg5 : memref<128x512xbf16, #tpu.memory_space<any>>) dst(%arg20 : memref<128x512xbf16, #tpu.memory_space<vmem>>)
    %c1_i32_85 = arith.constant 1 : i32
    %245 = tpu.memref_slice %arg26[%c1_i32_85] : memref<6x!tpu.dma_semaphore, #tpu.memory_space<semaphore_mem>> -> memref<1x!tpu.dma_semaphore, #tpu.memory_space<semaphore_mem>>
    %246 = tpu.memref_squeeze %245 : memref<1x!tpu.dma_semaphore, #tpu.memory_space<semaphore_mem>> -> memref<!tpu.dma_semaphore, #tpu.memory_space<semaphore_mem>>
    tpu.wait_dma2 semaphore(%246 : memref<!tpu.dma_semaphore, #tpu.memory_space<semaphore_mem>>) src(%arg6 : memref<128x512xbf16, #tpu.memory_space<any>>) dst(%arg21 : memref<128x512xbf16, #tpu.memory_space<vmem>>)
    %c2_i32_86 = arith.constant 2 : i32
    %247 = tpu.memref_slice %arg26[%c2_i32_86] : memref<6x!tpu.dma_semaphore, #tpu.memory_space<semaphore_mem>> -> memref<1x!tpu.dma_semaphore, #tpu.memory_space<semaphore_mem>>
    %248 = tpu.memref_squeeze %247 : memref<1x!tpu.dma_semaphore, #tpu.memory_space<semaphore_mem>> -> memref<!tpu.dma_semaphore, #tpu.memory_space<semaphore_mem>>
    tpu.wait_dma2 semaphore(%248 : memref<!tpu.dma_semaphore, #tpu.memory_space<semaphore_mem>>) src(%arg7 : memref<1x512xf32, #tpu.memory_space<any>>) dst(%arg22 : memref<1x512xf32, #tpu.memory_space<vmem>>)
    %c0_87 = arith.constant 0 : index
    %c0_88 = arith.constant 0 : index
    %249 = vector.load %arg20[%c0_87, %c0_88] : memref<128x512xbf16, #tpu.memory_space<vmem>>, vector<128x512xbf16>
    %c0_89 = arith.constant 0 : index
    %c0_90 = arith.constant 0 : index
    %250 = vector.load %arg22[%c0_89, %c0_90] : memref<1x512xf32, #tpu.memory_space<vmem>>, vector<1x512xf32>
    %cst_91 = arith.constant dense<0.000000e+00> : vector<64x512xf32>
    %251 = tpu.matmul %242, %249, %cst_91 {dimension_numbers = #tpu.dot_dimension_numbers<[1], [0], [0], [1], [0, 0, 1, 1], [], []>} : vector<64x128xbf16>, vector<128x512xbf16>, vector<64x512xf32> -> vector<64x512xf32>
    %252 = vector.broadcast %250 : vector<1x512xf32> to vector<64x512xf32>
    %253 = arith.addf %251, %252 : vector<64x512xf32>
    %254 = vector.shape_cast %253 : vector<64x512xf32> to vector<8x8x512xf32>
    %c0_92 = arith.constant 0 : index
    %c0_93 = arith.constant 0 : index
    %c0_94 = arith.constant 0 : index
    %255 = vector.load %arg19[%c0_92, %c0_93, %c0_94] : memref<8x8x512xf32, #tpu.memory_space<vmem>>, vector<8x8x512xf32>
    tpu.vector_store %arg19[%c0_92, %c0_93, %c0_94], %254 {strides = array<i32>} : memref<8x8x512xf32, #tpu.memory_space<vmem>>, vector<8x8x512xf32>,
    %cst_95 = arith.constant 0.000000e+00 : f32
    %256 = vector.broadcast %cst_95 : f32 to vector<8x128xf32>
    %cst_96 = arith.constant 0.000000e+00 : f32
    %257 = vector.broadcast %cst_96 : f32 to vector<8x128xf32>
    %c0_i32_97 = arith.constant 0 : i32
    %258 = arith.index_cast %c0_i32_97 : i32 to index
    %c0_98 = arith.constant 0 : index
    %c0_99 = arith.constant 0 : index
    %259 = vector.load %arg19[%258, %c0_98, %c0_99] : memref<8x8x512xf32, #tpu.memory_space<vmem>>, vector<1x8x512xf32>
    %260 = vector.shape_cast %259 : vector<1x8x512xf32> to vector<8x512xf32>
    %261 = arith.truncf %256 : vector<8x128xf32> to vector<8x128xbf16>
    %c0_100 = arith.constant 0 : index
    %c0_101 = arith.constant 0 : index
    %262 = vector.load %arg21[%c0_100, %c0_101] : memref<128x512xbf16, #tpu.memory_space<vmem>>, vector<128x512xbf16>
    %cst_102 = arith.constant dense<0.000000e+00> : vector<8x512xf32>
    %263 = tpu.matmul %261, %262, %cst_102 {dimension_numbers = #tpu.dot_dimension_numbers<[1], [0], [0], [1], [0, 0, 1, 1], [], []>} : vector<8x128xbf16>, vector<128x512xbf16>, vector<8x512xf32> -> vector<8x512xf32>
    %264 = arith.addf %260, %263 : vector<8x512xf32>
    %265 = vector.extract_strided_slice %264 {offsets = [0, 0], sizes = [8, 384], strides = [1, 1]} : vector<8x512xf32> to vector<8x384xf32>
    %266 = arith.negf %265 : vector<8x384xf32>
    %267 = math.exp %266 : vector<8x384xf32>
    %cst_103 = arith.constant 1.000000e+00 : f32
    %268 = vector.broadcast %cst_103 : f32 to vector<8x384xf32>
    %269 = arith.addf %268, %267 : vector<8x384xf32>
    %270 = arith.divf %268, %269 : vector<8x384xf32>
    %271 = vector.extract_strided_slice %264 {offsets = [0, 384], sizes = [8, 128], strides = [1, 1]} : vector<8x512xf32> to vector<8x128xf32>
    %272 = math.tanh %271 : vector<8x128xf32>
    %273 = vector.extract_strided_slice %270 {offsets = [0, 0], sizes = [8, 128], strides = [1, 1]} : vector<8x384xf32> to vector<8x128xf32>
    %274 = vector.extract_strided_slice %270 {offsets = [0, 128], sizes = [8, 128], strides = [1, 1]} : vector<8x384xf32> to vector<8x128xf32>
    %275 = vector.extract_strided_slice %270 {offsets = [0, 256], sizes = [8, 128], strides = [1, 1]} : vector<8x384xf32> to vector<8x128xf32>
    %276 = arith.mulf %274, %257 : vector<8x128xf32>
    %277 = arith.mulf %273, %272 : vector<8x128xf32>
    %278 = arith.addf %276, %277 : vector<8x128xf32>
    %279 = math.tanh %278 : vector<8x128xf32>
    %280 = arith.mulf %275, %279 : vector<8x128xf32>
    %281 = arith.index_cast %c0_i32_97 : i32 to index
    %c0_104 = arith.constant 0 : index
    %c0_105 = arith.constant 0 : index
    %282 = vector.load %arg18[%281, %c0_104, %c0_105] : memref<8x8x128xf32, #tpu.memory_space<vmem>>, vector<1x8x128xf32>
    %283 = vector.shape_cast %282 : vector<1x8x128xf32> to vector<8x128xf32>
    %284 = vector.shape_cast %280 : vector<8x128xf32> to vector<1x8x128xf32>
    tpu.vector_store %arg18[%281, %c0_104, %c0_105], %284 {strides = array<i32>} : memref<8x8x128xf32, #tpu.memory_space<vmem>>, vector<1x8x128xf32>,
    %c1_i32_106 = arith.constant 1 : i32
    %285 = arith.index_cast %c1_i32_106 : i32 to index
    %c0_107 = arith.constant 0 : index
    %c0_108 = arith.constant 0 : index
    %286 = vector.load %arg19[%285, %c0_107, %c0_108] : memref<8x8x512xf32, #tpu.memory_space<vmem>>, vector<1x8x512xf32>
    %287 = vector.shape_cast %286 : vector<1x8x512xf32> to vector<8x512xf32>
    %288 = arith.truncf %280 : vector<8x128xf32> to vector<8x128xbf16>
    %c0_109 = arith.constant 0 : index
    %c0_110 = arith.constant 0 : index
    %289 = vector.load %arg21[%c0_109, %c0_110] : memref<128x512xbf16, #tpu.memory_space<vmem>>, vector<128x512xbf16>
    %cst_111 = arith.constant dense<0.000000e+00> : vector<8x512xf32>
    %290 = tpu.matmul %288, %289, %cst_111 {dimension_numbers = #tpu.dot_dimension_numbers<[1], [0], [0], [1], [0, 0, 1, 1], [], []>} : vector<8x128xbf16>, vector<128x512xbf16>, vector<8x512xf32> -> vector<8x512xf32>
    %291 = arith.addf %287, %290 : vector<8x512xf32>
    %292 = vector.extract_strided_slice %291 {offsets = [0, 0], sizes = [8, 384], strides = [1, 1]} : vector<8x512xf32> to vector<8x384xf32>
    %293 = arith.negf %292 : vector<8x384xf32>
    %294 = math.exp %293 : vector<8x384xf32>
    %cst_112 = arith.constant 1.000000e+00 : f32
    %295 = vector.broadcast %cst_112 : f32 to vector<8x384xf32>
    %296 = arith.addf %295, %294 : vector<8x384xf32>
    %297 = arith.divf %295, %296 : vector<8x384xf32>
    %298 = vector.extract_strided_slice %291 {offsets = [0, 384], sizes = [8, 128], strides = [1, 1]} : vector<8x512xf32> to vector<8x128xf32>
    %299 = math.tanh %298 : vector<8x128xf32>
    %300 = vector.extract_strided_slice %297 {offsets = [0, 0], sizes = [8, 128], strides = [1, 1]} : vector<8x384xf32> to vector<8x128xf32>
    %301 = vector.extract_strided_slice %297 {offsets = [0, 128], sizes = [8, 128], strides = [1, 1]} : vector<8x384xf32> to vector<8x128xf32>
    %302 = vector.extract_strided_slice %297 {offsets = [0, 256], sizes = [8, 128], strides = [1, 1]} : vector<8x384xf32> to vector<8x128xf32>
    %303 = arith.mulf %301, %278 : vector<8x128xf32>
    %304 = arith.mulf %300, %299 : vector<8x128xf32>
    %305 = arith.addf %303, %304 : vector<8x128xf32>
    %306 = math.tanh %305 : vector<8x128xf32>
    %307 = arith.mulf %302, %306 : vector<8x128xf32>
    %308 = arith.index_cast %c1_i32_106 : i32 to index
    %c0_113 = arith.constant 0 : index
    %c0_114 = arith.constant 0 : index
    %309 = vector.load %arg18[%308, %c0_113, %c0_114] : memref<8x8x128xf32, #tpu.memory_space<vmem>>, vector<1x8x128xf32>
    %310 = vector.shape_cast %309 : vector<1x8x128xf32> to vector<8x128xf32>
    %311 = vector.shape_cast %307 : vector<8x128xf32> to vector<1x8x128xf32>
    tpu.vector_store %arg18[%308, %c0_113, %c0_114], %311 {strides = array<i32>} : memref<8x8x128xf32, #tpu.memory_space<vmem>>, vector<1x8x128xf32>,
    %c2_i32_115 = arith.constant 2 : i32
    %312 = arith.index_cast %c2_i32_115 : i32 to index
    %c0_116 = arith.constant 0 : index
    %c0_117 = arith.constant 0 : index
    %313 = vector.load %arg19[%312, %c0_116, %c0_117] : memref<8x8x512xf32, #tpu.memory_space<vmem>>, vector<1x8x512xf32>
    %314 = vector.shape_cast %313 : vector<1x8x512xf32> to vector<8x512xf32>
    %315 = arith.truncf %307 : vector<8x128xf32> to vector<8x128xbf16>
    %c0_118 = arith.constant 0 : index
    %c0_119 = arith.constant 0 : index
    %316 = vector.load %arg21[%c0_118, %c0_119] : memref<128x512xbf16, #tpu.memory_space<vmem>>, vector<128x512xbf16>
    %cst_120 = arith.constant dense<0.000000e+00> : vector<8x512xf32>
    %317 = tpu.matmul %315, %316, %cst_120 {dimension_numbers = #tpu.dot_dimension_numbers<[1], [0], [0], [1], [0, 0, 1, 1], [], []>} : vector<8x128xbf16>, vector<128x512xbf16>, vector<8x512xf32> -> vector<8x512xf32>
    %318 = arith.addf %314, %317 : vector<8x512xf32>
    %319 = vector.extract_strided_slice %318 {offsets = [0, 0], sizes = [8, 384], strides = [1, 1]} : vector<8x512xf32> to vector<8x384xf32>
    %320 = arith.negf %319 : vector<8x384xf32>
    %321 = math.exp %320 : vector<8x384xf32>
    %cst_121 = arith.constant 1.000000e+00 : f32
    %322 = vector.broadcast %cst_121 : f32 to vector<8x384xf32>
    %323 = arith.addf %322, %321 : vector<8x384xf32>
    %324 = arith.divf %322, %323 : vector<8x384xf32>
    %325 = vector.extract_strided_slice %318 {offsets = [0, 384], sizes = [8, 128], strides = [1, 1]} : vector<8x512xf32> to vector<8x128xf32>
    %326 = math.tanh %325 : vector<8x128xf32>
    %327 = vector.extract_strided_slice %324 {offsets = [0, 0], sizes = [8, 128], strides = [1, 1]} : vector<8x384xf32> to vector<8x128xf32>
    %328 = vector.extract_strided_slice %324 {offsets = [0, 128], sizes = [8, 128], strides = [1, 1]} : vector<8x384xf32> to vector<8x128xf32>
    %329 = vector.extract_strided_slice %324 {offsets = [0, 256], sizes = [8, 128], strides = [1, 1]} : vector<8x384xf32> to vector<8x128xf32>
    %330 = arith.mulf %328, %305 : vector<8x128xf32>
    %331 = arith.mulf %327, %326 : vector<8x128xf32>
    %332 = arith.addf %330, %331 : vector<8x128xf32>
    %333 = math.tanh %332 : vector<8x128xf32>
    %334 = arith.mulf %329, %333 : vector<8x128xf32>
    %335 = arith.index_cast %c2_i32_115 : i32 to index
    %c0_122 = arith.constant 0 : index
    %c0_123 = arith.constant 0 : index
    %336 = vector.load %arg18[%335, %c0_122, %c0_123] : memref<8x8x128xf32, #tpu.memory_space<vmem>>, vector<1x8x128xf32>
    %337 = vector.shape_cast %336 : vector<1x8x128xf32> to vector<8x128xf32>
    %338 = vector.shape_cast %334 : vector<8x128xf32> to vector<1x8x128xf32>
    tpu.vector_store %arg18[%335, %c0_122, %c0_123], %338 {strides = array<i32>} : memref<8x8x128xf32, #tpu.memory_space<vmem>>, vector<1x8x128xf32>,
    %c3_i32_124 = arith.constant 3 : i32
    %339 = arith.index_cast %c3_i32_124 : i32 to index
    %c0_125 = arith.constant 0 : index
    %c0_126 = arith.constant 0 : index
    %340 = vector.load %arg19[%339, %c0_125, %c0_126] : memref<8x8x512xf32, #tpu.memory_space<vmem>>, vector<1x8x512xf32>
    %341 = vector.shape_cast %340 : vector<1x8x512xf32> to vector<8x512xf32>
    %342 = arith.truncf %334 : vector<8x128xf32> to vector<8x128xbf16>
    %c0_127 = arith.constant 0 : index
    %c0_128 = arith.constant 0 : index
    %343 = vector.load %arg21[%c0_127, %c0_128] : memref<128x512xbf16, #tpu.memory_space<vmem>>, vector<128x512xbf16>
    %cst_129 = arith.constant dense<0.000000e+00> : vector<8x512xf32>
    %344 = tpu.matmul %342, %343, %cst_129 {dimension_numbers = #tpu.dot_dimension_numbers<[1], [0], [0], [1], [0, 0, 1, 1], [], []>} : vector<8x128xbf16>, vector<128x512xbf16>, vector<8x512xf32> -> vector<8x512xf32>
    %345 = arith.addf %341, %344 : vector<8x512xf32>
    %346 = vector.extract_strided_slice %345 {offsets = [0, 0], sizes = [8, 384], strides = [1, 1]} : vector<8x512xf32> to vector<8x384xf32>
    %347 = arith.negf %346 : vector<8x384xf32>
    %348 = math.exp %347 : vector<8x384xf32>
    %cst_130 = arith.constant 1.000000e+00 : f32
    %349 = vector.broadcast %cst_130 : f32 to vector<8x384xf32>
    %350 = arith.addf %349, %348 : vector<8x384xf32>
    %351 = arith.divf %349, %350 : vector<8x384xf32>
    %352 = vector.extract_strided_slice %345 {offsets = [0, 384], sizes = [8, 128], strides = [1, 1]} : vector<8x512xf32> to vector<8x128xf32>
    %353 = math.tanh %352 : vector<8x128xf32>
    %354 = vector.extract_strided_slice %351 {offsets = [0, 0], sizes = [8, 128], strides = [1, 1]} : vector<8x384xf32> to vector<8x128xf32>
    %355 = vector.extract_strided_slice %351 {offsets = [0, 128], sizes = [8, 128], strides = [1, 1]} : vector<8x384xf32> to vector<8x128xf32>
    %356 = vector.extract_strided_slice %351 {offsets = [0, 256], sizes = [8, 128], strides = [1, 1]} : vector<8x384xf32> to vector<8x128xf32>
    %357 = arith.mulf %355, %332 : vector<8x128xf32>
    %358 = arith.mulf %354, %353 : vector<8x128xf32>
    %359 = arith.addf %357, %358 : vector<8x128xf32>
    %360 = math.tanh %359 : vector<8x128xf32>
    %361 = arith.mulf %356, %360 : vector<8x128xf32>
    %362 = arith.index_cast %c3_i32_124 : i32 to index
    %c0_131 = arith.constant 0 : index
    %c0_132 = arith.constant 0 : index
    %363 = vector.load %arg18[%362, %c0_131, %c0_132] : memref<8x8x128xf32, #tpu.memory_space<vmem>>, vector<1x8x128xf32>
    %364 = vector.shape_cast %363 : vector<1x8x128xf32> to vector<8x128xf32>
    %365 = vector.shape_cast %361 : vector<8x128xf32> to vector<1x8x128xf32>
    tpu.vector_store %arg18[%362, %c0_131, %c0_132], %365 {strides = array<i32>} : memref<8x8x128xf32, #tpu.memory_space<vmem>>, vector<1x8x128xf32>,
    %c4_i32_133 = arith.constant 4 : i32
    %366 = arith.index_cast %c4_i32_133 : i32 to index
    %c0_134 = arith.constant 0 : index
    %c0_135 = arith.constant 0 : index
    %367 = vector.load %arg19[%366, %c0_134, %c0_135] : memref<8x8x512xf32, #tpu.memory_space<vmem>>, vector<1x8x512xf32>
    %368 = vector.shape_cast %367 : vector<1x8x512xf32> to vector<8x512xf32>
    %369 = arith.truncf %361 : vector<8x128xf32> to vector<8x128xbf16>
    %c0_136 = arith.constant 0 : index
    %c0_137 = arith.constant 0 : index
    %370 = vector.load %arg21[%c0_136, %c0_137] : memref<128x512xbf16, #tpu.memory_space<vmem>>, vector<128x512xbf16>
    %cst_138 = arith.constant dense<0.000000e+00> : vector<8x512xf32>
    %371 = tpu.matmul %369, %370, %cst_138 {dimension_numbers = #tpu.dot_dimension_numbers<[1], [0], [0], [1], [0, 0, 1, 1], [], []>} : vector<8x128xbf16>, vector<128x512xbf16>, vector<8x512xf32> -> vector<8x512xf32>
    %372 = arith.addf %368, %371 : vector<8x512xf32>
    %373 = vector.extract_strided_slice %372 {offsets = [0, 0], sizes = [8, 384], strides = [1, 1]} : vector<8x512xf32> to vector<8x384xf32>
    %374 = arith.negf %373 : vector<8x384xf32>
    %375 = math.exp %374 : vector<8x384xf32>
    %cst_139 = arith.constant 1.000000e+00 : f32
    %376 = vector.broadcast %cst_139 : f32 to vector<8x384xf32>
    %377 = arith.addf %376, %375 : vector<8x384xf32>
    %378 = arith.divf %376, %377 : vector<8x384xf32>
    %379 = vector.extract_strided_slice %372 {offsets = [0, 384], sizes = [8, 128], strides = [1, 1]} : vector<8x512xf32> to vector<8x128xf32>
    %380 = math.tanh %379 : vector<8x128xf32>
    %381 = vector.extract_strided_slice %378 {offsets = [0, 0], sizes = [8, 128], strides = [1, 1]} : vector<8x384xf32> to vector<8x128xf32>
    %382 = vector.extract_strided_slice %378 {offsets = [0, 128], sizes = [8, 128], strides = [1, 1]} : vector<8x384xf32> to vector<8x128xf32>
    %383 = vector.extract_strided_slice %378 {offsets = [0, 256], sizes = [8, 128], strides = [1, 1]} : vector<8x384xf32> to vector<8x128xf32>
    %384 = arith.mulf %382, %359 : vector<8x128xf32>
    %385 = arith.mulf %381, %380 : vector<8x128xf32>
    %386 = arith.addf %384, %385 : vector<8x128xf32>
    %387 = math.tanh %386 : vector<8x128xf32>
    %388 = arith.mulf %383, %387 : vector<8x128xf32>
    %389 = arith.index_cast %c4_i32_133 : i32 to index
    %c0_140 = arith.constant 0 : index
    %c0_141 = arith.constant 0 : index
    %390 = vector.load %arg18[%389, %c0_140, %c0_141] : memref<8x8x128xf32, #tpu.memory_space<vmem>>, vector<1x8x128xf32>
    %391 = vector.shape_cast %390 : vector<1x8x128xf32> to vector<8x128xf32>
    %392 = vector.shape_cast %388 : vector<8x128xf32> to vector<1x8x128xf32>
    tpu.vector_store %arg18[%389, %c0_140, %c0_141], %392 {strides = array<i32>} : memref<8x8x128xf32, #tpu.memory_space<vmem>>, vector<1x8x128xf32>,
    %c5_i32_142 = arith.constant 5 : i32
    %393 = arith.index_cast %c5_i32_142 : i32 to index
    %c0_143 = arith.constant 0 : index
    %c0_144 = arith.constant 0 : index
    %394 = vector.load %arg19[%393, %c0_143, %c0_144] : memref<8x8x512xf32, #tpu.memory_space<vmem>>, vector<1x8x512xf32>
    %395 = vector.shape_cast %394 : vector<1x8x512xf32> to vector<8x512xf32>
    %396 = arith.truncf %388 : vector<8x128xf32> to vector<8x128xbf16>
    %c0_145 = arith.constant 0 : index
    %c0_146 = arith.constant 0 : index
    %397 = vector.load %arg21[%c0_145, %c0_146] : memref<128x512xbf16, #tpu.memory_space<vmem>>, vector<128x512xbf16>
    %cst_147 = arith.constant dense<0.000000e+00> : vector<8x512xf32>
    %398 = tpu.matmul %396, %397, %cst_147 {dimension_numbers = #tpu.dot_dimension_numbers<[1], [0], [0], [1], [0, 0, 1, 1], [], []>} : vector<8x128xbf16>, vector<128x512xbf16>, vector<8x512xf32> -> vector<8x512xf32>
    %399 = arith.addf %395, %398 : vector<8x512xf32>
    %400 = vector.extract_strided_slice %399 {offsets = [0, 0], sizes = [8, 384], strides = [1, 1]} : vector<8x512xf32> to vector<8x384xf32>
    %401 = arith.negf %400 : vector<8x384xf32>
    %402 = math.exp %401 : vector<8x384xf32>
    %cst_148 = arith.constant 1.000000e+00 : f32
    %403 = vector.broadcast %cst_148 : f32 to vector<8x384xf32>
    %404 = arith.addf %403, %402 : vector<8x384xf32>
    %405 = arith.divf %403, %404 : vector<8x384xf32>
    %406 = vector.extract_strided_slice %399 {offsets = [0, 384], sizes = [8, 128], strides = [1, 1]} : vector<8x512xf32> to vector<8x128xf32>
    %407 = math.tanh %406 : vector<8x128xf32>
    %408 = vector.extract_strided_slice %405 {offsets = [0, 0], sizes = [8, 128], strides = [1, 1]} : vector<8x384xf32> to vector<8x128xf32>
    %409 = vector.extract_strided_slice %405 {offsets = [0, 128], sizes = [8, 128], strides = [1, 1]} : vector<8x384xf32> to vector<8x128xf32>
    %410 = vector.extract_strided_slice %405 {offsets = [0, 256], sizes = [8, 128], strides = [1, 1]} : vector<8x384xf32> to vector<8x128xf32>
    %411 = arith.mulf %409, %386 : vector<8x128xf32>
    %412 = arith.mulf %408, %407 : vector<8x128xf32>
    %413 = arith.addf %411, %412 : vector<8x128xf32>
    %414 = math.tanh %413 : vector<8x128xf32>
    %415 = arith.mulf %410, %414 : vector<8x128xf32>
    %416 = arith.index_cast %c5_i32_142 : i32 to index
    %c0_149 = arith.constant 0 : index
    %c0_150 = arith.constant 0 : index
    %417 = vector.load %arg18[%416, %c0_149, %c0_150] : memref<8x8x128xf32, #tpu.memory_space<vmem>>, vector<1x8x128xf32>
    %418 = vector.shape_cast %417 : vector<1x8x128xf32> to vector<8x128xf32>
    %419 = vector.shape_cast %415 : vector<8x128xf32> to vector<1x8x128xf32>
    tpu.vector_store %arg18[%416, %c0_149, %c0_150], %419 {strides = array<i32>} : memref<8x8x128xf32, #tpu.memory_space<vmem>>, vector<1x8x128xf32>,
    %c6_i32_151 = arith.constant 6 : i32
    %420 = arith.index_cast %c6_i32_151 : i32 to index
    %c0_152 = arith.constant 0 : index
    %c0_153 = arith.constant 0 : index
    %421 = vector.load %arg19[%420, %c0_152, %c0_153] : memref<8x8x512xf32, #tpu.memory_space<vmem>>, vector<1x8x512xf32>
    %422 = vector.shape_cast %421 : vector<1x8x512xf32> to vector<8x512xf32>
    %423 = arith.truncf %415 : vector<8x128xf32> to vector<8x128xbf16>
    %c0_154 = arith.constant 0 : index
    %c0_155 = arith.constant 0 : index
    %424 = vector.load %arg21[%c0_154, %c0_155] : memref<128x512xbf16, #tpu.memory_space<vmem>>, vector<128x512xbf16>
    %cst_156 = arith.constant dense<0.000000e+00> : vector<8x512xf32>
    %425 = tpu.matmul %423, %424, %cst_156 {dimension_numbers = #tpu.dot_dimension_numbers<[1], [0], [0], [1], [0, 0, 1, 1], [], []>} : vector<8x128xbf16>, vector<128x512xbf16>, vector<8x512xf32> -> vector<8x512xf32>
    %426 = arith.addf %422, %425 : vector<8x512xf32>
    %427 = vector.extract_strided_slice %426 {offsets = [0, 0], sizes = [8, 384], strides = [1, 1]} : vector<8x512xf32> to vector<8x384xf32>
    %428 = arith.negf %427 : vector<8x384xf32>
    %429 = math.exp %428 : vector<8x384xf32>
    %cst_157 = arith.constant 1.000000e+00 : f32
    %430 = vector.broadcast %cst_157 : f32 to vector<8x384xf32>
    %431 = arith.addf %430, %429 : vector<8x384xf32>
    %432 = arith.divf %430, %431 : vector<8x384xf32>
    %433 = vector.extract_strided_slice %426 {offsets = [0, 384], sizes = [8, 128], strides = [1, 1]} : vector<8x512xf32> to vector<8x128xf32>
    %434 = math.tanh %433 : vector<8x128xf32>
    %435 = vector.extract_strided_slice %432 {offsets = [0, 0], sizes = [8, 128], strides = [1, 1]} : vector<8x384xf32> to vector<8x128xf32>
    %436 = vector.extract_strided_slice %432 {offsets = [0, 128], sizes = [8, 128], strides = [1, 1]} : vector<8x384xf32> to vector<8x128xf32>
    %437 = vector.extract_strided_slice %432 {offsets = [0, 256], sizes = [8, 128], strides = [1, 1]} : vector<8x384xf32> to vector<8x128xf32>
    %438 = arith.mulf %436, %413 : vector<8x128xf32>
    %439 = arith.mulf %435, %434 : vector<8x128xf32>
    %440 = arith.addf %438, %439 : vector<8x128xf32>
    %441 = math.tanh %440 : vector<8x128xf32>
    %442 = arith.mulf %437, %441 : vector<8x128xf32>
    %443 = arith.index_cast %c6_i32_151 : i32 to index
    %c0_158 = arith.constant 0 : index
    %c0_159 = arith.constant 0 : index
    %444 = vector.load %arg18[%443, %c0_158, %c0_159] : memref<8x8x128xf32, #tpu.memory_space<vmem>>, vector<1x8x128xf32>
    %445 = vector.shape_cast %444 : vector<1x8x128xf32> to vector<8x128xf32>
    %446 = vector.shape_cast %442 : vector<8x128xf32> to vector<1x8x128xf32>
    tpu.vector_store %arg18[%443, %c0_158, %c0_159], %446 {strides = array<i32>} : memref<8x8x128xf32, #tpu.memory_space<vmem>>, vector<1x8x128xf32>,
    %c7_i32_160 = arith.constant 7 : i32
    %447 = arith.index_cast %c7_i32_160 : i32 to index
    %c0_161 = arith.constant 0 : index
    %c0_162 = arith.constant 0 : index
    %448 = vector.load %arg19[%447, %c0_161, %c0_162] : memref<8x8x512xf32, #tpu.memory_space<vmem>>, vector<1x8x512xf32>
    %449 = vector.shape_cast %448 : vector<1x8x512xf32> to vector<8x512xf32>
    %450 = arith.truncf %442 : vector<8x128xf32> to vector<8x128xbf16>
    %c0_163 = arith.constant 0 : index
    %c0_164 = arith.constant 0 : index
    %451 = vector.load %arg21[%c0_163, %c0_164] : memref<128x512xbf16, #tpu.memory_space<vmem>>, vector<128x512xbf16>
    %cst_165 = arith.constant dense<0.000000e+00> : vector<8x512xf32>
    %452 = tpu.matmul %450, %451, %cst_165 {dimension_numbers = #tpu.dot_dimension_numbers<[1], [0], [0], [1], [0, 0, 1, 1], [], []>} : vector<8x128xbf16>, vector<128x512xbf16>, vector<8x512xf32> -> vector<8x512xf32>
    %453 = arith.addf %449, %452 : vector<8x512xf32>
    %454 = vector.extract_strided_slice %453 {offsets = [0, 0], sizes = [8, 384], strides = [1, 1]} : vector<8x512xf32> to vector<8x384xf32>
    %455 = arith.negf %454 : vector<8x384xf32>
    %456 = math.exp %455 : vector<8x384xf32>
    %cst_166 = arith.constant 1.000000e+00 : f32
    %457 = vector.broadcast %cst_166 : f32 to vector<8x384xf32>
    %458 = arith.addf %457, %456 : vector<8x384xf32>
    %459 = arith.divf %457, %458 : vector<8x384xf32>
    %460 = vector.extract_strided_slice %453 {offsets = [0, 384], sizes = [8, 128], strides = [1, 1]} : vector<8x512xf32> to vector<8x128xf32>
    %461 = math.tanh %460 : vector<8x128xf32>
    %462 = vector.extract_strided_slice %459 {offsets = [0, 0], sizes = [8, 128], strides = [1, 1]} : vector<8x384xf32> to vector<8x128xf32>
    %463 = vector.extract_strided_slice %459 {offsets = [0, 128], sizes = [8, 128], strides = [1, 1]} : vector<8x384xf32> to vector<8x128xf32>
    %464 = vector.extract_strided_slice %459 {offsets = [0, 256], sizes = [8, 128], strides = [1, 1]} : vector<8x384xf32> to vector<8x128xf32>
    %465 = arith.mulf %463, %440 : vector<8x128xf32>
    %466 = arith.mulf %462, %461 : vector<8x128xf32>
    %467 = arith.addf %465, %466 : vector<8x128xf32>
    %468 = math.tanh %467 : vector<8x128xf32>
    %469 = arith.mulf %464, %468 : vector<8x128xf32>
    %470 = arith.index_cast %c7_i32_160 : i32 to index
    %c0_167 = arith.constant 0 : index
    %c0_168 = arith.constant 0 : index
    %471 = vector.load %arg18[%470, %c0_167, %c0_168] : memref<8x8x128xf32, #tpu.memory_space<vmem>>, vector<1x8x128xf32>
    %472 = vector.shape_cast %471 : vector<1x8x128xf32> to vector<8x128xf32>
    %473 = vector.shape_cast %469 : vector<8x128xf32> to vector<1x8x128xf32>
    tpu.vector_store %arg18[%470, %c0_167, %c0_168], %473 {strides = array<i32>} : memref<8x8x128xf32, #tpu.memory_space<vmem>>, vector<1x8x128xf32>,
    %c8_i32_169 = arith.constant 8 : i32
    %c0_170 = arith.constant 0 : index
    %c0_171 = arith.constant 0 : index
    %c0_172 = arith.constant 0 : index
    %474 = vector.load %arg18[%c0_170, %c0_171, %c0_172] : memref<8x8x128xf32, #tpu.memory_space<vmem>>, vector<8x8x128xf32>
    %475 = vector.shape_cast %474 : vector<8x8x128xf32> to vector<64x128xf32>
    %476 = arith.truncf %475 : vector<64x128xf32> to vector<64x128xbf16>
    %c3_i32_173 = arith.constant 3 : i32
    %477 = tpu.memref_slice %arg26[%c3_i32_173] : memref<6x!tpu.dma_semaphore, #tpu.memory_space<semaphore_mem>> -> memref<1x!tpu.dma_semaphore, #tpu.memory_space<semaphore_mem>>
    %478 = tpu.memref_squeeze %477 : memref<1x!tpu.dma_semaphore, #tpu.memory_space<semaphore_mem>> -> memref<!tpu.dma_semaphore, #tpu.memory_space<semaphore_mem>>
    tpu.wait_dma2 semaphore(%478 : memref<!tpu.dma_semaphore, #tpu.memory_space<semaphore_mem>>) src(%arg8 : memref<128x512xbf16, #tpu.memory_space<any>>) dst(%arg23 : memref<128x512xbf16, #tpu.memory_space<vmem>>)
    %c4_i32_174 = arith.constant 4 : i32
    %479 = tpu.memref_slice %arg26[%c4_i32_174] : memref<6x!tpu.dma_semaphore, #tpu.memory_space<semaphore_mem>> -> memref<1x!tpu.dma_semaphore, #tpu.memory_space<semaphore_mem>>
    %480 = tpu.memref_squeeze %479 : memref<1x!tpu.dma_semaphore, #tpu.memory_space<semaphore_mem>> -> memref<!tpu.dma_semaphore, #tpu.memory_space<semaphore_mem>>
    tpu.wait_dma2 semaphore(%480 : memref<!tpu.dma_semaphore, #tpu.memory_space<semaphore_mem>>) src(%arg9 : memref<128x512xbf16, #tpu.memory_space<any>>) dst(%arg24 : memref<128x512xbf16, #tpu.memory_space<vmem>>)
    %c5_i32_175 = arith.constant 5 : i32
    %481 = tpu.memref_slice %arg26[%c5_i32_175] : memref<6x!tpu.dma_semaphore, #tpu.memory_space<semaphore_mem>> -> memref<1x!tpu.dma_semaphore, #tpu.memory_space<semaphore_mem>>
    %482 = tpu.memref_squeeze %481 : memref<1x!tpu.dma_semaphore, #tpu.memory_space<semaphore_mem>> -> memref<!tpu.dma_semaphore, #tpu.memory_space<semaphore_mem>>
    tpu.wait_dma2 semaphore(%482 : memref<!tpu.dma_semaphore, #tpu.memory_space<semaphore_mem>>) src(%arg10 : memref<1x512xf32, #tpu.memory_space<any>>) dst(%arg25 : memref<1x512xf32, #tpu.memory_space<vmem>>)
    %c0_176 = arith.constant 0 : index
    %c0_177 = arith.constant 0 : index
    %483 = vector.load %arg23[%c0_176, %c0_177] : memref<128x512xbf16, #tpu.memory_space<vmem>>, vector<128x512xbf16>
    %c0_178 = arith.constant 0 : index
    %c0_179 = arith.constant 0 : index
    %484 = vector.load %arg25[%c0_178, %c0_179] : memref<1x512xf32, #tpu.memory_space<vmem>>, vector<1x512xf32>
    %cst_180 = arith.constant dense<0.000000e+00> : vector<64x512xf32>
    %485 = tpu.matmul %476, %483, %cst_180 {dimension_numbers = #tpu.dot_dimension_numbers<[1], [0], [0], [1], [0, 0, 1, 1], [], []>} : vector<64x128xbf16>, vector<128x512xbf16>, vector<64x512xf32> -> vector<64x512xf32>
    %486 = vector.broadcast %484 : vector<1x512xf32> to vector<64x512xf32>
    %487 = arith.addf %485, %486 : vector<64x512xf32>
    %488 = vector.shape_cast %487 : vector<64x512xf32> to vector<8x8x512xf32>
    %c0_181 = arith.constant 0 : index
    %c0_182 = arith.constant 0 : index
    %c0_183 = arith.constant 0 : index
    %489 = vector.load %arg19[%c0_181, %c0_182, %c0_183] : memref<8x8x512xf32, #tpu.memory_space<vmem>>, vector<8x8x512xf32>
    tpu.vector_store %arg19[%c0_181, %c0_182, %c0_183], %488 {strides = array<i32>} : memref<8x8x512xf32, #tpu.memory_space<vmem>>, vector<8x8x512xf32>,
    %cst_184 = arith.constant 0.000000e+00 : f32
    %490 = vector.broadcast %cst_184 : f32 to vector<8x128xf32>
    %cst_185 = arith.constant 0.000000e+00 : f32
    %491 = vector.broadcast %cst_185 : f32 to vector<8x128xf32>
    %c0_i32_186 = arith.constant 0 : i32
    %492 = arith.index_cast %c0_i32_186 : i32 to index
    %c0_187 = arith.constant 0 : index
    %c0_188 = arith.constant 0 : index
    %493 = vector.load %arg19[%492, %c0_187, %c0_188] : memref<8x8x512xf32, #tpu.memory_space<vmem>>, vector<1x8x512xf32>
    %494 = vector.shape_cast %493 : vector<1x8x512xf32> to vector<8x512xf32>
    %495 = arith.truncf %490 : vector<8x128xf32> to vector<8x128xbf16>
    %c0_189 = arith.constant 0 : index
    %c0_190 = arith.constant 0 : index
    %496 = vector.load %arg24[%c0_189, %c0_190] : memref<128x512xbf16, #tpu.memory_space<vmem>>, vector<128x512xbf16>
    %cst_191 = arith.constant dense<0.000000e+00> : vector<8x512xf32>
    %497 = tpu.matmul %495, %496, %cst_191 {dimension_numbers = #tpu.dot_dimension_numbers<[1], [0], [0], [1], [0, 0, 1, 1], [], []>} : vector<8x128xbf16>, vector<128x512xbf16>, vector<8x512xf32> -> vector<8x512xf32>
    %498 = arith.addf %494, %497 : vector<8x512xf32>
    %499 = vector.extract_strided_slice %498 {offsets = [0, 0], sizes = [8, 384], strides = [1, 1]} : vector<8x512xf32> to vector<8x384xf32>
    %500 = arith.negf %499 : vector<8x384xf32>
    %501 = math.exp %500 : vector<8x384xf32>
    %cst_192 = arith.constant 1.000000e+00 : f32
    %502 = vector.broadcast %cst_192 : f32 to vector<8x384xf32>
    %503 = arith.addf %502, %501 : vector<8x384xf32>
    %504 = arith.divf %502, %503 : vector<8x384xf32>
    %505 = vector.extract_strided_slice %498 {offsets = [0, 384], sizes = [8, 128], strides = [1, 1]} : vector<8x512xf32> to vector<8x128xf32>
    %506 = math.tanh %505 : vector<8x128xf32>
    %507 = vector.extract_strided_slice %504 {offsets = [0, 0], sizes = [8, 128], strides = [1, 1]} : vector<8x384xf32> to vector<8x128xf32>
    %508 = vector.extract_strided_slice %504 {offsets = [0, 128], sizes = [8, 128], strides = [1, 1]} : vector<8x384xf32> to vector<8x128xf32>
    %509 = vector.extract_strided_slice %504 {offsets = [0, 256], sizes = [8, 128], strides = [1, 1]} : vector<8x384xf32> to vector<8x128xf32>
    %510 = arith.mulf %508, %491 : vector<8x128xf32>
    %511 = arith.mulf %507, %506 : vector<8x128xf32>
    %512 = arith.addf %510, %511 : vector<8x128xf32>
    %513 = math.tanh %512 : vector<8x128xf32>
    %514 = arith.mulf %509, %513 : vector<8x128xf32>
    %c1_i32_193 = arith.constant 1 : i32
    %515 = arith.index_cast %c1_i32_193 : i32 to index
    %c0_194 = arith.constant 0 : index
    %c0_195 = arith.constant 0 : index
    %516 = vector.load %arg19[%515, %c0_194, %c0_195] : memref<8x8x512xf32, #tpu.memory_space<vmem>>, vector<1x8x512xf32>
    %517 = vector.shape_cast %516 : vector<1x8x512xf32> to vector<8x512xf32>
    %518 = arith.truncf %514 : vector<8x128xf32> to vector<8x128xbf16>
    %c0_196 = arith.constant 0 : index
    %c0_197 = arith.constant 0 : index
    %519 = vector.load %arg24[%c0_196, %c0_197] : memref<128x512xbf16, #tpu.memory_space<vmem>>, vector<128x512xbf16>
    %cst_198 = arith.constant dense<0.000000e+00> : vector<8x512xf32>
    %520 = tpu.matmul %518, %519, %cst_198 {dimension_numbers = #tpu.dot_dimension_numbers<[1], [0], [0], [1], [0, 0, 1, 1], [], []>} : vector<8x128xbf16>, vector<128x512xbf16>, vector<8x512xf32> -> vector<8x512xf32>
    %521 = arith.addf %517, %520 : vector<8x512xf32>
    %522 = vector.extract_strided_slice %521 {offsets = [0, 0], sizes = [8, 384], strides = [1, 1]} : vector<8x512xf32> to vector<8x384xf32>
    %523 = arith.negf %522 : vector<8x384xf32>
    %524 = math.exp %523 : vector<8x384xf32>
    %cst_199 = arith.constant 1.000000e+00 : f32
    %525 = vector.broadcast %cst_199 : f32 to vector<8x384xf32>
    %526 = arith.addf %525, %524 : vector<8x384xf32>
    %527 = arith.divf %525, %526 : vector<8x384xf32>
    %528 = vector.extract_strided_slice %521 {offsets = [0, 384], sizes = [8, 128], strides = [1, 1]} : vector<8x512xf32> to vector<8x128xf32>
    %529 = math.tanh %528 : vector<8x128xf32>
    %530 = vector.extract_strided_slice %527 {offsets = [0, 0], sizes = [8, 128], strides = [1, 1]} : vector<8x384xf32> to vector<8x128xf32>
    %531 = vector.extract_strided_slice %527 {offsets = [0, 128], sizes = [8, 128], strides = [1, 1]} : vector<8x384xf32> to vector<8x128xf32>
    %532 = vector.extract_strided_slice %527 {offsets = [0, 256], sizes = [8, 128], strides = [1, 1]} : vector<8x384xf32> to vector<8x128xf32>
    %533 = arith.mulf %531, %512 : vector<8x128xf32>
    %534 = arith.mulf %530, %529 : vector<8x128xf32>
    %535 = arith.addf %533, %534 : vector<8x128xf32>
    %536 = math.tanh %535 : vector<8x128xf32>
    %537 = arith.mulf %532, %536 : vector<8x128xf32>
    %c2_i32_200 = arith.constant 2 : i32
    %538 = arith.index_cast %c2_i32_200 : i32 to index
    %c0_201 = arith.constant 0 : index
    %c0_202 = arith.constant 0 : index
    %539 = vector.load %arg19[%538, %c0_201, %c0_202] : memref<8x8x512xf32, #tpu.memory_space<vmem>>, vector<1x8x512xf32>
    %540 = vector.shape_cast %539 : vector<1x8x512xf32> to vector<8x512xf32>
    %541 = arith.truncf %537 : vector<8x128xf32> to vector<8x128xbf16>
    %c0_203 = arith.constant 0 : index
    %c0_204 = arith.constant 0 : index
    %542 = vector.load %arg24[%c0_203, %c0_204] : memref<128x512xbf16, #tpu.memory_space<vmem>>, vector<128x512xbf16>
    %cst_205 = arith.constant dense<0.000000e+00> : vector<8x512xf32>
    %543 = tpu.matmul %541, %542, %cst_205 {dimension_numbers = #tpu.dot_dimension_numbers<[1], [0], [0], [1], [0, 0, 1, 1], [], []>} : vector<8x128xbf16>, vector<128x512xbf16>, vector<8x512xf32> -> vector<8x512xf32>
    %544 = arith.addf %540, %543 : vector<8x512xf32>
    %545 = vector.extract_strided_slice %544 {offsets = [0, 0], sizes = [8, 384], strides = [1, 1]} : vector<8x512xf32> to vector<8x384xf32>
    %546 = arith.negf %545 : vector<8x384xf32>
    %547 = math.exp %546 : vector<8x384xf32>
    %cst_206 = arith.constant 1.000000e+00 : f32
    %548 = vector.broadcast %cst_206 : f32 to vector<8x384xf32>
    %549 = arith.addf %548, %547 : vector<8x384xf32>
    %550 = arith.divf %548, %549 : vector<8x384xf32>
    %551 = vector.extract_strided_slice %544 {offsets = [0, 384], sizes = [8, 128], strides = [1, 1]} : vector<8x512xf32> to vector<8x128xf32>
    %552 = math.tanh %551 : vector<8x128xf32>
    %553 = vector.extract_strided_slice %550 {offsets = [0, 0], sizes = [8, 128], strides = [1, 1]} : vector<8x384xf32> to vector<8x128xf32>
    %554 = vector.extract_strided_slice %550 {offsets = [0, 128], sizes = [8, 128], strides = [1, 1]} : vector<8x384xf32> to vector<8x128xf32>
    %555 = vector.extract_strided_slice %550 {offsets = [0, 256], sizes = [8, 128], strides = [1, 1]} : vector<8x384xf32> to vector<8x128xf32>
    %556 = arith.mulf %554, %535 : vector<8x128xf32>
    %557 = arith.mulf %553, %552 : vector<8x128xf32>
    %558 = arith.addf %556, %557 : vector<8x128xf32>
    %559 = math.tanh %558 : vector<8x128xf32>
    %560 = arith.mulf %555, %559 : vector<8x128xf32>
    %c3_i32_207 = arith.constant 3 : i32
    %561 = arith.index_cast %c3_i32_207 : i32 to index
    %c0_208 = arith.constant 0 : index
    %c0_209 = arith.constant 0 : index
    %562 = vector.load %arg19[%561, %c0_208, %c0_209] : memref<8x8x512xf32, #tpu.memory_space<vmem>>, vector<1x8x512xf32>
    %563 = vector.shape_cast %562 : vector<1x8x512xf32> to vector<8x512xf32>
    %564 = arith.truncf %560 : vector<8x128xf32> to vector<8x128xbf16>
    %c0_210 = arith.constant 0 : index
    %c0_211 = arith.constant 0 : index
    %565 = vector.load %arg24[%c0_210, %c0_211] : memref<128x512xbf16, #tpu.memory_space<vmem>>, vector<128x512xbf16>
    %cst_212 = arith.constant dense<0.000000e+00> : vector<8x512xf32>
    %566 = tpu.matmul %564, %565, %cst_212 {dimension_numbers = #tpu.dot_dimension_numbers<[1], [0], [0], [1], [0, 0, 1, 1], [], []>} : vector<8x128xbf16>, vector<128x512xbf16>, vector<8x512xf32> -> vector<8x512xf32>
    %567 = arith.addf %563, %566 : vector<8x512xf32>
    %568 = vector.extract_strided_slice %567 {offsets = [0, 0], sizes = [8, 384], strides = [1, 1]} : vector<8x512xf32> to vector<8x384xf32>
    %569 = arith.negf %568 : vector<8x384xf32>
    %570 = math.exp %569 : vector<8x384xf32>
    %cst_213 = arith.constant 1.000000e+00 : f32
    %571 = vector.broadcast %cst_213 : f32 to vector<8x384xf32>
    %572 = arith.addf %571, %570 : vector<8x384xf32>
    %573 = arith.divf %571, %572 : vector<8x384xf32>
    %574 = vector.extract_strided_slice %567 {offsets = [0, 384], sizes = [8, 128], strides = [1, 1]} : vector<8x512xf32> to vector<8x128xf32>
    %575 = math.tanh %574 : vector<8x128xf32>
    %576 = vector.extract_strided_slice %573 {offsets = [0, 0], sizes = [8, 128], strides = [1, 1]} : vector<8x384xf32> to vector<8x128xf32>
    %577 = vector.extract_strided_slice %573 {offsets = [0, 128], sizes = [8, 128], strides = [1, 1]} : vector<8x384xf32> to vector<8x128xf32>
    %578 = vector.extract_strided_slice %573 {offsets = [0, 256], sizes = [8, 128], strides = [1, 1]} : vector<8x384xf32> to vector<8x128xf32>
    %579 = arith.mulf %577, %558 : vector<8x128xf32>
    %580 = arith.mulf %576, %575 : vector<8x128xf32>
    %581 = arith.addf %579, %580 : vector<8x128xf32>
    %582 = math.tanh %581 : vector<8x128xf32>
    %583 = arith.mulf %578, %582 : vector<8x128xf32>
    %c4_i32_214 = arith.constant 4 : i32
    %584 = arith.index_cast %c4_i32_214 : i32 to index
    %c0_215 = arith.constant 0 : index
    %c0_216 = arith.constant 0 : index
    %585 = vector.load %arg19[%584, %c0_215, %c0_216] : memref<8x8x512xf32, #tpu.memory_space<vmem>>, vector<1x8x512xf32>
    %586 = vector.shape_cast %585 : vector<1x8x512xf32> to vector<8x512xf32>
    %587 = arith.truncf %583 : vector<8x128xf32> to vector<8x128xbf16>
    %c0_217 = arith.constant 0 : index
    %c0_218 = arith.constant 0 : index
    %588 = vector.load %arg24[%c0_217, %c0_218] : memref<128x512xbf16, #tpu.memory_space<vmem>>, vector<128x512xbf16>
    %cst_219 = arith.constant dense<0.000000e+00> : vector<8x512xf32>
    %589 = tpu.matmul %587, %588, %cst_219 {dimension_numbers = #tpu.dot_dimension_numbers<[1], [0], [0], [1], [0, 0, 1, 1], [], []>} : vector<8x128xbf16>, vector<128x512xbf16>, vector<8x512xf32> -> vector<8x512xf32>
    %590 = arith.addf %586, %589 : vector<8x512xf32>
    %591 = vector.extract_strided_slice %590 {offsets = [0, 0], sizes = [8, 384], strides = [1, 1]} : vector<8x512xf32> to vector<8x384xf32>
    %592 = arith.negf %591 : vector<8x384xf32>
    %593 = math.exp %592 : vector<8x384xf32>
    %cst_220 = arith.constant 1.000000e+00 : f32
    %594 = vector.broadcast %cst_220 : f32 to vector<8x384xf32>
    %595 = arith.addf %594, %593 : vector<8x384xf32>
    %596 = arith.divf %594, %595 : vector<8x384xf32>
    %597 = vector.extract_strided_slice %590 {offsets = [0, 384], sizes = [8, 128], strides = [1, 1]} : vector<8x512xf32> to vector<8x128xf32>
    %598 = math.tanh %597 : vector<8x128xf32>
    %599 = vector.extract_strided_slice %596 {offsets = [0, 0], sizes = [8, 128], strides = [1, 1]} : vector<8x384xf32> to vector<8x128xf32>
    %600 = vector.extract_strided_slice %596 {offsets = [0, 128], sizes = [8, 128], strides = [1, 1]} : vector<8x384xf32> to vector<8x128xf32>
    %601 = vector.extract_strided_slice %596 {offsets = [0, 256], sizes = [8, 128], strides = [1, 1]} : vector<8x384xf32> to vector<8x128xf32>
    %602 = arith.mulf %600, %581 : vector<8x128xf32>
    %603 = arith.mulf %599, %598 : vector<8x128xf32>
    %604 = arith.addf %602, %603 : vector<8x128xf32>
    %605 = math.tanh %604 : vector<8x128xf32>
    %606 = arith.mulf %601, %605 : vector<8x128xf32>
    %c5_i32_221 = arith.constant 5 : i32
    %607 = arith.index_cast %c5_i32_221 : i32 to index
    %c0_222 = arith.constant 0 : index
    %c0_223 = arith.constant 0 : index
    %608 = vector.load %arg19[%607, %c0_222, %c0_223] : memref<8x8x512xf32, #tpu.memory_space<vmem>>, vector<1x8x512xf32>
    %609 = vector.shape_cast %608 : vector<1x8x512xf32> to vector<8x512xf32>
    %610 = arith.truncf %606 : vector<8x128xf32> to vector<8x128xbf16>
    %c0_224 = arith.constant 0 : index
    %c0_225 = arith.constant 0 : index
    %611 = vector.load %arg24[%c0_224, %c0_225] : memref<128x512xbf16, #tpu.memory_space<vmem>>, vector<128x512xbf16>
    %cst_226 = arith.constant dense<0.000000e+00> : vector<8x512xf32>
    %612 = tpu.matmul %610, %611, %cst_226 {dimension_numbers = #tpu.dot_dimension_numbers<[1], [0], [0], [1], [0, 0, 1, 1], [], []>} : vector<8x128xbf16>, vector<128x512xbf16>, vector<8x512xf32> -> vector<8x512xf32>
    %613 = arith.addf %609, %612 : vector<8x512xf32>
    %614 = vector.extract_strided_slice %613 {offsets = [0, 0], sizes = [8, 384], strides = [1, 1]} : vector<8x512xf32> to vector<8x384xf32>
    %615 = arith.negf %614 : vector<8x384xf32>
    %616 = math.exp %615 : vector<8x384xf32>
    %cst_227 = arith.constant 1.000000e+00 : f32
    %617 = vector.broadcast %cst_227 : f32 to vector<8x384xf32>
    %618 = arith.addf %617, %616 : vector<8x384xf32>
    %619 = arith.divf %617, %618 : vector<8x384xf32>
    %620 = vector.extract_strided_slice %613 {offsets = [0, 384], sizes = [8, 128], strides = [1, 1]} : vector<8x512xf32> to vector<8x128xf32>
    %621 = math.tanh %620 : vector<8x128xf32>
    %622 = vector.extract_strided_slice %619 {offsets = [0, 0], sizes = [8, 128], strides = [1, 1]} : vector<8x384xf32> to vector<8x128xf32>
    %623 = vector.extract_strided_slice %619 {offsets = [0, 128], sizes = [8, 128], strides = [1, 1]} : vector<8x384xf32> to vector<8x128xf32>
    %624 = vector.extract_strided_slice %619 {offsets = [0, 256], sizes = [8, 128], strides = [1, 1]} : vector<8x384xf32> to vector<8x128xf32>
    %625 = arith.mulf %623, %604 : vector<8x128xf32>
    %626 = arith.mulf %622, %621 : vector<8x128xf32>
    %627 = arith.addf %625, %626 : vector<8x128xf32>
    %628 = math.tanh %627 : vector<8x128xf32>
    %629 = arith.mulf %624, %628 : vector<8x128xf32>
    %c6_i32_228 = arith.constant 6 : i32
    %630 = arith.index_cast %c6_i32_228 : i32 to index
    %c0_229 = arith.constant 0 : index
    %c0_230 = arith.constant 0 : index
    %631 = vector.load %arg19[%630, %c0_229, %c0_230] : memref<8x8x512xf32, #tpu.memory_space<vmem>>, vector<1x8x512xf32>
    %632 = vector.shape_cast %631 : vector<1x8x512xf32> to vector<8x512xf32>
    %633 = arith.truncf %629 : vector<8x128xf32> to vector<8x128xbf16>
    %c0_231 = arith.constant 0 : index
    %c0_232 = arith.constant 0 : index
    %634 = vector.load %arg24[%c0_231, %c0_232] : memref<128x512xbf16, #tpu.memory_space<vmem>>, vector<128x512xbf16>
    %cst_233 = arith.constant dense<0.000000e+00> : vector<8x512xf32>
    %635 = tpu.matmul %633, %634, %cst_233 {dimension_numbers = #tpu.dot_dimension_numbers<[1], [0], [0], [1], [0, 0, 1, 1], [], []>} : vector<8x128xbf16>, vector<128x512xbf16>, vector<8x512xf32> -> vector<8x512xf32>
    %636 = arith.addf %632, %635 : vector<8x512xf32>
    %637 = vector.extract_strided_slice %636 {offsets = [0, 0], sizes = [8, 384], strides = [1, 1]} : vector<8x512xf32> to vector<8x384xf32>
    %638 = arith.negf %637 : vector<8x384xf32>
    %639 = math.exp %638 : vector<8x384xf32>
    %cst_234 = arith.constant 1.000000e+00 : f32
    %640 = vector.broadcast %cst_234 : f32 to vector<8x384xf32>
    %641 = arith.addf %640, %639 : vector<8x384xf32>
    %642 = arith.divf %640, %641 : vector<8x384xf32>
    %643 = vector.extract_strided_slice %636 {offsets = [0, 384], sizes = [8, 128], strides = [1, 1]} : vector<8x512xf32> to vector<8x128xf32>
    %644 = math.tanh %643 : vector<8x128xf32>
    %645 = vector.extract_strided_slice %642 {offsets = [0, 0], sizes = [8, 128], strides = [1, 1]} : vector<8x384xf32> to vector<8x128xf32>
    %646 = vector.extract_strided_slice %642 {offsets = [0, 128], sizes = [8, 128], strides = [1, 1]} : vector<8x384xf32> to vector<8x128xf32>
    %647 = vector.extract_strided_slice %642 {offsets = [0, 256], sizes = [8, 128], strides = [1, 1]} : vector<8x384xf32> to vector<8x128xf32>
    %648 = arith.mulf %646, %627 : vector<8x128xf32>
    %649 = arith.mulf %645, %644 : vector<8x128xf32>
    %650 = arith.addf %648, %649 : vector<8x128xf32>
    %651 = math.tanh %650 : vector<8x128xf32>
    %652 = arith.mulf %647, %651 : vector<8x128xf32>
    %c7_i32_235 = arith.constant 7 : i32
    %653 = arith.index_cast %c7_i32_235 : i32 to index
    %c0_236 = arith.constant 0 : index
    %c0_237 = arith.constant 0 : index
    %654 = vector.load %arg19[%653, %c0_236, %c0_237] : memref<8x8x512xf32, #tpu.memory_space<vmem>>, vector<1x8x512xf32>
    %655 = vector.shape_cast %654 : vector<1x8x512xf32> to vector<8x512xf32>
    %656 = arith.truncf %652 : vector<8x128xf32> to vector<8x128xbf16>
    %c0_238 = arith.constant 0 : index
    %c0_239 = arith.constant 0 : index
    %657 = vector.load %arg24[%c0_238, %c0_239] : memref<128x512xbf16, #tpu.memory_space<vmem>>, vector<128x512xbf16>
    %cst_240 = arith.constant dense<0.000000e+00> : vector<8x512xf32>
    %658 = tpu.matmul %656, %657, %cst_240 {dimension_numbers = #tpu.dot_dimension_numbers<[1], [0], [0], [1], [0, 0, 1, 1], [], []>} : vector<8x128xbf16>, vector<128x512xbf16>, vector<8x512xf32> -> vector<8x512xf32>
    %659 = arith.addf %655, %658 : vector<8x512xf32>
    %660 = vector.extract_strided_slice %659 {offsets = [0, 0], sizes = [8, 384], strides = [1, 1]} : vector<8x512xf32> to vector<8x384xf32>
    %661 = arith.negf %660 : vector<8x384xf32>
    %662 = math.exp %661 : vector<8x384xf32>
    %cst_241 = arith.constant 1.000000e+00 : f32
    %663 = vector.broadcast %cst_241 : f32 to vector<8x384xf32>
    %664 = arith.addf %663, %662 : vector<8x384xf32>
    %665 = arith.divf %663, %664 : vector<8x384xf32>
    %666 = vector.extract_strided_slice %659 {offsets = [0, 384], sizes = [8, 128], strides = [1, 1]} : vector<8x512xf32> to vector<8x128xf32>
    %667 = math.tanh %666 : vector<8x128xf32>
    %668 = vector.extract_strided_slice %665 {offsets = [0, 0], sizes = [8, 128], strides = [1, 1]} : vector<8x384xf32> to vector<8x128xf32>
    %669 = vector.extract_strided_slice %665 {offsets = [0, 128], sizes = [8, 128], strides = [1, 1]} : vector<8x384xf32> to vector<8x128xf32>
    %670 = vector.extract_strided_slice %665 {offsets = [0, 256], sizes = [8, 128], strides = [1, 1]} : vector<8x384xf32> to vector<8x128xf32>
    %671 = arith.mulf %669, %650 : vector<8x128xf32>
    %672 = arith.mulf %668, %667 : vector<8x128xf32>
    %673 = arith.addf %671, %672 : vector<8x128xf32>
    %674 = math.tanh %673 : vector<8x128xf32>
    %675 = arith.mulf %670, %674 : vector<8x128xf32>
    %c8_i32_242 = arith.constant 8 : i32
    %676 = arith.truncf %675 : vector<8x128xf32> to vector<8x128xbf16>
    %c0_243 = arith.constant 0 : index
    %c0_244 = arith.constant 0 : index
    %677 = vector.load %arg11[%c0_243, %c0_244] : memref<128x64xbf16, #tpu.memory_space<vmem>>, vector<128x64xbf16>
    %cst_245 = arith.constant dense<0.000000e+00> : vector<8x64xf32>
    %678 = tpu.matmul %676, %677, %cst_245 {dimension_numbers = #tpu.dot_dimension_numbers<[1], [0], [0], [1], [0, 0, 1, 1], [], []>} : vector<8x128xbf16>, vector<128x64xbf16>, vector<8x64xf32> -> vector<8x64xf32>
    %c0_246 = arith.constant 0 : index
    %c0_247 = arith.constant 0 : index
    %679 = vector.load %arg12[%c0_246, %c0_247] : memref<1x64xf32, #tpu.memory_space<vmem>>, vector<1x64xf32>
    %680 = vector.broadcast %679 : vector<1x64xf32> to vector<8x64xf32>
    %681 = arith.addf %678, %680 : vector<8x64xf32>
    %cst_248 = arith.constant dense<0.000000e+00> : vector<8xf32>
    %682 = vector.multi_reduction <add>, %681, %cst_248 [1] : vector<8x64xf32> to vector<8xf32>
    %683 = vector.shape_cast %682 : vector<8xf32> to vector<8x1xf32>
    %cst_249 = arith.constant 6.400000e+01 : f32
    %684 = vector.broadcast %cst_249 : f32 to vector<8x1xf32>
    %685 = arith.divf %683, %684 : vector<8x1xf32>
    %686 = vector.broadcast %685 : vector<8x1xf32> to vector<8x64xf32>
    %687 = arith.subf %681, %686 : vector<8x64xf32>
    %688 = arith.mulf %687, %687 : vector<8x64xf32>
    %cst_250 = arith.constant dense<0.000000e+00> : vector<8xf32>
    %689 = vector.multi_reduction <add>, %688, %cst_250 [1] : vector<8x64xf32> to vector<8xf32>
    %690 = vector.shape_cast %689 : vector<8xf32> to vector<8x1xf32>
    %cst_251 = arith.constant 6.400000e+01 : f32
    %691 = vector.broadcast %cst_251 : f32 to vector<8x1xf32>
    %692 = arith.divf %690, %691 : vector<8x1xf32>
    %693 = vector.broadcast %685 : vector<8x1xf32> to vector<8x64xf32>
    %694 = arith.subf %681, %693 : vector<8x64xf32>
    %cst_252 = arith.constant 9.99999974E-6 : f32
    %695 = vector.broadcast %cst_252 : f32 to vector<8x1xf32>
    %696 = arith.addf %692, %695 : vector<8x1xf32>
    %697 = math.rsqrt %696 : vector<8x1xf32>
    %698 = vector.broadcast %697 : vector<8x1xf32> to vector<8x64xf32>
    %699 = arith.mulf %694, %698 : vector<8x64xf32>
    %c0_253 = arith.constant 0 : index
    %c0_254 = arith.constant 0 : index
    %700 = vector.load %arg13[%c0_253, %c0_254] : memref<1x64xf32, #tpu.memory_space<vmem>>, vector<1x64xf32>
    %701 = vector.broadcast %700 : vector<1x64xf32> to vector<8x64xf32>
    %702 = arith.mulf %699, %701 : vector<8x64xf32>
    %c0_255 = arith.constant 0 : index
    %c0_256 = arith.constant 0 : index
    %703 = vector.load %arg14[%c0_255, %c0_256] : memref<1x64xf32, #tpu.memory_space<vmem>>, vector<1x64xf32>
    %704 = vector.broadcast %703 : vector<1x64xf32> to vector<8x64xf32>
    %705 = arith.addf %702, %704 : vector<8x64xf32>
    %cst_257 = arith.constant 0.000000e+00 : f32
    %706 = vector.broadcast %cst_257 : f32 to vector<8x64xf32>
    %707 = arith.maximumf %705, %706 : vector<8x64xf32>
    %708 = arith.truncf %707 : vector<8x64xf32> to vector<8x64xbf16>
    %c0_258 = arith.constant 0 : index
    %c0_259 = arith.constant 0 : index
    %709 = vector.load %arg15[%c0_258, %c0_259] : memref<64x128xbf16, #tpu.memory_space<vmem>>, vector<64x128xbf16>
    %cst_260 = arith.constant dense<0.000000e+00> : vector<8x128xf32>
    %710 = tpu.matmul %708, %709, %cst_260 {dimension_numbers = #tpu.dot_dimension_numbers<[1], [0], [0], [1], [0, 0, 1, 1], [], []>} : vector<8x64xbf16>, vector<64x128xbf16>, vector<8x128xf32> -> vector<8x128xf32>
    %c0_261 = arith.constant 0 : index
    %c0_262 = arith.constant 0 : index
    %711 = vector.load %arg16[%c0_261, %c0_262] : memref<1x128xf32, #tpu.memory_space<vmem>>, vector<1x128xf32>
    %712 = vector.broadcast %711 : vector<1x128xf32> to vector<8x128xf32>
    %713 = arith.addf %710, %712 : vector<8x128xf32>
    %c0_263 = arith.constant 0 : index
    %c0_264 = arith.constant 0 : index
    %714 = vector.load %arg17[%c0_263, %c0_264] : memref<8x128xf32, #tpu.memory_space<vmem>>, vector<8x128xf32>
    tpu.vector_store %arg17[%c0_263, %c0_264], %713 {strides = array<i32>} : memref<8x128xf32, #tpu.memory_space<vmem>>, vector<8x128xf32>,
    return
  }
  func.func @transform_0(%arg0: i32) -> (i32, i32, i32) {
    %c0_i32 = arith.constant 0 : i32
    %c0_i32_0 = arith.constant 0 : i32
    %c0_i32_1 = arith.constant 0 : i32
    return %c0_i32, %arg0, %c0_i32_0 : i32, i32, i32
  }
  func.func @transform_1(%arg0: i32) -> (i32, i32) {
    %c0_i32 = arith.constant 0 : i32
    %c0_i32_0 = arith.constant 0 : i32
    %c0_i32_1 = arith.constant 0 : i32
    return %c0_i32, %c0_i32_0 : i32, i32
  }
  func.func @transform_2(%arg0: i32) -> (i32, i32) {
    %c0_i32 = arith.constant 0 : i32
    %c0_i32_0 = arith.constant 0 : i32
    %c0_i32_1 = arith.constant 0 : i32
    return %c0_i32, %c0_i32_0 : i32, i32
  }
  func.func @transform_3(%arg0: i32) -> (i32, i32) {
    %c0_i32 = arith.constant 0 : i32
    %c0_i32_0 = arith.constant 0 : i32
    %c0_i32_1 = arith.constant 0 : i32
    return %c0_i32, %c0_i32_0 : i32, i32
  }
  func.func @transform_10(%arg0: i32) -> (i32, i32) {
    %c0_i32 = arith.constant 0 : i32
    %c0_i32_0 = arith.constant 0 : i32
    %c0_i32_1 = arith.constant 0 : i32
    return %c0_i32, %c0_i32_0 : i32, i32
  }
  func.func @transform_11(%arg0: i32) -> (i32, i32) {
    %c0_i32 = arith.constant 0 : i32
    %c0_i32_0 = arith.constant 0 : i32
    %c0_i32_1 = arith.constant 0 : i32
    return %c0_i32, %c0_i32_0 : i32, i32
  }
  func.func @transform_12(%arg0: i32) -> (i32, i32) {
    %c0_i32 = arith.constant 0 : i32
    %c0_i32_0 = arith.constant 0 : i32
    %c0_i32_1 = arith.constant 0 : i32
    return %c0_i32, %c0_i32_0 : i32, i32
  }
  func.func @transform_13(%arg0: i32) -> (i32, i32) {
    %c0_i32 = arith.constant 0 : i32
    %c0_i32_0 = arith.constant 0 : i32
    %c0_i32_1 = arith.constant 0 : i32
    return %c0_i32, %c0_i32_0 : i32, i32
  }
  func.func @transform_14(%arg0: i32) -> (i32, i32) {
    %c0_i32 = arith.constant 0 : i32
    %c0_i32_0 = arith.constant 0 : i32
    %c0_i32_1 = arith.constant 0 : i32
    return %c0_i32, %c0_i32_0 : i32, i32
  }
  func.func @transform_15(%arg0: i32) -> (i32, i32) {
    %c0_i32 = arith.constant 0 : i32
    %c0_i32_0 = arith.constant 0 : i32
    %c0_i32_1 = arith.constant 0 : i32
    return %c0_i32, %c0_i32_0 : i32, i32
  }
  func.func @transform_16(%arg0: i32) -> (i32, i32) {
    %c0_i32 = arith.constant 0 : i32
    %c0_i32_0 = arith.constant 0 : i32
    return %arg0, %c0_i32 : i32, i32
  }
}

</mosaic_0001>

<bundles_post_ra>
// kernel: rnn_forward.1
= control target key start
LH: loop header
LB: loop body
LE: loop exit
PB: predicated region body
PF: predicated region fallthrough
CT: control target
= control target key end

     0   :  { %s9587_s0 = inlined_call_operand.vmem [shape: f32[8,8,32], index: 0, kind: input, shape index: {}]   ;;  %s9588_s1 = inlined_call_operand.hbm [shape: bf16[32,512], index: 1, kind: input, shape index: {}]   ;;  %s9589_s2 = inlined_call_operand.hbm [shape: bf16[128,512], index: 2, kind: input, shape index: {}]   ;;  %s9590_s3 = inlined_call_operand.hbm [shape: f32[1,512], index: 3, kind: input, shape index: {}]   ;;  %s9591_s4 = inlined_call_operand.hbm [shape: bf16[128,512], index: 4, kind: input, shape index: {}]   ;;  %s9592_s5 = inlined_call_operand.hbm [shape: bf16[128,512], index: 5, kind: input, shape index: {}]   ;;  %s9593_s6 = inlined_call_operand.hbm [shape: f32[1,512], index: 6, kind: input, shape index: {}]   ;;  %s9594_s7 = inlined_call_operand.vmem [shape: bf16[128,512], index: 7, kind: input, shape index: {}]   ;;  %s9595_s8 = inlined_call_operand.hbm [shape: bf16[128,512], index: 8, kind: input, shape index: {}]   ;;  %s9596_s9 = inlined_call_operand.hbm [shape: f32[1,512], index: 9, kind: input, shape index: {}]   ;;  %s9597_s10 = inlined_call_operand.vmem [shape: bf16[128,64], index: 10, kind: input, shape index: {}]   ;;  %s9598_s11 = inlined_call_operand.vmem [shape: f32[1,64], index: 11, kind: input, shape index: {}]   ;;  %s9599_s12 = inlined_call_operand.vmem [shape: f32[1,64], index: 12, kind: input, shape index: {}]   ;;  %s9600_s13 = inlined_call_operand.hbm [shape: f32[1,64], index: 13, kind: input, shape index: {}]   ;;  %s9601_s14 = inlined_call_operand.hbm [shape: bf16[64,128], index: 14, kind: input, shape index: {}]   ;;  %s9602_s15 = inlined_call_operand.hbm [shape: f32[1,128], index: 15, kind: input, shape index: {}]   ;;  %s9603_s16 = inlined_call_operand.vmem [shape: f32[8,128], index: 16, kind: output, shape index: {}]  }
   0x1   :  { %9615 = sst [smem:[#allocation70_spill]] %s9587_s0 }
   0x2   :  { %21 = vsyncpa [#allocation12], 0 }
   0x3   :  { %22 = vsyncpa [#allocation14], 0 }
   0x4   :  { %23 = vsyncpa [#allocation17], 0 }
   0x5   :  { %24 = vsyncpa [#allocation20], 0  ;;  %s7410_s21 = smov [#allocation13]   ;;  %s7411_s23 = smov [#allocation16]  }
   0x6   :  { %s44_s22 = sshll.u32 %s7410_s21, 4  ;;  %s73_s24 = sshll.u32 %s7411_s23, 4  ;;  %s45_s22 = int_to_ptr.vmem [resolvable:$true] %s44_s22  ;;  %s7522_s24 = int_to_ptr.vmem [resolvable:$true] %s73_s24 }
   0x7   :  { %s7214_s27 = scalar_lea.hbm %s9589_s2, 4096 }
   0x8   :  { %p7215_p0 = scmp.ne.s32.totalorder %s9589_s2, %s7214_s27  ;;  %p7218_p1 = scmp.lt.u32.totalorder %s7214_s27, %s9589_s2 }
   0xa   :  { %p7220_p2 = pnand %p7218_p1, %p7215_p0 }
   0xc   :  { %7223 = shalt.err (!%p7220_p2)
}
   0xd   :  { %s7224_s17 = scalar_lea.vmem %s45_s22, 4096  ;;  %p7229_p4 = scmp.lt.s32.totalorder %s45_s22, %s45_s22 }
   0xe   :  { %p7225_p3 = scmp.ne.s32.totalorder %s45_s22, %s7224_s17  ;;  %p7230_p5 = scmp.lt.s32.totalorder %s7224_s17, %s7224_s17 }
  0x10   :  { %p7231_p6 = por %p7230_p5, %p7229_p4 }
  0x12   :  { %p7232_p7 = pnand %p7231_p6, %p7225_p3 }
  0x14   :  { %7235 = shalt.err (!%p7232_p7)
}
  0x15   :  { %s7412_s18 = smov 256   ;;  %s7413_s19 = smov 16  }
  0x16   :  { %50 = dma.hbm_to_vmem [thread:$0]  %s9589_s2, 4096, %s45_s22, [#allocation14], %s7412_s18, %s7412_s18, %s7413_s19  }
  0x17   :  { %s7236_s26 = scalar_lea.hbm %s9600_s13, 16 }
  0x18   :  { %p7237_p8 = scmp.ne.s32.totalorder %s9600_s13, %s7236_s26  ;;  %p7240_p9 = scmp.lt.u32.totalorder %s7236_s26, %s9600_s13 }
  0x1a   :  { %p7242_p10 = pnand %p7240_p9, %p7237_p8 }
  0x1c   :  { %7245 = shalt.err (!%p7242_p10)
}
  0x1d   :  { %s7246_s0 = scalar_lea.vmem %s7522_s24, 16  ;;  %s7250_s2 = scalar_lea.vmem %s7522_s24, 32 }
  0x1e   :  { %p7247_p11 = scmp.ne.s32.totalorder %s7522_s24, %s7246_s0  ;;  %p7251_p12 = scmp.lt.s32.totalorder %s7522_s24, %s7522_s24 }
  0x1f   :  { %p7252_p13 = scmp.lt.s32.totalorder %s7250_s2, %s7246_s0 }
  0x21   :  { %p7253_p0 = por %p7252_p13, %p7251_p12 }
  0x23   :  { %p7254_p1 = pnand %p7253_p0, %p7247_p11 }
  0x25   :  { %7257 = shalt.err (!%p7254_p1)
}
  0x26   :  { %76 = dma.hbm_to_vmem [thread:$0]  %s9600_s13, 16, %s7522_s24, [#allocation17]  }
  0x27   :  { %s7414_s20 = smov [#allocation11]   ;;  %s7415_s23 = smov [#allocation15]  }
  0x28   :  { %s32_s21 = sshll.u32 %s7414_s20, 4  ;;  %s57_s25 = sshll.u32 %s7415_s23, 4  ;;  %s33_s21 = int_to_ptr.vmem [resolvable:$true] %s32_s21  ;;  %s58_s25 = int_to_ptr.vmem [resolvable:$true] %s57_s25 }
  0x29   :  { %s7258_s28 = scalar_lea.hbm %s9588_s1, 1024 }
  0x2a   :  { %p7259_p2 = scmp.ne.s32.totalorder %s9588_s1, %s7258_s28  ;;  %p7262_p3 = scmp.lt.u32.totalorder %s7258_s28, %s9588_s1 }
  0x2c   :  { %p7264_p4 = pnand %p7262_p3, %p7259_p2 }
  0x2e   :  { %7267 = shalt.err (!%p7264_p4)
}
  0x2f   :  { %s7268_s13 = scalar_lea.vmem %s33_s21, 1024  ;;  %p7273_p6 = scmp.lt.s32.totalorder %s33_s21, %s33_s21 }
  0x30   :  { %p7269_p5 = scmp.ne.s32.totalorder %s33_s21, %s7268_s13  ;;  %p7274_p7 = scmp.lt.s32.totalorder %s7268_s13, %s7268_s13 }
  0x32   :  { %p7275_p8 = por %p7274_p7, %p7273_p6 }
  0x34   :  { %p7276_p9 = pnand %p7275_p8, %p7269_p5 }
  0x36   :  { %7279 = shalt.err (!%p7276_p9)
}
  0x37   :  { %38 = dma.hbm_to_vmem [thread:$0]  %s9588_s1, 1024, %s33_s21, [#allocation12], %s7412_s18, %s7412_s18, %s7413_s19  }
  0x38   :  { %s7280_s23 = scalar_lea.hbm %s9590_s3, 64 }
  0x39   :  { %p7281_p10 = scmp.ne.s32.totalorder %s9590_s3, %s7280_s23  ;;  %p7284_p11 = scmp.lt.u32.totalorder %s7280_s23, %s9590_s3 }
  0x3b   :  { %p7286_p12 = pnand %p7284_p11, %p7281_p10 }
  0x3d   :  { %7289 = shalt.err (!%p7286_p12)
}
  0x3e   :  { %s7290_s30 = scalar_lea.vmem %s58_s25, 64  ;;  %p7295_p0 = scmp.lt.s32.totalorder %s58_s25, %s58_s25 }
  0x3f   :  { %p7291_p13 = scmp.ne.s32.totalorder %s58_s25, %s7290_s30  ;;  %p7296_p1 = scmp.lt.s32.totalorder %s7290_s30, %s7290_s30 }
  0x41   :  { %p7297_p2 = por %p7296_p1, %p7295_p0 }
  0x43   :  { %p7298_p3 = pnand %p7297_p2, %p7291_p13 }
  0x45   :  { %7301 = shalt.err (!%p7298_p3)
}
  0x46   :  { %60 = dma.hbm_to_vmem [thread:$0]  %s9590_s3, 64, %s58_s25, [#allocation14]  }
  0x47   :  { %s7416_s21 = smov [#allocation18]   ;;  %s7302_s24 = scalar_lea.hbm %s9601_s14, 512 }
  0x48   :  { %s82_s0 = sshll.u32 %s7416_s21, 4  ;;  %p7303_p4 = scmp.ne.s32.totalorder %s9601_s14, %s7302_s24  ;;  %s83_s0 = int_to_ptr.vmem [resolvable:$true] %s82_s0 }
  0x49   :  { %p7306_p5 = scmp.lt.u32.totalorder %s7302_s24, %s9601_s14 }
  0x4b   :  { %p7308_p6 = pnand %p7306_p5, %p7303_p4 }
  0x4d   :  { %7311 = shalt.err (!%p7308_p6)
}
  0x4e   :  { %s7312_s26 = scalar_lea.vmem %s83_s0, 512  ;;  %p7317_p8 = scmp.lt.s32.totalorder %s83_s0, %s83_s0 }
  0x4f   :  { %p7313_p7 = scmp.ne.s32.totalorder %s83_s0, %s7312_s26  ;;  %p7318_p9 = scmp.lt.s32.totalorder %s7312_s26, %s7312_s26 }
  0x51   :  { %p7319_p10 = por %p7318_p9, %p7317_p8 }
  0x53   :  { %p7320_p11 = pnand %p7319_p10, %p7313_p7 }
  0x55   :  { %7323 = shalt.err (!%p7320_p11)
}
  0x56   :  { %s7417_s3 = smov 64   ;;  %s7418_s25 = smov 4  }
  0x57   :  { %88 = dma.hbm_to_vmem [thread:$0]  %s9601_s14, 512, %s83_s0, [#allocation17], %s7417_s3, %s7417_s3, %s7418_s25  }
  0x58   :  { %s7419_s29 = smov [#allocation19]   ;;  %s7324_s21 = scalar_lea.hbm %s9602_s15, 16 }
  0x59   :  { %s95_s30 = sshll.u32 %s7419_s29, 4  ;;  %p7325_p12 = scmp.ne.s32.totalorder %s9602_s15, %s7324_s21  ;;  %s96_s30 = int_to_ptr.vmem [resolvable:$true] %s95_s30 }
  0x5a   :  { %p7328_p13 = scmp.lt.u32.totalorder %s7324_s21, %s9602_s15 }
  0x5c   :  { %p7330_p0 = pnand %p7328_p13, %p7325_p12 }
  0x5e   :  { %7333 = shalt.err (!%p7330_p0)
}
  0x5f   :  { %s7334_s17 = scalar_lea.vmem %s96_s30, 16  ;;  %s7338_s14 = scalar_lea.vmem %s96_s30, 32 }
  0x60   :  { %p7335_p1 = scmp.ne.s32.totalorder %s96_s30, %s7334_s17  ;;  %p7339_p2 = scmp.lt.s32.totalorder %s96_s30, %s96_s30 }
  0x61   :  { %p7340_p3 = scmp.lt.s32.totalorder %s7338_s14, %s7334_s17 }
  0x63   :  { %p7341_p4 = por %p7340_p3, %p7339_p2 }
  0x65   :  { %p7342_p5 = pnand %p7341_p4, %p7335_p1 }
  0x67   :  { %7345 = shalt.err (!%p7342_p5)
}
  0x68   :  { %98 = dma.hbm_to_vmem [thread:$0]  %s9602_s15, 16, %s96_s30, [#allocation20]  }
  0x69   :  { %7390 = dma.done.wait [#allocation12], 1024  }
  0x6a   :  { %7391 = vsyncadd [#allocation12], 4294966272 }
  0x6b   :  { %7392 = dma.done.wait [#allocation14], 4160  }
  0x6c   :  { %7393 = vsyncadd [#allocation14], 4294963136 }
  0x6d   :  { %7394 = dma.done.wait [#allocation17], 528  }
  0x6e   :  { %7395 = vsyncadd [#allocation17], 4294966768 }
  0x6f   :  { %7396 = dma.done.wait [#allocation20], 16  }
  0x70   :  { %7397 = vsyncadd [#allocation20], 4294967280  ;;  %s122_s23 = sld [smem:[#allocation0]]   ;;  %138 = sst [smem:[#allocation22 + $0x2]] %s7418_s25 }
  0x71   :  { %140 = sst [smem:[#allocation22 + $0x3]] %s7417_s3  ;;  %s7420_s26 = smov [#allocation4]  }
  0x72   :  { %s130_s27 = sshll.u32 %s7420_s26, 4  ;;  %146 = sst [smem:[#allocation22 + $0x6]] %s7412_s18  ;;  %s131_s27 = int_to_ptr.vmem [resolvable:$true] %s130_s27 }
  0x73   :  { %148 = sst [smem:[#allocation22 + $0x7]] %s7417_s3  ;;  %s7421_s15 = smov 512  }
  0x74   :  { %150 = sst [smem:[#allocation22 + $0x8]] %s7418_s25  ;;  %s7422_s30 = smov 128  }
  0x75   :  { %134 = sst [smem:[#allocation22]] %s7421_s15  ;;  %s7423_s1 = smov 2  }
  0x76   :  { %s6230_s28 = sshll.u32 %s122_s23, 26  ;;  %136 = sst [smem:[#allocation22 + $0x1]] %s7421_s15 }
  0x77   :  { %s7618_s29 = sadd.s32 134217728, %s6230_s28  ;;  %142 = sst [smem:[#allocation22 + $0x4]] %s7422_s30 }
  0x78   :  { %144 = sst [smem:[#allocation22 + $0x5]] %s7423_s1  ;;  %s7424_s19 = smov [#allocation10]  }
  0x79   :  { %s7425_s21 = smov [#allocation21]   ;;  %s7426_s24 = smov [#allocation5]  }
  0x7a   :  { %152 = dma.general %s9591_s4, 4096, %s131_s27, %s7424_s19, %s7425_s21, [#allocation22], %s7618_s29, 0  }
  0x7b   :  { %169 = sst [smem:[#allocation24]] %s7421_s15  ;;  %s165_s22 = sshll.u32 %s7426_s24, 4  ;;  %s166_s22 = int_to_ptr.vmem [resolvable:$true] %s165_s22 }
  0x7c   :  { %171 = sst [smem:[#allocation24 + $0x1]] %s7421_s15  ;;  %s7427_s17 = smov [#allocation6]  }
  0x7d   :  { %173 = sst [smem:[#allocation24 + $0x2]] %s7418_s25  ;;  %s196_s4 = sshll.u32 %s7427_s17, 4  ;;  %s197_s4 = int_to_ptr.vmem [resolvable:$true] %s196_s4 }
  0x7e   :  { %175 = sst [smem:[#allocation24 + $0x3]] %s7417_s3  ;;  %s7428_s14 = smov [#allocation10 + $0x1]  }
  0x7f   :  { %177 = sst [smem:[#allocation24 + $0x4]] %s7422_s30  ;;  %s7429_s0 = smov [#allocation23]  }
  0x80   :  { %179 = sst [smem:[#allocation24 + $0x5]] %s7423_s1  ;;  %s7346_s28 = scalar_lea.hbm %s9593_s6, 64 }
  0x81   :  { %181 = sst [smem:[#allocation24 + $0x6]] %s7412_s18  ;;  %p7347_p6 = scmp.ne.s32.totalorder %s9593_s6, %s7346_s28 }
  0x82   :  { %183 = sst [smem:[#allocation24 + $0x7]] %s7417_s3  ;;  %p7350_p7 = scmp.lt.u32.totalorder %s7346_s28, %s9593_s6 }
  0x83   :  { %185 = sst [smem:[#allocation24 + $0x8]] %s7418_s25 }
  0x84   :  { %187 = dma.general %s9592_s5, 4096, %s166_s22, %s7428_s14, %s7429_s0, [#allocation24], %s7618_s29, 0  }
  0x85   :  { %p7352_p8 = pnand %p7350_p7, %p7347_p6 }
  0x87   :  { %7355 = shalt.err (!%p7352_p8)  }
  0x88   :  { %s7356_s24 = scalar_lea.vmem %s197_s4, 64  ;;  %p7361_p10 = scmp.lt.s32.totalorder %s197_s4, %s197_s4 }
  0x89   :  { %p7357_p9 = scmp.ne.s32.totalorder %s197_s4, %s7356_s24  ;;  %p7362_p11 = scmp.lt.s32.totalorder %s7356_s24, %s7356_s24 }
  0x8b   :  { %p7363_p12 = por %p7362_p11, %p7361_p10 }
  0x8d   :  { %p7364_p13 = pnand %p7363_p12, %p7357_p9 }
  0x8f   :  { %7367 = shalt.err (!%p7364_p13)  }
  0x90   :  { %199 = dma.hbm_to_vmem [thread:$0]  %s9593_s6, 64, %s197_s4, [#allocation10 + $0x2]  ;;  %v218_v0 = vld [vmem:[%s9594_s7] sm:$0xf]  ;;  %v220_v1 = vld [vmem:[%s9594_s7 + $0x10] sm:$0xf] }
  0x91   :  { %v222_v2 = vld [vmem:[%s9594_s7 + $0x4] sm:$0xf]  ;;  %219 = vst [vmem:[#allocation7] sm:$0xf] %v218_v0  ;;  %221 = vst [vmem:[#allocation7 + $0x4] sm:$0xf] %v220_v1 }
  0x92   :  { %223 = vst [vmem:[#allocation7 + $0x8] sm:$0xf] %v222_v2  ;;  %v224_v3 = vld [vmem:[%s9594_s7 + $0x14] sm:$0xf]  ;;  %v226_v4 = vld [vmem:[%s9594_s7 + $0x8] sm:$0xf] }
  0x93   :  { %v228_v5 = vld [vmem:[%s9594_s7 + $0x18] sm:$0xf]  ;;  %225 = vst [vmem:[#allocation7 + $0xc] sm:$0xf] %v224_v3  ;;  %227 = vst [vmem:[#allocation7 + $0x10] sm:$0xf] %v226_v4 }
  0x94   :  { %229 = vst [vmem:[#allocation7 + $0x14] sm:$0xf] %v228_v5  ;;  %v230_v6 = vld [vmem:[%s9594_s7 + $0xc] sm:$0xf]  ;;  %v232_v7 = vld [vmem:[%s9594_s7 + $0x1c] sm:$0xff]  }
  0x95   :  { %v236_v8 = vld [vmem:[%s9594_s7 + $0x30] sm:$0xf]  ;;  %231 = vst [vmem:[#allocation7 + $0x18] sm:$0xf] %v230_v6  ;;  %233 = vst [vmem:[#allocation7 + $0x1c] sm:$0xff] %v232_v7   ;;  %v248_v14 = vld [vmem:[%s9594_s7 + $0x3c] sm:$0xff]  }
  0x96   :  { %237 = vst [vmem:[#allocation7 + $0x24] sm:$0xf] %v236_v8  ;;  %v238_v9 = vld [vmem:[%s9594_s7 + $0x24] sm:$0xf]  ;;  %v240_v10 = vld [vmem:[%s9594_s7 + $0x34] sm:$0xf] }
  0x97   :  { %v242_v11 = vld [vmem:[%s9594_s7 + $0x28] sm:$0xf]  ;;  %239 = vst [vmem:[#allocation7 + $0x28] sm:$0xf] %v238_v9  ;;  %241 = vst [vmem:[#allocation7 + $0x2c] sm:$0xf] %v240_v10 }
  0x98   :  { %243 = vst [vmem:[#allocation7 + $0x30] sm:$0xf] %v242_v11  ;;  %v244_v12 = vld [vmem:[%s9594_s7 + $0x38] sm:$0xf]  ;;  %v246_v13 = vld [vmem:[%s9594_s7 + $0x2c] sm:$0xf] }
  0x99   :  { %245 = vst [vmem:[#allocation7 + $0x34] sm:$0xf] %v244_v12  ;;  %247 = vst [vmem:[#allocation7 + $0x38] sm:$0xf] %v246_v13  ;;  %v252_v15 = vld [vmem:[%s9594_s7 + $0x50] sm:$0xf] }
  0x9a   :  { %249 = vst [vmem:[#allocation7 + $0x3c] sm:$0xff] %v248_v14   ;;  %v254_v16 = vld [vmem:[%s9594_s7 + $0x44] sm:$0xf]  ;;  %v256_v17 = vld [vmem:[%s9594_s7 + $0x54] sm:$0xf]  ;;  %v264_v21 = vld [vmem:[%s9594_s7 + $0x5c] sm:$0xff]  }
  0x9b   :  { %253 = vst [vmem:[#allocation7 + $0x44] sm:$0xf] %v252_v15  ;;  %255 = vst [vmem:[#allocation7 + $0x48] sm:$0xf] %v254_v16  ;;  %v258_v18 = vld [vmem:[%s9594_s7 + $0x48] sm:$0xf] }
  0x9c   :  { %257 = vst [vmem:[#allocation7 + $0x4c] sm:$0xf] %v256_v17  ;;  %v260_v19 = vld [vmem:[%s9594_s7 + $0x58] sm:$0xf]  ;;  %v262_v20 = vld [vmem:[%s9594_s7 + $0x4c] sm:$0xf] }
  0x9d   :  { %259 = vst [vmem:[#allocation7 + $0x50] sm:$0xf] %v258_v18  ;;  %261 = vst [vmem:[#allocation7 + $0x54] sm:$0xf] %v260_v19  ;;  %v268_v22 = vld [vmem:[%s9594_s7 + $0x70] sm:$0xf] }
  0x9e   :  { %263 = vst [vmem:[#allocation7 + $0x58] sm:$0xf] %v262_v20  ;;  %v270_v23 = vld [vmem:[%s9594_s7 + $0x64] sm:$0xf]  ;;  %265 = vst [vmem:[#allocation7 + $0x5c] sm:$0xff] %v264_v21   ;;  %v280_v28 = vld [vmem:[%s9594_s7 + $0x7c] sm:$0xff]  }
  0x9f   :  { %269 = vst [vmem:[#allocation7 + $0x64] sm:$0xf] %v268_v22  ;;  %271 = vst [vmem:[#allocation7 + $0x68] sm:$0xf] %v270_v23  ;;  %v272_v24 = vld [vmem:[%s9594_s7 + $0x74] sm:$0xf] }
  0xa0   :  { %v274_v25 = vld [vmem:[%s9594_s7 + $0x68] sm:$0xf]  ;;  %v276_v26 = vld [vmem:[%s9594_s7 + $0x78] sm:$0xf]  ;;  %273 = vst [vmem:[#allocation7 + $0x6c] sm:$0xf] %v272_v24 }
  0xa1   :  { %275 = vst [vmem:[#allocation7 + $0x70] sm:$0xf] %v274_v25  ;;  %277 = vst [vmem:[#allocation7 + $0x74] sm:$0xf] %v276_v26  ;;  %v278_v27 = vld [vmem:[%s9594_s7 + $0x6c] sm:$0xf] }
  0xa2   :  { %v284_v29 = vld [vmem:[%s9594_s7 + $0x90] sm:$0xf]  ;;  %279 = vst [vmem:[#allocation7 + $0x78] sm:$0xf] %v278_v27  ;;  %281 = vst [vmem:[#allocation7 + $0x7c] sm:$0xff] %v280_v28   ;;  %v296_v35 = vld [vmem:[%s9594_s7 + $0x9c] sm:$0xff]  }
  0xa3   :  { %285 = vst [vmem:[#allocation7 + $0x84] sm:$0xf] %v284_v29  ;;  %v286_v30 = vld [vmem:[%s9594_s7 + $0x84] sm:$0xf]  ;;  %v288_v31 = vld [vmem:[%s9594_s7 + $0x94] sm:$0xf] }
  0xa4   :  { %v290_v32 = vld [vmem:[%s9594_s7 + $0x88] sm:$0xf]  ;;  %287 = vst [vmem:[#allocation7 + $0x88] sm:$0xf] %v286_v30  ;;  %289 = vst [vmem:[#allocation7 + $0x8c] sm:$0xf] %v288_v31 }
  0xa5   :  { %291 = vst [vmem:[#allocation7 + $0x90] sm:$0xf] %v290_v32  ;;  %v292_v33 = vld [vmem:[%s9594_s7 + $0x98] sm:$0xf]  ;;  %v294_v34 = vld [vmem:[%s9594_s7 + $0x8c] sm:$0xf] }
  0xa6   :  { %293 = vst [vmem:[#allocation7 + $0x94] sm:$0xf] %v292_v33  ;;  %295 = vst [vmem:[#allocation7 + $0x98] sm:$0xf] %v294_v34  ;;  %v300_v36 = vld [vmem:[%s9594_s7 + $0xb0] sm:$0xf] }
  0xa7   :  { %297 = vst [vmem:[#allocation7 + $0x9c] sm:$0xff] %v296_v35   ;;  %v302_v37 = vld [vmem:[%s9594_s7 + $0xa4] sm:$0xf]  ;;  %v304_v38 = vld [vmem:[%s9594_s7 + $0xb4] sm:$0xf]  ;;  %v312_v42 = vld [vmem:[%s9594_s7 + $0xbc] sm:$0xff]  }
  0xa8   :  { %301 = vst [vmem:[#allocation7 + $0xa4] sm:$0xf] %v300_v36  ;;  %303 = vst [vmem:[#allocation7 + $0xa8] sm:$0xf] %v302_v37  ;;  %v306_v39 = vld [vmem:[%s9594_s7 + $0xa8] sm:$0xf] }
  0xa9   :  { %305 = vst [vmem:[#allocation7 + $0xac] sm:$0xf] %v304_v38  ;;  %v308_v40 = vld [vmem:[%s9594_s7 + $0xb8] sm:$0xf]  ;;  %v310_v41 = vld [vmem:[%s9594_s7 + $0xac] sm:$0xf] }
  0xaa   :  { %307 = vst [vmem:[#allocation7 + $0xb0] sm:$0xf] %v306_v39  ;;  %309 = vst [vmem:[#allocation7 + $0xb4] sm:$0xf] %v308_v40  ;;  %v316_v43 = vld [vmem:[%s9594_s7 + $0xd0] sm:$0xf] }
  0xab   :  { %311 = vst [vmem:[#allocation7 + $0xb8] sm:$0xf] %v310_v41  ;;  %v318_v44 = vld [vmem:[%s9594_s7 + $0xc4] sm:$0xf]  ;;  %313 = vst [vmem:[#allocation7 + $0xbc] sm:$0xff] %v312_v42   ;;  %v328_v49 = vld [vmem:[%s9594_s7 + $0xdc] sm:$0xff]  }
  0xac   :  { %317 = vst [vmem:[#allocation7 + $0xc4] sm:$0xf] %v316_v43  ;;  %319 = vst [vmem:[#allocation7 + $0xc8] sm:$0xf] %v318_v44  ;;  %v320_v45 = vld [vmem:[%s9594_s7 + $0xd4] sm:$0xf] }
  0xad   :  { %v322_v46 = vld [vmem:[%s9594_s7 + $0xc8] sm:$0xf]  ;;  %v324_v47 = vld [vmem:[%s9594_s7 + $0xd8] sm:$0xf]  ;;  %321 = vst [vmem:[#allocation7 + $0xcc] sm:$0xf] %v320_v45 }
  0xae   :  { %323 = vst [vmem:[#allocation7 + $0xd0] sm:$0xf] %v322_v46  ;;  %325 = vst [vmem:[#allocation7 + $0xd4] sm:$0xf] %v324_v47  ;;  %v326_v48 = vld [vmem:[%s9594_s7 + $0xcc] sm:$0xf] }
  0xaf   :  { %v332_v50 = vld [vmem:[%s9594_s7 + $0xf0] sm:$0xf]  ;;  %327 = vst [vmem:[#allocation7 + $0xd8] sm:$0xf] %v326_v48  ;;  %329 = vst [vmem:[#allocation7 + $0xdc] sm:$0xff] %v328_v49  }
  0xb0   :  { %333 = vst [vmem:[#allocation7 + $0xe4] sm:$0xf] %v332_v50  ;;  %v334_v51 = vld [vmem:[%s9594_s7 + $0xe4] sm:$0xf]  ;;  %v336_v52 = vld [vmem:[%s9594_s7 + $0xf4] sm:$0xf] }
  0xb1   :  { %v338_v53 = vld [vmem:[%s9594_s7 + $0xe8] sm:$0xf]  ;;  %335 = vst [vmem:[#allocation7 + $0xe8] sm:$0xf] %v334_v51  ;;  %337 = vst [vmem:[#allocation7 + $0xec] sm:$0xf] %v336_v52 }
  0xb2   :  { %339 = vst [vmem:[#allocation7 + $0xf0] sm:$0xf] %v338_v53  ;;  %v340_v54 = vld [vmem:[%s9594_s7 + $0xf8] sm:$0xf]  ;;  %v342_v55 = vld [vmem:[%s9594_s7 + $0xec] sm:$0xf] }
  0xb3   :  { %v344_v56 = vld [vmem:[%s9594_s7 + $0xfc] sm:$0xf]  ;;  %341 = vst [vmem:[#allocation7 + $0xf4] sm:$0xf] %v340_v54  ;;  %343 = vst [vmem:[#allocation7 + $0xf8] sm:$0xf] %v342_v55 }
  0xb4   :  { %345 = vst [vmem:[#allocation7 + $0xfc] sm:$0xf] %v344_v56 }
  0xb5   :  { %504 = vsyncadd [#allocation10 + $0x3], 4096  ;;  %521 = sst [smem:[#allocation31]] %s7421_s15  ;;  %s7430_s2 = smov [#allocation8]   ;;  %v9605_v57 = vmov 0   ;;  %vm634_vm0 = vcmask 261120   ;;  %v574_v46 = vlaneseq }
  0xb6   :  { %s517_s13 = sshll.u32 %s7430_s2, 4  ;;  %523 = sst [smem:[#allocation31 + $0x1]] %s7421_s15  ;;  %679 = vmatprep.mubr.bf16.mxu0 %v9605_v57  ;;  %752 = vmatprep.mubr.bf16.mxu1 %v9605_v57  ;;  %s518_s13 = int_to_ptr.vmem [resolvable:$true] %s517_s13 }
  0xb7   :  { %525 = sst [smem:[#allocation31 + $0x2]] %s7418_s25  ;;  %s7432_s7 = smov [#allocation10 + $0x4]   ;;  %v575_v47 = vshrl.u32 %v574_v46, 7 }
  0xb8   :  { %527 = sst [smem:[#allocation31 + $0x3]] %s7417_s3  ;;  %s7433_s15 = smov [#allocation30]  }
  0xb9   :  { %529 = sst [smem:[#allocation31 + $0x4]] %s7422_s30  ;;  %v8011_v48 = vsub.s32 2, %v575_v47  ;;  %v8013_v49 = vsub.s32 3, %v575_v47  ;;  %v8015_v50 = vsub.s32 0, %v575_v47  ;;  %v8017_v52 = vsub.s32 1, %v575_v47  ;;  %s7434_s4 = smov [#allocation9]  }
  0xba   :  { %531 = sst [smem:[#allocation31 + $0x5]] %s7423_s1  ;;  %s548_s19 = sshll.u32 %s7434_s4, 4  ;;  %s549_s19 = int_to_ptr.vmem [resolvable:$true] %s548_s19 }
  0xbb   :  { %533 = sst [smem:[#allocation31 + $0x6]] %s7412_s18 }
  0xbc   :  { %535 = sst [smem:[#allocation31 + $0x7]] %s7417_s3 }
  0xbd   :  { %537 = sst [smem:[#allocation31 + $0x8]] %s7418_s25 }
  0xbe   :  { %539 = dma.general %s9595_s8, 4096, %s518_s13, %s7432_s7, %s7433_s15, [#allocation31], %s7618_s29, 0  }
  0xbf   :  { %v6676_v58 = vld [vmem:[#allocation11 + $0x4] ss:$16 sps:$4 sm:$0xff]   ;;  %v6678_v59 = vld [vmem:[#allocation11 + $0xc] ss:$16 sps:$4 sm:$0xff]   ;;  %v6680_v60 = vld [vmem:[#allocation11] ss:$16 sps:$4 sm:$0xff]  }
  0xc0   :  { %647 = vmatprep.subr.bf16.mxu0 %v6676_v58  ;;  %v6681_v61 = vld [vmem:[#allocation11 + $0x8] ss:$16 sps:$4 sm:$0xff]   ;;  %720 = vmatprep.subr.bf16.mxu1 %v6678_v59  ;;  %v6682_v62 = vld [vmem:[#allocation11 + $0x24] ss:$16 sps:$4 sm:$0xff]   ;;  %v6684_v63 = vld [vmem:[#allocation11 + $0x2c] ss:$16 sps:$4 sm:$0xff]  }
  0xc1   :  { %648 = vmatpush1.bf16.msra.mxu0 %v6680_v60  ;;  %721 = vmatpush1.bf16.msra.mxu1 %v6681_v61  ;;  %v6686_v0 = vld [vmem:[#allocation11 + $0x20] ss:$16 sps:$4 sm:$0xff]   ;;  %v6687_v1 = vld [vmem:[#allocation11 + $0x28] ss:$16 sps:$4 sm:$0xff]   ;;  %s9616_s25 = sld [smem:[#allocation70_spill]]  ;;  %9617 = vst [vmem:[#allocation44_spill] sm:$0xff] %v8011_v48 }
  0xc2   :  { %649 = vmatprep.subr.bf16.mxu0 %v6682_v62  ;;  %722 = vmatprep.subr.bf16.mxu1 %v6684_v63  ;;  %v7843_v4 = vld [vmem:[#allocation13] ss:$16 sps:$4 sm:$0xff]   ;;  %v7845_v6 = vld [vmem:[#allocation13 + $0x4] ss:$16 sps:$4 sm:$0xff]   ;;  %v7847_v7 = vld [vmem:[#allocation13 + $0x8] ss:$16 sps:$4 sm:$0xff]  }
  0xc3   :  { %v7849_v8 = vld [vmem:[#allocation13 + $0xc] ss:$16 sps:$4 sm:$0xff]   ;;  %v7852_v9 = vld [vmem:[#allocation13 + $0x24] ss:$16 sps:$4 sm:$0xff]   ;;  %v7855_v10 = vld [vmem:[#allocation13 + $0x20] ss:$16 sps:$4 sm:$0xff]  }
  0xc4   :  { %v7859_v11 = vld [vmem:[#allocation13 + $0x28] ss:$16 sps:$4 sm:$0xff]   ;;  %v7861_v12 = vld [vmem:[#allocation13 + $0x2c] ss:$16 sps:$4 sm:$0xff]   ;;  %v7873_v15 = vld [vmem:[#allocation13 + $0x44] ss:$16 sps:$4 sm:$0xff]  }
  0xc5   :  { %650 = vmatpush1.bf16.msra.mxu0 %v6686_v0  ;;  %723 = vmatpush1.bf16.msra.mxu1 %v6687_v1  ;;  %v7877_v16 = vld [vmem:[#allocation13 + $0x4c] ss:$16 sps:$4 sm:$0xff]   ;;  %v7879_v18 = vld [vmem:[#allocation13 + $0x40] ss:$16 sps:$4 sm:$0xff]   ;;  %v7883_v19 = vld [vmem:[#allocation13 + $0x48] ss:$16 sps:$4 sm:$0xff]  }
  0xc6   :  { %1021 = vmatprep.subr.bf16.mxu0 %v7845_v6  ;;  %1062 = vmatprep.subr.bf16.mxu1 %v7849_v8  ;;  %v7887_v20 = vld [vmem:[#allocation13 + $0x64] ss:$16 sps:$4 sm:$0xff]   ;;  %v7889_v21 = vld [vmem:[#allocation13 + $0x6c] ss:$16 sps:$4 sm:$0xff]   ;;  %v7891_v22 = vld [vmem:[#allocation13 + $0x60] ss:$16 sps:$4 sm:$0xff]  }
  0xc7   :  { %v552_v2 = vld [vmem:[%s9616_s25] sm:$0xff]  ;;  %v553_v3 = vld [vmem:[%s9616_s25 + $0x8] sm:$0xff]  ;;  %v554_v13 = vld [vmem:[%s9616_s25 + $0x10] sm:$0xff]  ;;  %9618 = vst [vmem:[#allocation45_spill] sm:$0xff] %v8013_v49  ;;  %s7368_s13 = scalar_lea.hbm %s9596_s9, 64 }
  0xc8   :  { %v560_v5 = vpack.c.bf16 %v553_v3, %v552_v2  ;;  %v555_v14 = vld [vmem:[%s9616_s25 + $0x18] sm:$0xff]  ;;  %v7895_v23 = vld [vmem:[#allocation13 + $0x68] ss:$16 sps:$4 sm:$0xff]   ;;  %v557_v25 = vld [vmem:[%s9616_s25 + $0x28] sm:$0xff]  ;;  %9619 = vst [vmem:[#allocation46_spill] sm:$0xff] %v8015_v50  ;;  %p7369_p0 = scmp.ne.s32.totalorder %s9596_s9, %s7368_s13  ;;  %p7372_p1 = scmp.lt.u32.totalorder %s7368_s13, %s9596_s9 }
  0xc9   :  { %v561_v17 = vpack.c.bf16 %v555_v14, %v554_v13  ;;  %v556_v24 = vld [vmem:[%s9616_s25 + $0x20] sm:$0xff]  ;;  %v7907_v26 = vld [vmem:[#allocation13 + $0x84] ss:$16 sps:$4 sm:$0xff]   ;;  %v7913_v29 = vld [vmem:[#allocation13 + $0x80] ss:$16 sps:$4 sm:$0xff]   ;;  %9620 = vst [vmem:[#allocation47_spill] sm:$0xff] %v8017_v52 }
  0xca   :  { %6244 = vmatmul.mubr.msk.bf16.vlgmr.msra.gmra.mrb[0].mxu0 %vm634_vm0, %v560_v5  ;;  %6248 = vmatmul.mubr.msk.bf16.vlgmr.msra.gmra.mrb[0].mxu1 %vm634_vm0, %v560_v5  ;;  %v7909_v27 = vld [vmem:[#allocation13 + $0x8c] ss:$16 sps:$4 sm:$0xff]   ;;  %v562_v28 = vpack.c.bf16 %v557_v25, %v556_v24  ;;  %v7915_v30 = vld [vmem:[#allocation13 + $0x88] ss:$16 sps:$4 sm:$0xff]   ;;  %v7919_v31 = vld [vmem:[#allocation13 + $0xa4] ss:$16 sps:$4 sm:$0xff]   ;;  %p7374_p2 = pnand %p7372_p1, %p7369_p0 }
  0xcb   :  { %1022 = vmatpush1.bf16.msra.mxu0 %v7843_v4  ;;  %1063 = vmatpush1.bf16.msra.mxu1 %v7847_v7  ;;  %v7923_v32 = vld [vmem:[#allocation13 + $0xac] ss:$16 sps:$4 sm:$0xff]   ;;  %v7925_v33 = vld [vmem:[#allocation13 + $0xa0] ss:$16 sps:$4 sm:$0xff]   ;;  %v7929_v34 = vld [vmem:[#allocation13 + $0xa8] ss:$16 sps:$4 sm:$0xff]  }
  0xcc   :  { %1023 = vmatprep.subr.bf16.mxu0 %v7852_v9  ;;  %1064 = vmatprep.subr.bf16.mxu1 %v7861_v12  ;;  %v558_v35 = vld [vmem:[%s9616_s25 + $0x30] sm:$0xff]  ;;  %v559_v36 = vld [vmem:[%s9616_s25 + $0x38] sm:$0xff]  ;;  %v572_v51 = vld [vmem:[#allocation15] sm:$0xf] }
  0xcd   :  { %689 = vmatprep.mubr.bf16.mxu0 %v9605_v57  ;;  %762 = vmatprep.mubr.bf16.mxu1 %v9605_v57  ;;  %v7941_v37 = vld [vmem:[#allocation13 + $0xc4] ss:$16 sps:$4 sm:$0xff]   ;;  %v7943_v38 = vld [vmem:[#allocation13 + $0xcc] ss:$16 sps:$4 sm:$0xff]   ;;  %v7947_v39 = vld [vmem:[#allocation13 + $0xc0] ss:$16 sps:$4 sm:$0xff]   ;;  %v563_v41 = vpack.c.bf16 %v559_v36, %v558_v35  ;;  %v8020_v53 = vrot.slane %v572_v51, %v8011_v48  ;;  %v8027_v56 = vrot.slane %v572_v51, %v8013_v49 }
  0xce   :  { %v7949_v40 = vld [vmem:[#allocation13 + $0xc8] ss:$16 sps:$4 sm:$0xff]   ;;  %v7951_v42 = vld [vmem:[#allocation13 + $0xe4] ss:$16 sps:$4 sm:$0xff]   ;;  %v7953_v43 = vld [vmem:[#allocation13 + $0xec] ss:$16 sps:$4 sm:$0xff]   ;;  %v577_v58 = vrot.slane %v572_v51, %v8015_v50  ;;  %v581_v61 = vrot.slane %v572_v51, %v8017_v52 }
  0xcf   :  { %1024 = vmatpush1.bf16.msra.mxu0 %v7855_v10  ;;  %1065 = vmatpush1.bf16.msra.mxu1 %v7859_v11  ;;  %v7959_v44 = vld [vmem:[#allocation13 + $0xe0] ss:$16 sps:$4 sm:$0xff]   ;;  %v7961_v45 = vld [vmem:[#allocation13 + $0xe8] ss:$16 sps:$4 sm:$0xff]  }
  0xd0   :  { %1025 = vmatprep.subr.bf16.mxu0 %v7873_v15  ;;  %1066 = vmatprep.subr.bf16.mxu1 %v7877_v16 }
  0xd2   :  { %6245 = vmatmul.mubr.msk.bf16.gmra.mrb[4].mxu0 %vm634_vm0, %v561_v17  ;;  %6249 = vmatmul.mubr.msk.bf16.gmra.mrb[4].mxu1 %vm634_vm0, %v561_v17 }
  0xd3   :  { %1026 = vmatpush1.bf16.msra.mxu0 %v7879_v18  ;;  %1067 = vmatpush1.bf16.msra.mxu1 %v7883_v19 }
  0xd4   :  { %1027 = vmatprep.subr.bf16.mxu0 %v7887_v20  ;;  %1068 = vmatprep.subr.bf16.mxu1 %v7889_v21 }
  0xd5   :  { %699 = vmatprep.mubr.bf16.mxu0 %v9605_v57  ;;  %772 = vmatprep.mubr.bf16.mxu1 %v9605_v57 }
  0xd7   :  { %1028 = vmatpush1.bf16.msra.mxu0 %v7891_v22  ;;  %1069 = vmatpush1.bf16.msra.mxu1 %v7895_v23 }
  0xd8   :  { %1029 = vmatprep.subr.bf16.mxu0 %v7907_v26  ;;  %1070 = vmatprep.subr.bf16.mxu1 %v7909_v27 }
  0xda   :  { %6246 = vmatmul.mubr.msk.bf16.gmra.mrb[8].mxu0 %vm634_vm0, %v562_v28  ;;  %6250 = vmatmul.mubr.msk.bf16.gmra.mrb[8].mxu1 %vm634_vm0, %v562_v28 }
  0xdb   :  { %1030 = vmatpush1.bf16.msra.mxu0 %v7913_v29  ;;  %1071 = vmatpush1.bf16.msra.mxu1 %v7915_v30 }
  0xdc   :  { %1031 = vmatprep.subr.bf16.mxu0 %v7919_v31  ;;  %1072 = vmatprep.subr.bf16.mxu1 %v7923_v32 }
  0xdd   :  { %709 = vmatprep.mubr.bf16.mxu0 %v9605_v57  ;;  %782 = vmatprep.mubr.bf16.mxu1 %v9605_v57 }
  0xdf   :  { %1032 = vmatpush1.bf16.msra.mxu0 %v7925_v33  ;;  %1073 = vmatpush1.bf16.msra.mxu1 %v7929_v34 }
  0xe0   :  { %1033 = vmatprep.subr.bf16.mxu0 %v7941_v37  ;;  %1074 = vmatprep.subr.bf16.mxu1 %v7943_v38 }
  0xe2   :  { %6247 = vmatmul.mubr.msk.bf16.gmra.mrb[12].mxu0 %vm634_vm0, %v563_v41  ;;  %6251 = vmatmul.mubr.msk.bf16.gmra.mrb[12].mxu1 %vm634_vm0, %v563_v41 }
  0xe3   :  { %1034 = vmatpush1.bf16.msra.mxu0 %v7947_v39  ;;  %1075 = vmatpush1.bf16.msra.mxu1 %v7949_v40 }
  0xe4   :  { %1035 = vmatprep.subr.bf16.mxu0 %v7951_v42  ;;  %1076 = vmatprep.subr.bf16.mxu1 %v7953_v43 }
  0xe5   :  { %1053 = vmatprep.mubr.bf16.mxu0 %v9605_v57  ;;  %1094 = vmatprep.mubr.bf16.mxu1 %v9605_v57 }
  0xe7   :  { %1036 = vmatpush1.bf16.msra.mxu0 %v7959_v44  ;;  %1077 = vmatpush1.bf16.msra.mxu1 %v7961_v45 }
  0xe8   :  { %1330 = vmatprep.subr.bf16.mxu0 %v7845_v6  ;;  %1371 = vmatprep.subr.bf16.mxu1 %v7849_v8 }
  0xea   :  { %1054 = vmatmul.mubr.bf16.vlgmr.msra.gmra.mrb[16].mxu0 %v9605_v57  ;;  %1095 = vmatmul.mubr.bf16.vlgmr.msra.gmra.mrb[16].mxu1 %v9605_v57 }
  0xeb   :  { %1331 = vmatpush1.bf16.msra.mxu0 %v7843_v4  ;;  %1372 = vmatpush1.bf16.msra.mxu1 %v7847_v7 }
  0xec   :  { %1332 = vmatprep.subr.bf16.mxu0 %v7852_v9  ;;  %1373 = vmatprep.subr.bf16.mxu1 %v7861_v12 }
  0xed   :  { %1362 = vmatprep.mubr.bf16.mxu0 %v9605_v57  ;;  %1403 = vmatprep.mubr.bf16.mxu1 %v9605_v57 }
  0xef   :  { %1333 = vmatpush1.bf16.msra.mxu0 %v7855_v10  ;;  %1374 = vmatpush1.bf16.msra.mxu1 %v7859_v11 }
  0xf0   :  { %1334 = vmatprep.subr.bf16.mxu0 %v7873_v15  ;;  %1375 = vmatprep.subr.bf16.mxu1 %v7877_v16 }
  0xf3   :  { %1335 = vmatpush1.bf16.msra.mxu0 %v7879_v18  ;;  %1376 = vmatpush1.bf16.msra.mxu1 %v7883_v19 }
  0xf4   :  { %1336 = vmatprep.subr.bf16.mxu0 %v7887_v20  ;;  %1377 = vmatprep.subr.bf16.mxu1 %v7889_v21 }
  0xf7   :  { %1337 = vmatpush1.bf16.msra.mxu0 %v7891_v22  ;;  %1378 = vmatpush1.bf16.msra.mxu1 %v7895_v23 }
  0xf8   :  { %1338 = vmatprep.subr.bf16.mxu0 %v7907_v26  ;;  %1379 = vmatprep.subr.bf16.mxu1 %v7909_v27 }
  0xfb   :  { %1339 = vmatpush1.bf16.msra.mxu0 %v7913_v29  ;;  %1380 = vmatpush1.bf16.msra.mxu1 %v7915_v30 }
  0xfc   :  { %1340 = vmatprep.subr.bf16.mxu0 %v7919_v31  ;;  %1381 = vmatprep.subr.bf16.mxu1 %v7923_v32 }
  0xff   :  { %1341 = vmatpush1.bf16.msra.mxu0 %v7925_v33  ;;  %1382 = vmatpush1.bf16.msra.mxu1 %v7929_v34 }
 0x100   :  { %1342 = vmatprep.subr.bf16.mxu0 %v7941_v37  ;;  %1383 = vmatprep.subr.bf16.mxu1 %v7943_v38 }
 0x103   :  { %1343 = vmatpush1.bf16.msra.mxu0 %v7947_v39  ;;  %1384 = vmatpush1.bf16.msra.mxu1 %v7949_v40 }
 0x104   :  { %1344 = vmatprep.subr.bf16.mxu0 %v7951_v42  ;;  %1385 = vmatprep.subr.bf16.mxu1 %v7953_v43 }
 0x107   :  { %1345 = vmatpush1.bf16.msra.mxu0 %v7959_v44  ;;  %1386 = vmatpush1.bf16.msra.mxu1 %v7961_v45 }
 0x108   :  { %1640 = vmatprep.subr.bf16.mxu0 %v7845_v6  ;;  %1681 = vmatprep.subr.bf16.mxu1 %v7849_v8 }
 0x19d   :  { %v8022_v54 = vpop.f32.mrb[0].mxu0  ;;  %v8024_v55 = vpop.f32.mrb[0].mxu1 }
 0x19e   :  { %v683_v59 = vpop.f32.mrb[1].mxu0  ;;  %v756_v60 = vpop.f32.mrb[1].mxu1 }
 0x19f   :  { %v685_v62 = vpop.f32.mrb[2].mxu0  ;;  %v758_v63 = vpop.f32.mrb[2].mxu1 }
 0x1a0   :  { %v8031_v0 = vadd.f32 %v685_v62, %v577_v58  ;;  %v687_v1 = vpop.f32.mrb[3].mxu0  ;;  %v8034_v2 = vadd.f32 %v758_v63, %v8020_v53  ;;  %v760_v3 = vpop.f32.mrb[3].mxu1 }
 0x1a1   :  { %v8036_v5 = vadd.f32 %v687_v1, %v581_v61  ;;  %v8039_v13 = vadd.f32 %v760_v3, %v8027_v56 }
 0x1a5   :  { %v691_v14 = vpop.f32.mrb[4].mxu0  ;;  %v764_v17 = vpop.f32.mrb[4].mxu1 }
 0x1a6   :  { %v8041_v24 = vadd.f32 %v691_v14, %v577_v58  ;;  %v693_v25 = vpop.f32.mrb[5].mxu0  ;;  %v8044_v28 = vadd.f32 %v764_v17, %v8020_v53  ;;  %v766_v35 = vpop.f32.mrb[5].mxu1 }
 0x1a7   :  { %v8046_v36 = vadd.f32 %v693_v25, %v581_v61  ;;  %v695_v41 = vpop.f32.mrb[6].mxu0  ;;  %v8049_v46 = vadd.f32 %v766_v35, %v8027_v56  ;;  %v768_v47 = vpop.f32.mrb[6].mxu1 }
 0x1a8   :  { %v8051_v51 = vadd.f32 %v695_v41, %v577_v58  ;;  %v697_v62 = vpop.f32.mrb[7].mxu0  ;;  %v8054_v63 = vadd.f32 %v768_v47, %v8020_v53  ;;  %v770_v1 = vpop.f32.mrb[7].mxu1 }
 0x1a9   :  { %9621 = vst [vmem:[#allocation48_spill] sm:$0xff] %v8049_v46  ;;  %v8056_v3 = vadd.f32 %v697_v62, %v581_v61  ;;  %v8059_v14 = vadd.f32 %v770_v1, %v8027_v56 }
 0x1aa   :  { %9622 = vst [vmem:[#allocation49_spill] sm:$0xff] %v8051_v51  ;;  %9623 = vst [vmem:[#allocation50_spill] sm:$0xff] %v8054_v63 }
 0x1ab   :  { %9624 = vst [vmem:[#allocation51_spill] sm:$0xff] %v8056_v3  ;;  %9625 = vst [vmem:[#allocation52_spill] sm:$0xff] %v8059_v14 }
 0x1ad   :  { %v701_v17 = vpop.f32.mrb[8].mxu0  ;;  %v774_v25 = vpop.f32.mrb[8].mxu1 }
 0x1ae   :  { %v8061_v57 = vadd.f32 %v701_v17, %v577_v58  ;;  %v703_v52 = vpop.f32.mrb[9].mxu0  ;;  %v8064_v35 = vadd.f32 %v774_v25, %v8020_v53  ;;  %v776_v41 = vpop.f32.mrb[9].mxu1 }
 0x1af   :  { %v8066_v50 = vadd.f32 %v703_v52, %v581_v61  ;;  %v705_v49 = vpop.f32.mrb[10].mxu0  ;;  %v8069_v47 = vadd.f32 %v776_v41, %v8027_v56  ;;  %v778_v62 = vpop.f32.mrb[10].mxu1 }
 0x1b0   :  { %9626 = vst [vmem:[#allocation53_spill] sm:$0xff] %v8061_v57  ;;  %9627 = vst [vmem:[#allocation54_spill] sm:$0xff] %v8064_v35  ;;  %v8071_v48 = vadd.f32 %v705_v49, %v577_v58  ;;  %v707_v1 = vpop.f32.mrb[11].mxu0  ;;  %v8074_v14 = vadd.f32 %v778_v62, %v8020_v53  ;;  %v780_v17 = vpop.f32.mrb[11].mxu1 }
 0x1b1   :  { %9628 = vst [vmem:[#allocation55_spill] sm:$0xff] %v8066_v50  ;;  %9629 = vst [vmem:[#allocation56_spill] sm:$0xff] %v8069_v47  ;;  %v8076_v57 = vadd.f32 %v707_v1, %v581_v61  ;;  %v8079_v25 = vadd.f32 %v780_v17, %v8027_v56 }
 0x1b2   :  { %9630 = vst [vmem:[#allocation57_spill] sm:$0xff] %v8071_v48  ;;  %9631 = vst [vmem:[#allocation58_spill] sm:$0xff] %v8074_v14 }
 0x1b3   :  { %9632 = vst [vmem:[#allocation59_spill] sm:$0xff] %v8076_v57  ;;  %9633 = vst [vmem:[#allocation60_spill] sm:$0xff] %v8079_v25 }
 0x1b5   :  { %v711_v35 = vpop.f32.mrb[12].mxu0  ;;  %v784_v52 = vpop.f32.mrb[12].mxu1 }
 0x1b6   :  { %v8081_v50 = vadd.f32 %v711_v35, %v577_v58  ;;  %v713_v3 = vpop.f32.mrb[13].mxu0  ;;  %v8084_v41 = vadd.f32 %v784_v52, %v8020_v53  ;;  %v786_v49 = vpop.f32.mrb[13].mxu1 }
 0x1b7   :  { %v8086_v48 = vadd.f32 %v713_v3, %v581_v61  ;;  %v715_v47 = vpop.f32.mrb[14].mxu0  ;;  %v8089_v62 = vadd.f32 %v786_v49, %v8027_v56  ;;  %v788_v1 = vpop.f32.mrb[14].mxu1  ;;  %v682_v3 = vadd.f32 %v8022_v54, %v577_v58  ;;  %v684_v49 = vadd.f32 %v683_v59, %v581_v61 }
 0x1b8   :  { %9634 = vst [vmem:[#allocation61_spill] sm:$0xff] %v8081_v50  ;;  %9635 = vst [vmem:[#allocation62_spill] sm:$0xff] %v8084_v41  ;;  %v8091_v57 = vadd.f32 %v715_v47, %v577_v58  ;;  %v717_v17 = vpop.f32.mrb[15].mxu0  ;;  %v8094_v25 = vadd.f32 %v788_v1, %v8020_v53  ;;  %v790_v35 = vpop.f32.mrb[15].mxu1 }
 0x1b9   :  { %9636 = vst [vmem:[#allocation63_spill] sm:$0xff] %v8086_v48  ;;  %9637 = vst [vmem:[#allocation64_spill] sm:$0xff] %v8089_v62  ;;  %v8096_v50 = vadd.f32 %v717_v17, %v581_v61  ;;  %v8099_v52 = vadd.f32 %v790_v35, %v8027_v56  ;;  %v755_v48 = vadd.f32 %v8024_v55, %v8020_v53 }
 0x1ba   :  { %9638 = vst [vmem:[#allocation65_spill] sm:$0xff] %v8091_v57  ;;  %9639 = vst [vmem:[#allocation66_spill] sm:$0xff] %v8094_v25  ;;  %v757_v62 = vadd.f32 %v756_v60, %v8027_v56 }
 0x1bb   :  { %9640 = vst [vmem:[#allocation67_spill] sm:$0xff] %v8096_v50  ;;  %9641 = vst [vmem:[#allocation68_spill] sm:$0xff] %v8099_v52 }
 0x1bd   :  { %v1055_v47 = vpop.f32.mrb[16].mxu0  ;;  %v1096_v57 = vpop.f32.mrb[16].mxu1 }
 0x1be   :  { %v1103_v41 = vadd.f32 %v1055_v47, %v682_v3  ;;  %v1105_v14 = vadd.f32 %v1096_v57, %v755_v48  ;;  %v1057_v1 = vpop.f32.mrb[17].mxu0  ;;  %v1098_v25 = vpop.f32.mrb[17].mxu1 }
 0x1bf   :  { %v1104_v63 = vadd.f32 %v1057_v1, %v684_v49  ;;  %v1106_v17 = vadd.f32 %v1098_v25, %v757_v62  ;;  %v1059_v50 = vpop.f32.mrb[18].mxu0  ;;  %v1100_v51 = vpop.f32.mrb[18].mxu1 }
 0x1c0   :  { %v6284_v35 = vmul.f32 -1.442695, %v1103_v41  ;;  %v1060_v52 = vpop.f32.mrb[19].mxu0  ;;  %v1101_v46 = vpop.f32.mrb[19].mxu1  ;;  %v6286_v53 = vmul.f32 -1.442695, %v1105_v14 }
 0x1c1   :  { %v6285_v54 = vmul.f32 -1.442695, %v1104_v63  ;;  %v9642_v52 = vmov 0  }
 0x1c2   :  { %6784 = vpow2.f32 %v6284_v35 }
 0x1c3   :  { %6786 = vpow2.f32 %v6285_v54 }
 0x1c4   :  { %6788 = vtanh.f32 %v1106_v17 }
 0x1c5   :  { %6790 = vpow2.f32 %v6286_v53 }
 0x1cc   :  { %v6785_v55 = vpop.eup %6784 }
 0x1cd   :  { %v1116_v58 = vadd.f32 1.0, %v6785_v55  ;;  %v6787_v56 = vpop.eup %6786 }
 0x1ce   :  { %v1117_v57 = vadd.f32 1.0, %v6787_v56  ;;  %v6789_v48 = vpop.eup %6788 }
 0x1cf   :  { %6792 = vrcp.f32 %v1116_v58  ;;  %v6791_v59 = vpop.eup %6790 }
 0x1d0   :  { %6794 = vrcp.f32 %v1117_v57  ;;  %v1118_v51 = vadd.f32 1.0, %v6791_v59 }
 0x1d2   :  { %6796 = vrcp.f32 %v1118_v51 }
 0x1d9   :  { %v6793_v60 = vpop.eup %6792 }
 0x1da   :  { %v1127_v50 = vmul.f32 %v6793_v60, %v6789_v48  ;;  %v6795_v61 = vpop.eup %6794 }
 0x1db   :  { %v1126_v25 = vmul.f32 0.0, %v6795_v61 }
 0x1dc   :  { %v6797_v63 = vpop.eup %6796 }
 0x1dd   :  { %v8105_v46 = vadd.f32 %v1127_v50, %v1126_v25 }
 0x1df   :  { %6798 = vtanh.f32 %v8105_v46 }
 0x1e9   :  { %v6799_v14 = vpop.eup %6798 }
 0x1ea   :  { %v8108_v41 = vmul.f32 %v6799_v14, %v6797_v63 }
 0x1ec   :  { %v1137_v62 = vpack.c.bf16 %v8108_v41, %v8108_v41 }
 0x1ee   :  { %1363 = vmatmul.mubr.bf16.vlgmr.msra.gmra.mrb[20].mxu0 %v1137_v62  ;;  %1404 = vmatmul.mubr.bf16.vlgmr.msra.gmra.mrb[20].mxu1 %v1137_v62 }
 0x1ef   :  { %1641 = vmatpush1.bf16.msra.mxu0 %v7843_v4  ;;  %1682 = vmatpush1.bf16.msra.mxu1 %v7847_v7 }
 0x1f0   :  { %1642 = vmatprep.subr.bf16.mxu0 %v7852_v9  ;;  %1683 = vmatprep.subr.bf16.mxu1 %v7861_v12 }
 0x1f1   :  { %1672 = vmatprep.mubr.bf16.mxu0 %v9642_v52  ;;  %1713 = vmatprep.mubr.bf16.mxu1 %v9642_v52 }
 0x1f3   :  { %1643 = vmatpush1.bf16.msra.mxu0 %v7855_v10  ;;  %1684 = vmatpush1.bf16.msra.mxu1 %v7859_v11 }
 0x1f4   :  { %1644 = vmatprep.subr.bf16.mxu0 %v7873_v15  ;;  %1685 = vmatprep.subr.bf16.mxu1 %v7877_v16 }
 0x1f7   :  { %1645 = vmatpush1.bf16.msra.mxu0 %v7879_v18  ;;  %1686 = vmatpush1.bf16.msra.mxu1 %v7883_v19 }
 0x1f8   :  { %1646 = vmatprep.subr.bf16.mxu0 %v7887_v20  ;;  %1687 = vmatprep.subr.bf16.mxu1 %v7889_v21 }
 0x1fb   :  { %1647 = vmatpush1.bf16.msra.mxu0 %v7891_v22  ;;  %1688 = vmatpush1.bf16.msra.mxu1 %v7895_v23 }
 0x1fc   :  { %1648 = vmatprep.subr.bf16.mxu0 %v7907_v26  ;;  %1689 = vmatprep.subr.bf16.mxu1 %v7909_v27 }
 0x1ff   :  { %1649 = vmatpush1.bf16.msra.mxu0 %v7913_v29  ;;  %1690 = vmatpush1.bf16.msra.mxu1 %v7915_v30 }
 0x200   :  { %1650 = vmatprep.subr.bf16.mxu0 %v7919_v31  ;;  %1691 = vmatprep.subr.bf16.mxu1 %v7923_v32 }
 0x203   :  { %1651 = vmatpush1.bf16.msra.mxu0 %v7925_v33  ;;  %1692 = vmatpush1.bf16.msra.mxu1 %v7929_v34 }
 0x204   :  { %1652 = vmatprep.subr.bf16.mxu0 %v7941_v37  ;;  %1693 = vmatprep.subr.bf16.mxu1 %v7943_v38 }
 0x207   :  { %1653 = vmatpush1.bf16.msra.mxu0 %v7947_v39  ;;  %1694 = vmatpush1.bf16.msra.mxu1 %v7949_v40 }
 0x208   :  { %1654 = vmatprep.subr.bf16.mxu0 %v7951_v42  ;;  %1695 = vmatprep.subr.bf16.mxu1 %v7953_v43 }
 0x20b   :  { %1655 = vmatpush1.bf16.msra.mxu0 %v7959_v44  ;;  %1696 = vmatpush1.bf16.msra.mxu1 %v7961_v45 }
 0x20c   :  { %1950 = vmatprep.subr.bf16.mxu0 %v7845_v6  ;;  %1991 = vmatprep.subr.bf16.mxu1 %v7849_v8 }
 0x2c1   :  { %v1364_v3 = vpop.f32.mrb[20].mxu0  ;;  %v1405_v49 = vpop.f32.mrb[20].mxu1 }
 0x2c2   :  { %v1412_v47 = vadd.f32 %v1364_v3, %v8031_v0  ;;  %v1414_v1 = vadd.f32 %v1405_v49, %v8034_v2  ;;  %v1366_v17 = vpop.f32.mrb[21].mxu0  ;;  %v1407_v35 = vpop.f32.mrb[21].mxu1 }
 0x2c3   :  { %v1413_v54 = vadd.f32 %v1366_v17, %v8036_v5  ;;  %v1415_v53 = vadd.f32 %v1407_v35, %v8039_v13  ;;  %v1368_v55 = vpop.f32.mrb[22].mxu0  ;;  %v1409_v58 = vpop.f32.mrb[22].mxu1  ;;  %v8209_v17 = vld [vmem:[#allocation13 + $0x8] ss:$16 sps:$4 sm:$0xff]   ;;  %v8215_v35 = vld [vmem:[#allocation13 + $0x24] ss:$16 sps:$4 sm:$0xff]  }
 0x2c4   :  { %v6319_v56 = vmul.f32 -1.442695, %v1412_v47  ;;  %v1369_v57 = vpop.f32.mrb[23].mxu0  ;;  %v1410_v48 = vpop.f32.mrb[23].mxu1  ;;  %v6321_v8 = vmul.f32 -1.442695, %v1414_v1 }
 0x2c5   :  { %v6320_v6 = vmul.f32 -1.442695, %v1413_v54  ;;  %v8217_v54 = vld [vmem:[#allocation13 + $0x2c] ss:$16 sps:$4 sm:$0xff]   ;;  %v8221_v55 = vld [vmem:[#allocation13 + $0x28] ss:$16 sps:$4 sm:$0xff]  }
 0x2c6   :  { %6800 = vpow2.f32 %v6319_v56  ;;  %v8227_v58 = vld [vmem:[#allocation13 + $0x44] ss:$16 sps:$4 sm:$0xff]   ;;  %v8229_v56 = vld [vmem:[#allocation13 + $0x4c] ss:$16 sps:$4 sm:$0xff]   ;;  %v8231_v57 = vld [vmem:[#allocation13 + $0x40] ss:$16 sps:$4 sm:$0xff]  }
 0x2c7   :  { %6802 = vpow2.f32 %v6320_v6  ;;  %v8233_v48 = vld [vmem:[#allocation13 + $0x48] ss:$16 sps:$4 sm:$0xff]   ;;  %v8239_v6 = vld [vmem:[#allocation13 + $0x64] ss:$16 sps:$4 sm:$0xff]  }
 0x2c8   :  { %6804 = vtanh.f32 %v1415_v53  ;;  %v8219_v53 = vld [vmem:[#allocation13 + $0x20] ss:$16 sps:$4 sm:$0xff]  }
 0x2c9   :  { %6806 = vpow2.f32 %v6321_v8  ;;  %v8241_v8 = vld [vmem:[#allocation13 + $0x6c] ss:$16 sps:$4 sm:$0xff]  }
 0x2d0   :  { %v6801_v59 = vpop.eup %6800 }
 0x2d1   :  { %v1425_v60 = vadd.f32 1.0, %v6801_v59  ;;  %v6803_v0 = vpop.eup %6802  ;;  %v8243_v59 = vld [vmem:[#allocation13 + $0x60] ss:$16 sps:$4 sm:$0xff]  }
 0x2d2   :  { %v1426_v2 = vadd.f32 1.0, %v6803_v0  ;;  %v6805_v5 = vpop.eup %6804  ;;  %v8251_v0 = vld [vmem:[#allocation13 + $0x84] ss:$16 sps:$4 sm:$0xff]  }
 0x2d3   :  { %6808 = vrcp.f32 %v1425_v60  ;;  %v6807_v50 = vpop.eup %6806  ;;  %v8245_v60 = vld [vmem:[#allocation13 + $0x68] ss:$16 sps:$4 sm:$0xff]  }
 0x2d4   :  { %6810 = vrcp.f32 %v1426_v2  ;;  %v1427_v25 = vadd.f32 1.0, %v6807_v50  ;;  %v8253_v2 = vld [vmem:[#allocation13 + $0x8c] ss:$16 sps:$4 sm:$0xff]   ;;  %v8257_v50 = vld [vmem:[#allocation13 + $0x88] ss:$16 sps:$4 sm:$0xff]  }
 0x2d6   :  { %6812 = vrcp.f32 %v1427_v25  ;;  %v8269_v25 = vld [vmem:[#allocation13 + $0xac] ss:$16 sps:$4 sm:$0xff]  }
 0x2dd   :  { %v6809_v13 = vpop.eup %6808 }
 0x2de   :  { %v1436_v61 = vmul.f32 %v6809_v13, %v6805_v5  ;;  %v6811_v51 = vpop.eup %6810  ;;  %v8255_v5 = vld [vmem:[#allocation13 + $0x80] ss:$16 sps:$4 sm:$0xff]  }
 0x2df   :  { %v1435_v63 = vmul.f32 %v6811_v51, %v8105_v46  ;;  %v8205_v46 = vld [vmem:[#allocation13 + $0xc] ss:$16 sps:$4 sm:$0xff]   ;;  %v8263_v13 = vld [vmem:[#allocation13 + $0xa0] ss:$16 sps:$4 sm:$0xff]   ;;  %v8267_v51 = vld [vmem:[#allocation13 + $0xa8] ss:$16 sps:$4 sm:$0xff]  }
 0x2e0   :  { %v6813_v62 = vpop.eup %6812 }
 0x2e1   :  { %v8151_v14 = vadd.f32 %v1436_v61, %v1435_v63  ;;  %v8265_v61 = vld [vmem:[#allocation13 + $0xa4] ss:$16 sps:$4 sm:$0xff]  }
 0x2e2   :  { %v8271_v63 = vld [vmem:[#allocation13 + $0xc4] ss:$16 sps:$4 sm:$0xff]  }
 0x2e3   :  { %6814 = vtanh.f32 %v8151_v14 }
 0x2ed   :  { %v6815_v3 = vpop.eup %6814 }
 0x2ee   :  { %v1439_v49 = vmul.f32 %v6815_v3, %v6813_v62  ;;  %v8279_v62 = vld [vmem:[#allocation13 + $0xc0] ss:$16 sps:$4 sm:$0xff]   ;;  %v8281_v3 = vld [vmem:[#allocation13 + $0xc8] ss:$16 sps:$4 sm:$0xff]  }
 0x2f0   :  { %v1447_v47 = vpack.c.bf16 %v1439_v49, %v1439_v49  ;;  %v8155_v1 = vpack.c.bf16 %v1439_v49, %v8108_v41  ;;  %v8207_v41 = vld [vmem:[#allocation13] ss:$16 sps:$4 sm:$0xff]   ;;  %v8285_v49 = vld [vmem:[#allocation13 + $0xe4] ss:$16 sps:$4 sm:$0xff]  }
 0x2f2   :  { %1673 = vmatmul.mubr.bf16.vlgmr.msra.gmra.mrb[24].mxu0 %v1447_v47  ;;  %1714 = vmatmul.mubr.bf16.vlgmr.msra.gmra.mrb[24].mxu1 %v1447_v47  ;;  %v8287_v47 = vld [vmem:[#allocation13 + $0xec] ss:$16 sps:$4 sm:$0xff]  }
 0x2f3   :  { %1951 = vmatpush1.bf16.msra.mxu0 %v7843_v4  ;;  %1992 = vmatpush1.bf16.msra.mxu1 %v7847_v7 }
 0x2f4   :  { %1952 = vmatprep.subr.bf16.mxu0 %v7852_v9  ;;  %1993 = vmatprep.subr.bf16.mxu1 %v7861_v12 }
 0x2f5   :  { %1982 = vmatprep.mubr.bf16.mxu0 %v9642_v52  ;;  %2023 = vmatprep.mubr.bf16.mxu1 %v9642_v52 }
 0x2f7   :  { %1953 = vmatpush1.bf16.msra.mxu0 %v7855_v10  ;;  %1994 = vmatpush1.bf16.msra.mxu1 %v7859_v11 }
 0x2f8   :  { %1954 = vmatprep.subr.bf16.mxu0 %v7873_v15  ;;  %1995 = vmatprep.subr.bf16.mxu1 %v7877_v16  ;;  %v9643_v16 = vld [vmem:[#allocation48_spill] sm:$0xff] }
 0x2fb   :  { %1955 = vmatpush1.bf16.msra.mxu0 %v7879_v18  ;;  %1996 = vmatpush1.bf16.msra.mxu1 %v7883_v19 }
 0x2fc   :  { %1956 = vmatprep.subr.bf16.mxu0 %v7887_v20  ;;  %1997 = vmatprep.subr.bf16.mxu1 %v7889_v21 }
 0x2ff   :  { %1957 = vmatpush1.bf16.msra.mxu0 %v7891_v22  ;;  %1998 = vmatpush1.bf16.msra.mxu1 %v7895_v23 }
 0x300   :  { %1958 = vmatprep.subr.bf16.mxu0 %v7907_v26  ;;  %1999 = vmatprep.subr.bf16.mxu1 %v7909_v27 }
 0x303   :  { %1959 = vmatpush1.bf16.msra.mxu0 %v7913_v29  ;;  %2000 = vmatpush1.bf16.msra.mxu1 %v7915_v30 }
 0x304   :  { %1960 = vmatprep.subr.bf16.mxu0 %v7919_v31  ;;  %2001 = vmatprep.subr.bf16.mxu1 %v7923_v32 }
 0x307   :  { %1961 = vmatpush1.bf16.msra.mxu0 %v7925_v33  ;;  %2002 = vmatpush1.bf16.msra.mxu1 %v7929_v34 }
 0x308   :  { %1962 = vmatprep.subr.bf16.mxu0 %v7941_v37  ;;  %2003 = vmatprep.subr.bf16.mxu1 %v7943_v38 }
 0x30b   :  { %1963 = vmatpush1.bf16.msra.mxu0 %v7947_v39  ;;  %2004 = vmatpush1.bf16.msra.mxu1 %v7949_v40 }
 0x30c   :  { %1964 = vmatprep.subr.bf16.mxu0 %v7951_v42  ;;  %2005 = vmatprep.subr.bf16.mxu1 %v7953_v43 }
 0x30f   :  { %1965 = vmatpush1.bf16.msra.mxu0 %v7959_v44  ;;  %2006 = vmatpush1.bf16.msra.mxu1 %v7961_v45 }
 0x310   :  { %2301 = vmatprep.subr.bf16.mxu1 %v8205_v46 }
 0x3c5   :  { %v1674_v4 = vpop.f32.mrb[24].mxu0  ;;  %v1715_v7 = vpop.f32.mrb[24].mxu1 }
 0x3c6   :  { %v1722_v9 = vadd.f32 %v1674_v4, %v8041_v24  ;;  %v1724_v10 = vadd.f32 %v1715_v7, %v8044_v28  ;;  %v1676_v11 = vpop.f32.mrb[25].mxu0  ;;  %v1717_v12 = vpop.f32.mrb[25].mxu1  ;;  %v8291_v4 = vld [vmem:[#allocation13 + $0xe0] ss:$16 sps:$4 sm:$0xff]   ;;  %v8293_v7 = vld [vmem:[#allocation13 + $0xe8] ss:$16 sps:$4 sm:$0xff]  }
 0x3c7   :  { %v1723_v15 = vadd.f32 %v1676_v11, %v8046_v36  ;;  %v1725_v18 = vadd.f32 %v1717_v12, %v9643_v16  ;;  %v1678_v19 = vpop.f32.mrb[26].mxu0  ;;  %v1719_v20 = vpop.f32.mrb[26].mxu1  ;;  %v8203_v36 = vld [vmem:[#allocation13 + $0x4] ss:$16 sps:$4 sm:$0xff]  }
 0x3c8   :  { %v6354_v21 = vmul.f32 -1.442695, %v1722_v9  ;;  %v1679_v22 = vpop.f32.mrb[27].mxu0  ;;  %v1720_v23 = vpop.f32.mrb[27].mxu1  ;;  %v6356_v27 = vmul.f32 -1.442695, %v1724_v10  ;;  %2260 = vmatprep.subr.bf16.mxu0 %v8203_v36 }
 0x3c9   :  { %v6355_v26 = vmul.f32 -1.442695, %v1723_v15  ;;  %v9644_v11 = vld [vmem:[#allocation49_spill] sm:$0xff]  ;;  %v9645_v15 = vld [vmem:[#allocation50_spill] sm:$0xff]  ;;  %v9646_v20 = vld [vmem:[#allocation51_spill] sm:$0xff] }
 0x3ca   :  { %6816 = vpow2.f32 %v6354_v21  ;;  %v9647_v22 = vld [vmem:[#allocation52_spill] sm:$0xff] }
 0x3cb   :  { %6818 = vpow2.f32 %v6355_v26 }
 0x3cc   :  { %6820 = vtanh.f32 %v1725_v18 }
 0x3cd   :  { %6822 = vpow2.f32 %v6356_v27 }
 0x3d4   :  { %v6817_v29 = vpop.eup %6816 }
 0x3d5   :  { %v1735_v30 = vadd.f32 1.0, %v6817_v29  ;;  %v6819_v31 = vpop.eup %6818 }
 0x3d6   :  { %v1736_v32 = vadd.f32 1.0, %v6819_v31  ;;  %v6821_v33 = vpop.eup %6820 }
 0x3d7   :  { %6824 = vrcp.f32 %v1735_v30  ;;  %v6823_v34 = vpop.eup %6822 }
 0x3d8   :  { %6826 = vrcp.f32 %v1736_v32  ;;  %v1737_v40 = vadd.f32 1.0, %v6823_v34 }
 0x3da   :  { %6828 = vrcp.f32 %v1737_v40 }
 0x3e1   :  { %v6825_v37 = vpop.eup %6824 }
 0x3e2   :  { %v1746_v38 = vmul.f32 %v6825_v37, %v6821_v33  ;;  %v6827_v39 = vpop.eup %6826 }
 0x3e3   :  { %v1745_v42 = vmul.f32 %v6827_v39, %v8151_v14  ;;  %v8274_v14 = vld [vmem:[#allocation13 + $0xcc] ss:$16 sps:$4 sm:$0xff]  }
 0x3e4   :  { %v6829_v44 = vpop.eup %6828 }
 0x3e5   :  { %v8194_v43 = vadd.f32 %v1746_v38, %v1745_v42 }
 0x3e7   :  { %6830 = vtanh.f32 %v8194_v43 }
 0x3f1   :  { %v6831_v45 = vpop.eup %6830 }
 0x3f2   :  { %v8197_v24 = vmul.f32 %v6831_v45, %v6829_v44 }
 0x3f4   :  { %v1757_v28 = vpack.c.bf16 %v8197_v24, %v8197_v24 }
 0x3f6   :  { %1983 = vmatmul.mubr.bf16.vlgmr.msra.gmra.mrb[28].mxu0 %v1757_v28  ;;  %2024 = vmatmul.mubr.bf16.vlgmr.msra.gmra.mrb[28].mxu1 %v1757_v28 }
 0x3f7   :  { %2292 = vmatprep.mubr.bf16.mxu0 %v9642_v52  ;;  %2333 = vmatprep.mubr.bf16.mxu1 %v9642_v52 }
 0x3f8   :  { %2261 = vmatpush1.bf16.msra.mxu0 %v8207_v41  ;;  %2302 = vmatpush1.bf16.msra.mxu1 %v8209_v17 }
 0x3f9   :  { %2262 = vmatprep.subr.bf16.mxu0 %v8215_v35  ;;  %2303 = vmatprep.subr.bf16.mxu1 %v8217_v54 }
 0x3fc   :  { %2263 = vmatpush1.bf16.msra.mxu0 %v8219_v53  ;;  %2304 = vmatpush1.bf16.msra.mxu1 %v8221_v55 }
 0x3fd   :  { %2264 = vmatprep.subr.bf16.mxu0 %v8227_v58  ;;  %2305 = vmatprep.subr.bf16.mxu1 %v8229_v56 }
 0x400   :  { %2265 = vmatpush1.bf16.msra.mxu0 %v8231_v57  ;;  %2306 = vmatpush1.bf16.msra.mxu1 %v8233_v48 }
 0x401   :  { %2266 = vmatprep.subr.bf16.mxu0 %v8239_v6  ;;  %2307 = vmatprep.subr.bf16.mxu1 %v8241_v8 }
 0x404   :  { %2267 = vmatpush1.bf16.msra.mxu0 %v8243_v59  ;;  %2308 = vmatpush1.bf16.msra.mxu1 %v8245_v60 }
 0x405   :  { %2268 = vmatprep.subr.bf16.mxu0 %v8251_v0  ;;  %2309 = vmatprep.subr.bf16.mxu1 %v8253_v2 }
 0x408   :  { %2269 = vmatpush1.bf16.msra.mxu0 %v8255_v5  ;;  %2310 = vmatpush1.bf16.msra.mxu1 %v8257_v50 }
 0x409   :  { %2270 = vmatprep.subr.bf16.mxu0 %v8265_v61  ;;  %2311 = vmatprep.subr.bf16.mxu1 %v8269_v25 }
 0x40c   :  { %2271 = vmatpush1.bf16.msra.mxu0 %v8263_v13  ;;  %2312 = vmatpush1.bf16.msra.mxu1 %v8267_v51 }
 0x40d   :  { %2272 = vmatprep.subr.bf16.mxu0 %v8271_v63  ;;  %2313 = vmatprep.subr.bf16.mxu1 %v8274_v14 }
 0x410   :  { %2273 = vmatpush1.bf16.msra.mxu0 %v8279_v62  ;;  %2314 = vmatpush1.bf16.msra.mxu1 %v8281_v3 }
 0x411   :  { %2274 = vmatprep.subr.bf16.mxu0 %v8285_v49  ;;  %2315 = vmatprep.subr.bf16.mxu1 %v8287_v47 }
 0x414   :  { %2275 = vmatpush1.bf16.msra.mxu0 %v8291_v4  ;;  %2316 = vmatpush1.bf16.msra.mxu1 %v8293_v7 }
 0x415   :  { %2570 = vmatprep.subr.bf16.mxu0 %v8203_v36  ;;  %2611 = vmatprep.subr.bf16.mxu1 %v8205_v46 }
 0x4c9   :  { %v1984_v9 = vpop.f32.mrb[28].mxu0  ;;  %v2025_v10 = vpop.f32.mrb[28].mxu1 }
 0x4ca   :  { %v2032_v12 = vadd.f32 %v1984_v9, %v9644_v11  ;;  %v2034_v16 = vadd.f32 %v2025_v10, %v9645_v15  ;;  %v1986_v18 = vpop.f32.mrb[29].mxu0  ;;  %v2027_v19 = vpop.f32.mrb[29].mxu1 }
 0x4cb   :  { %v2033_v21 = vadd.f32 %v1986_v18, %v9646_v20  ;;  %v2035_v23 = vadd.f32 %v2027_v19, %v9647_v22  ;;  %v1988_v26 = vpop.f32.mrb[30].mxu0  ;;  %v2029_v27 = vpop.f32.mrb[30].mxu1  ;;  %v9648_v20 = vld [vmem:[#allocation53_spill] sm:$0xff]  ;;  %v9649_v22 = vld [vmem:[#allocation54_spill] sm:$0xff] }
 0x4cc   :  { %v6389_v29 = vmul.f32 -1.442695, %v2032_v12  ;;  %v1989_v30 = vpop.f32.mrb[31].mxu0  ;;  %v2030_v31 = vpop.f32.mrb[31].mxu1  ;;  %v6391_v33 = vmul.f32 -1.442695, %v2034_v16 }
 0x4cd   :  { %v6390_v32 = vmul.f32 -1.442695, %v2033_v21  ;;  %v9651_v31 = vld [vmem:[#allocation56_spill] sm:$0xff] }
 0x4ce   :  { %6832 = vpow2.f32 %v6389_v29  ;;  %v9650_v29 = vld [vmem:[#allocation55_spill] sm:$0xff] }
 0x4cf   :  { %6834 = vpow2.f32 %v6390_v32 }
 0x4d0   :  { %6836 = vtanh.f32 %v2035_v23 }
 0x4d1   :  { %6838 = vpow2.f32 %v6391_v33 }
 0x4d8   :  { %v6833_v34 = vpop.eup %6832 }
 0x4d9   :  { %v2045_v37 = vadd.f32 1.0, %v6833_v34  ;;  %v6835_v38 = vpop.eup %6834 }
 0x4da   :  { %v2046_v39 = vadd.f32 1.0, %v6835_v38  ;;  %v6837_v40 = vpop.eup %6836 }
 0x4db   :  { %6840 = vrcp.f32 %v2045_v37  ;;  %v6839_v42 = vpop.eup %6838 }
 0x4dc   :  { %6842 = vrcp.f32 %v2046_v39  ;;  %v2047_v9 = vadd.f32 1.0, %v6839_v42 }
 0x4de   :  { %6844 = vrcp.f32 %v2047_v9 }
 0x4e5   :  { %v6841_v44 = vpop.eup %6840 }
 0x4e6   :  { %v2056_v45 = vmul.f32 %v6841_v44, %v6837_v40  ;;  %v6843_v28 = vpop.eup %6842 }
 0x4e7   :  { %v2055_v10 = vmul.f32 %v6843_v28, %v8194_v43 }
 0x4e8   :  { %v6845_v12 = vpop.eup %6844 }
 0x4e9   :  { %v8306_v11 = vadd.f32 %v2056_v45, %v2055_v10 }
 0x4eb   :  { %6846 = vtanh.f32 %v8306_v11 }
 0x4f5   :  { %v6847_v15 = vpop.eup %6846 }
 0x4f6   :  { %v2059_v16 = vmul.f32 %v6847_v15, %v6845_v12 }
 0x4f8   :  { %v2067_v18 = vpack.c.bf16 %v2059_v16, %v2059_v16  ;;  %v8310_v19 = vpack.c.bf16 %v2059_v16, %v8197_v24 }
 0x4fa   :  { %2293 = vmatmul.mubr.bf16.vlgmr.msra.gmra.mrb[32].mxu0 %v2067_v18  ;;  %2334 = vmatmul.mubr.bf16.vlgmr.msra.gmra.mrb[32].mxu1 %v2067_v18 }
 0x4fb   :  { %2571 = vmatpush1.bf16.msra.mxu0 %v8207_v41  ;;  %2612 = vmatpush1.bf16.msra.mxu1 %v8209_v17 }
 0x4fc   :  { %2572 = vmatprep.subr.bf16.mxu0 %v8215_v35  ;;  %2613 = vmatprep.subr.bf16.mxu1 %v8217_v54 }
 0x4fd   :  { %2602 = vmatprep.mubr.bf16.mxu0 %v9642_v52  ;;  %2643 = vmatprep.mubr.bf16.mxu1 %v9642_v52 }
 0x4ff   :  { %2573 = vmatpush1.bf16.msra.mxu0 %v8219_v53  ;;  %2614 = vmatpush1.bf16.msra.mxu1 %v8221_v55 }
 0x500   :  { %2574 = vmatprep.subr.bf16.mxu0 %v8227_v58  ;;  %2615 = vmatprep.subr.bf16.mxu1 %v8229_v56 }
 0x503   :  { %2575 = vmatpush1.bf16.msra.mxu0 %v8231_v57  ;;  %2616 = vmatpush1.bf16.msra.mxu1 %v8233_v48 }
 0x504   :  { %2576 = vmatprep.subr.bf16.mxu0 %v8239_v6  ;;  %2617 = vmatprep.subr.bf16.mxu1 %v8241_v8 }
 0x507   :  { %2577 = vmatpush1.bf16.msra.mxu0 %v8243_v59  ;;  %2618 = vmatpush1.bf16.msra.mxu1 %v8245_v60 }
 0x508   :  { %2578 = vmatprep.subr.bf16.mxu0 %v8251_v0  ;;  %2619 = vmatprep.subr.bf16.mxu1 %v8253_v2 }
 0x50b   :  { %2579 = vmatpush1.bf16.msra.mxu0 %v8255_v5  ;;  %2620 = vmatpush1.bf16.msra.mxu1 %v8257_v50 }
 0x50c   :  { %2580 = vmatprep.subr.bf16.mxu0 %v8265_v61  ;;  %2621 = vmatprep.subr.bf16.mxu1 %v8269_v25 }
 0x50f   :  { %2581 = vmatpush1.bf16.msra.mxu0 %v8263_v13  ;;  %2622 = vmatpush1.bf16.msra.mxu1 %v8267_v51 }
 0x510   :  { %2582 = vmatprep.subr.bf16.mxu0 %v8271_v63  ;;  %2623 = vmatprep.subr.bf16.mxu1 %v8274_v14 }
 0x513   :  { %2583 = vmatpush1.bf16.msra.mxu0 %v8279_v62  ;;  %2624 = vmatpush1.bf16.msra.mxu1 %v8281_v3 }
 0x514   :  { %2584 = vmatprep.subr.bf16.mxu0 %v8285_v49  ;;  %2625 = vmatprep.subr.bf16.mxu1 %v8287_v47 }
 0x517   :  { %2585 = vmatpush1.bf16.msra.mxu0 %v8291_v4  ;;  %2626 = vmatpush1.bf16.msra.mxu1 %v8293_v7 }
 0x518   :  { %2880 = vmatprep.subr.bf16.mxu0 %v8203_v36  ;;  %2921 = vmatprep.subr.bf16.mxu1 %v8205_v46 }
 0x5cd   :  { %v2294_v43 = vpop.f32.mrb[32].mxu0  ;;  %v2335_v24 = vpop.f32.mrb[32].mxu1 }
 0x5ce   :  { %v2342_v21 = vadd.f32 %v2294_v43, %v9648_v20  ;;  %v2344_v23 = vadd.f32 %v2335_v24, %v9649_v22  ;;  %v2296_v26 = vpop.f32.mrb[33].mxu0  ;;  %v2337_v27 = vpop.f32.mrb[33].mxu1 }
 0x5cf   :  { %v2343_v30 = vadd.f32 %v2296_v26, %v9650_v29  ;;  %v2345_v32 = vadd.f32 %v2337_v27, %v9651_v31  ;;  %v2298_v33 = vpop.f32.mrb[34].mxu0  ;;  %v2339_v34 = vpop.f32.mrb[34].mxu1  ;;  %v9652_v29 = vld [vmem:[#allocation57_spill] sm:$0xff]  ;;  %v9653_v31 = vld [vmem:[#allocation58_spill] sm:$0xff] }
 0x5d0   :  { %v6424_v37 = vmul.f32 -1.442695, %v2342_v21  ;;  %v2299_v38 = vpop.f32.mrb[35].mxu0  ;;  %v2340_v39 = vpop.f32.mrb[35].mxu1  ;;  %v6426_v42 = vmul.f32 -1.442695, %v2344_v23 }
 0x5d1   :  { %v6425_v40 = vmul.f32 -1.442695, %v2343_v30  ;;  %v9655_v39 = vld [vmem:[#allocation60_spill] sm:$0xff] }
 0x5d2   :  { %6848 = vpow2.f32 %v6424_v37  ;;  %v9654_v37 = vld [vmem:[#allocation59_spill] sm:$0xff] }
 0x5d3   :  { %6850 = vpow2.f32 %v6425_v40 }
 0x5d4   :  { %6852 = vtanh.f32 %v2345_v32 }
 0x5d5   :  { %6854 = vpow2.f32 %v6426_v42 }
 0x5dc   :  { %v6849_v44 = vpop.eup %6848 }
 0x5dd   :  { %v2355_v45 = vadd.f32 1.0, %v6849_v44  ;;  %v6851_v28 = vpop.eup %6850 }
 0x5de   :  { %v2356_v9 = vadd.f32 1.0, %v6851_v28  ;;  %v6853_v10 = vpop.eup %6852 }
 0x5df   :  { %6856 = vrcp.f32 %v2355_v45  ;;  %v6855_v12 = vpop.eup %6854 }
 0x5e0   :  { %6858 = vrcp.f32 %v2356_v9  ;;  %v2357_v43 = vadd.f32 1.0, %v6855_v12 }
 0x5e2   :  { %6860 = vrcp.f32 %v2357_v43 }
 0x5e9   :  { %v6857_v15 = vpop.eup %6856 }
 0x5ea   :  { %v2366_v16 = vmul.f32 %v6857_v15, %v6853_v10  ;;  %v6859_v18 = vpop.eup %6858 }
 0x5eb   :  { %v2365_v24 = vmul.f32 %v6859_v18, %v8306_v11 }
 0x5ec   :  { %v6861_v21 = vpop.eup %6860 }
 0x5ed   :  { %v8351_v20 = vadd.f32 %v2366_v16, %v2365_v24 }
 0x5ef   :  { %6862 = vtanh.f32 %v8351_v20 }
 0x5f9   :  { %v6863_v22 = vpop.eup %6862 }
 0x5fa   :  { %v8354_v23 = vmul.f32 %v6863_v22, %v6861_v21 }
 0x5fc   :  { %v2377_v26 = vpack.c.bf16 %v8354_v23, %v8354_v23 }
 0x5fe   :  { %2603 = vmatmul.mubr.bf16.vlgmr.msra.gmra.mrb[36].mxu0 %v2377_v26  ;;  %2644 = vmatmul.mubr.bf16.vlgmr.msra.gmra.mrb[36].mxu1 %v2377_v26 }
 0x5ff   :  { %2881 = vmatpush1.bf16.msra.mxu0 %v8207_v41  ;;  %2922 = vmatpush1.bf16.msra.mxu1 %v8209_v17 }
 0x600   :  { %2882 = vmatprep.subr.bf16.mxu0 %v8215_v35  ;;  %2923 = vmatprep.subr.bf16.mxu1 %v8217_v54 }
 0x601   :  { %2912 = vmatprep.mubr.bf16.mxu0 %v9642_v52  ;;  %2953 = vmatprep.mubr.bf16.mxu1 %v9642_v52 }
 0x603   :  { %2883 = vmatpush1.bf16.msra.mxu0 %v8219_v53  ;;  %2924 = vmatpush1.bf16.msra.mxu1 %v8221_v55 }
 0x604   :  { %2884 = vmatprep.subr.bf16.mxu0 %v8227_v58  ;;  %2925 = vmatprep.subr.bf16.mxu1 %v8229_v56 }
 0x607   :  { %2885 = vmatpush1.bf16.msra.mxu0 %v8231_v57  ;;  %2926 = vmatpush1.bf16.msra.mxu1 %v8233_v48 }
 0x608   :  { %2886 = vmatprep.subr.bf16.mxu0 %v8239_v6  ;;  %2927 = vmatprep.subr.bf16.mxu1 %v8241_v8 }
 0x60b   :  { %2887 = vmatpush1.bf16.msra.mxu0 %v8243_v59  ;;  %2928 = vmatpush1.bf16.msra.mxu1 %v8245_v60 }
 0x60c   :  { %2888 = vmatprep.subr.bf16.mxu0 %v8251_v0  ;;  %2929 = vmatprep.subr.bf16.mxu1 %v8253_v2 }
 0x60f   :  { %2889 = vmatpush1.bf16.msra.mxu0 %v8255_v5  ;;  %2930 = vmatpush1.bf16.msra.mxu1 %v8257_v50 }
 0x610   :  { %2890 = vmatprep.subr.bf16.mxu0 %v8265_v61  ;;  %2931 = vmatprep.subr.bf16.mxu1 %v8269_v25 }
 0x613   :  { %2891 = vmatpush1.bf16.msra.mxu0 %v8263_v13  ;;  %2932 = vmatpush1.bf16.msra.mxu1 %v8267_v51 }
 0x614   :  { %2892 = vmatprep.subr.bf16.mxu0 %v8271_v63  ;;  %2933 = vmatprep.subr.bf16.mxu1 %v8274_v14 }
 0x617   :  { %2893 = vmatpush1.bf16.msra.mxu0 %v8279_v62  ;;  %2934 = vmatpush1.bf16.msra.mxu1 %v8281_v3 }
 0x618   :  { %2894 = vmatprep.subr.bf16.mxu0 %v8285_v49  ;;  %2935 = vmatprep.subr.bf16.mxu1 %v8287_v47 }
 0x61b   :  { %2895 = vmatpush1.bf16.msra.mxu0 %v8291_v4  ;;  %2936 = vmatpush1.bf16.msra.mxu1 %v8293_v7 }
 0x61c   :  { %3190 = vmatprep.subr.bf16.mxu0 %v8203_v36  ;;  %3231 = vmatprep.subr.bf16.mxu1 %v8205_v46 }
 0x6d1   :  { %v2604_v11 = vpop.f32.mrb[36].mxu0  ;;  %v2645_v27 = vpop.f32.mrb[36].mxu1 }
 0x6d2   :  { %v2652_v30 = vadd.f32 %v2604_v11, %v9652_v29  ;;  %v2654_v32 = vadd.f32 %v2645_v27, %v9653_v31  ;;  %v2606_v33 = vpop.f32.mrb[37].mxu0  ;;  %v2647_v34 = vpop.f32.mrb[37].mxu1 }
 0x6d3   :  { %v2653_v38 = vadd.f32 %v2606_v33, %v9654_v37  ;;  %v2655_v40 = vadd.f32 %v2647_v34, %v9655_v39  ;;  %v2608_v42 = vpop.f32.mrb[38].mxu0  ;;  %v2649_v44 = vpop.f32.mrb[38].mxu1 }
 0x6d4   :  { %v6459_v45 = vmul.f32 -1.442695, %v2652_v30  ;;  %v2609_v28 = vpop.f32.mrb[39].mxu0  ;;  %v2650_v9 = vpop.f32.mrb[39].mxu1  ;;  %v6461_v46 = vmul.f32 -1.442695, %v2654_v32 }
 0x6d5   :  { %v6460_v36 = vmul.f32 -1.442695, %v2653_v38 }
 0x6d6   :  { %6864 = vpow2.f32 %v6459_v45 }
 0x6d7   :  { %6866 = vpow2.f32 %v6460_v36 }
 0x6d8   :  { %6868 = vtanh.f32 %v2655_v40 }
 0x6d9   :  { %6870 = vpow2.f32 %v6461_v46 }
 0x6e0   :  { %v6865_v10 = vpop.eup %6864 }
 0x6e1   :  { %v2665_v12 = vadd.f32 1.0, %v6865_v10  ;;  %v6867_v15 = vpop.eup %6866 }
 0x6e2   :  { %v2666_v16 = vadd.f32 1.0, %v6867_v15  ;;  %v6869_v18 = vpop.eup %6868 }
 0x6e3   :  { %6872 = vrcp.f32 %v2665_v12  ;;  %v6871_v43 = vpop.eup %6870 }
 0x6e4   :  { %6874 = vrcp.f32 %v2666_v16  ;;  %v2667_v26 = vadd.f32 1.0, %v6871_v43 }
 0x6e6   :  { %6876 = vrcp.f32 %v2667_v26 }
 0x6ed   :  { %v6873_v24 = vpop.eup %6872 }
 0x6ee   :  { %v2676_v21 = vmul.f32 %v6873_v24, %v6869_v18  ;;  %v6875_v22 = vpop.eup %6874 }
 0x6ef   :  { %v2675_v11 = vmul.f32 %v6875_v22, %v8351_v20 }
 0x6f0   :  { %v6877_v29 = vpop.eup %6876 }
 0x6f1   :  { %v8397_v27 = vadd.f32 %v2676_v21, %v2675_v11 }
 0x6f3   :  { %6878 = vtanh.f32 %v8397_v27 }
 0x6fd   :  { %v6879_v30 = vpop.eup %6878 }
 0x6fe   :  { %v2679_v31 = vmul.f32 %v6879_v30, %v6877_v29 }
 0x700   :  { %v2687_v32 = vpack.c.bf16 %v2679_v31, %v2679_v31  ;;  %v8401_v33 = vpack.c.bf16 %v2679_v31, %v8354_v23 }
 0x702   :  { %2913 = vmatmul.mubr.bf16.vlgmr.msra.gmra.mrb[40].mxu0 %v2687_v32  ;;  %2954 = vmatmul.mubr.bf16.vlgmr.msra.gmra.mrb[40].mxu1 %v2687_v32 }
 0x703   :  { %3191 = vmatpush1.bf16.msra.mxu0 %v8207_v41  ;;  %3232 = vmatpush1.bf16.msra.mxu1 %v8209_v17 }
 0x704   :  { %3192 = vmatprep.subr.bf16.mxu0 %v8215_v35  ;;  %3233 = vmatprep.subr.bf16.mxu1 %v8217_v54  ;;  %v9656_v35 = vld [vmem:[#allocation61_spill] sm:$0xff] }
 0x705   :  { %3222 = vmatprep.mubr.bf16.mxu0 %v9642_v52  ;;  %3263 = vmatprep.mubr.bf16.mxu1 %v9642_v52 }
 0x707   :  { %3193 = vmatpush1.bf16.msra.mxu0 %v8219_v53  ;;  %3234 = vmatpush1.bf16.msra.mxu1 %v8221_v55  ;;  %v9657_v53 = vld [vmem:[#allocation62_spill] sm:$0xff] }
 0x708   :  { %3194 = vmatprep.subr.bf16.mxu0 %v8227_v58  ;;  %3235 = vmatprep.subr.bf16.mxu1 %v8229_v56 }
 0x70b   :  { %3195 = vmatpush1.bf16.msra.mxu0 %v8231_v57  ;;  %3236 = vmatpush1.bf16.msra.mxu1 %v8233_v48  ;;  %v9658_v57 = vld [vmem:[#allocation63_spill] sm:$0xff] }
 0x70c   :  { %3196 = vmatprep.subr.bf16.mxu0 %v8239_v6  ;;  %3237 = vmatprep.subr.bf16.mxu1 %v8241_v8  ;;  %v9659_v6 = vld [vmem:[#allocation64_spill] sm:$0xff] }
 0x70f   :  { %3197 = vmatpush1.bf16.msra.mxu0 %v8243_v59  ;;  %3238 = vmatpush1.bf16.msra.mxu1 %v8245_v60 }
 0x710   :  { %3198 = vmatprep.subr.bf16.mxu0 %v8251_v0  ;;  %3239 = vmatprep.subr.bf16.mxu1 %v8253_v2 }
 0x713   :  { %3199 = vmatpush1.bf16.msra.mxu0 %v8255_v5  ;;  %3240 = vmatpush1.bf16.msra.mxu1 %v8257_v50 }
 0x714   :  { %3200 = vmatprep.subr.bf16.mxu0 %v8265_v61  ;;  %3241 = vmatprep.subr.bf16.mxu1 %v8269_v25 }
 0x717   :  { %3201 = vmatpush1.bf16.msra.mxu0 %v8263_v13  ;;  %3242 = vmatpush1.bf16.msra.mxu1 %v8267_v51 }
 0x718   :  { %3202 = vmatprep.subr.bf16.mxu0 %v8271_v63  ;;  %3243 = vmatprep.subr.bf16.mxu1 %v8274_v14 }
 0x71b   :  { %3203 = vmatpush1.bf16.msra.mxu0 %v8279_v62  ;;  %3244 = vmatpush1.bf16.msra.mxu1 %v8281_v3 }
 0x71c   :  { %3204 = vmatprep.subr.bf16.mxu0 %v8285_v49  ;;  %3245 = vmatprep.subr.bf16.mxu1 %v8287_v47 }
 0x71f   :  { %3205 = vmatpush1.bf16.msra.mxu0 %v8291_v4  ;;  %3246 = vmatpush1.bf16.msra.mxu1 %v8293_v7 }
 0x7d5   :  { %v2914_v41 = vpop.f32.mrb[40].mxu0  ;;  %v2955_v17 = vpop.f32.mrb[40].mxu1 }
 0x7d6   :  { %v2962_v54 = vadd.f32 %v2914_v41, %v9656_v35  ;;  %v2964_v55 = vadd.f32 %v2955_v17, %v9657_v53  ;;  %v2916_v58 = vpop.f32.mrb[41].mxu0  ;;  %v2957_v56 = vpop.f32.mrb[41].mxu1 }
 0x7d7   :  { %v2963_v48 = vadd.f32 %v2916_v58, %v9658_v57  ;;  %v2965_v8 = vadd.f32 %v2957_v56, %v9659_v6  ;;  %v2918_v59 = vpop.f32.mrb[42].mxu0  ;;  %v2959_v60 = vpop.f32.mrb[42].mxu1 }
 0x7d8   :  { %v6494_v0 = vmul.f32 -1.442695, %v2962_v54  ;;  %v2919_v2 = vpop.f32.mrb[43].mxu0  ;;  %v2960_v5 = vpop.f32.mrb[43].mxu1  ;;  %v6496_v13 = vmul.f32 -1.442695, %v2964_v55 }
 0x7d9   :  { %v6495_v50 = vmul.f32 -1.442695, %v2963_v48 }
 0x7da   :  { %6880 = vpow2.f32 %v6494_v0 }
 0x7db   :  { %6882 = vpow2.f32 %v6495_v50 }
 0x7dc   :  { %6884 = vtanh.f32 %v2965_v8 }
 0x7dd   :  { %6886 = vpow2.f32 %v6496_v13 }
 0x7e4   :  { %v6881_v61 = vpop.eup %6880 }
 0x7e5   :  { %v2975_v51 = vadd.f32 1.0, %v6881_v61  ;;  %v6883_v25 = vpop.eup %6882 }
 0x7e6   :  { %v2976_v63 = vadd.f32 1.0, %v6883_v25  ;;  %v6885_v14 = vpop.eup %6884 }
 0x7e7   :  { %6888 = vrcp.f32 %v2975_v51  ;;  %v6887_v62 = vpop.eup %6886 }
 0x7e8   :  { %6890 = vrcp.f32 %v2976_v63  ;;  %v2977_v4 = vadd.f32 1.0, %v6887_v62 }
 0x7ea   :  { %6892 = vrcp.f32 %v2977_v4 }
 0x7f1   :  { %v6889_v3 = vpop.eup %6888 }
 0x7f2   :  { %v2986_v49 = vmul.f32 %v6889_v3, %v6885_v14  ;;  %v6891_v47 = vpop.eup %6890 }
 0x7f3   :  { %v2985_v7 = vmul.f32 %v6891_v47, %v8397_v27 }
 0x7f4   :  { %v6893_v23 = vpop.eup %6892 }
 0x7f5   :  { %v2987_v20 = vadd.f32 %v2986_v49, %v2985_v7 }
 0x7f7   :  { %6894 = vtanh.f32 %v2987_v20 }
 0x801   :  { %v6895_v34 = vpop.eup %6894 }
 0x802   :  { %v2989_v37 = vmul.f32 %v6895_v34, %v6893_v23 }
 0x804   :  { %v2997_v38 = vpack.c.bf16 %v2989_v37, %v2989_v37 }
 0x806   :  { %3223 = vmatmul.mubr.bf16.vlgmr.msra.gmra.mrb[44].mxu0 %v2997_v38  ;;  %3264 = vmatmul.mubr.bf16.vlgmr.msra.gmra.mrb[44].mxu1 %v2997_v38 }
 0x807   :  { %7377 = shalt.err (!%p7374_p2)  }
 0x808   :  { %s7378_s18 = scalar_lea.vmem %s549_s19, 64  ;;  %p7383_p4 = scmp.lt.s32.totalorder %s549_s19, %s549_s19 }
 0x809   :  { %p7379_p3 = scmp.ne.s32.totalorder %s549_s19, %s7378_s18  ;;  %p7384_p5 = scmp.lt.s32.totalorder %s7378_s18, %s7378_s18 }
 0x80b   :  { %p7385_p6 = por %p7384_p5, %p7383_p4 }
 0x80d   :  { %p7386_p7 = pnand %p7385_p6, %p7379_p3 }
 0x80f   :  { %7389 = shalt.err (!%p7386_p7)  }
 0x810   :  { %551 = dma.hbm_to_vmem [thread:$0]  %s9596_s9, 64, %s549_s19, [#allocation10 + $0x5]  ;;  %v9660_v42 = vld [vmem:[#allocation65_spill] sm:$0xff]  ;;  %v9661_v45 = vld [vmem:[#allocation66_spill] sm:$0xff]  ;;  %v9662_v46 = vld [vmem:[#allocation67_spill] sm:$0xff] }
 0x811   :  { %v9663_v12 = vld [vmem:[#allocation68_spill] sm:$0xff] }
 0x8d9   :  { %v3224_v39 = vpop.f32.mrb[44].mxu0  ;;  %v3265_v40 = vpop.f32.mrb[44].mxu1 }
 0x8da   :  { %v3272_v44 = vadd.f32 %v3224_v39, %v9660_v42  ;;  %v3274_v28 = vadd.f32 %v3265_v40, %v9661_v45  ;;  %v3226_v9 = vpop.f32.mrb[45].mxu0  ;;  %v3267_v36 = vpop.f32.mrb[45].mxu1 }
 0x8db   :  { %v3273_v10 = vadd.f32 %v3226_v9, %v9662_v46  ;;  %v3275_v15 = vadd.f32 %v3267_v36, %v9663_v12  ;;  %v3228_v16 = vpop.f32.mrb[46].mxu0  ;;  %v3269_v18 = vpop.f32.mrb[46].mxu1 }
 0x8dc   :  { %v6529_v43 = vmul.f32 -1.442695, %v3272_v44  ;;  %v3229_v24 = vpop.f32.mrb[47].mxu0  ;;  %v3270_v21 = vpop.f32.mrb[47].mxu1  ;;  %v6531_v26 = vmul.f32 -1.442695, %v3274_v28 }
 0x8dd   :  { %v6530_v22 = vmul.f32 -1.442695, %v3273_v10 }
 0x8de   :  { %6896 = vpow2.f32 %v6529_v43 }
 0x8df   :  { %6898 = vpow2.f32 %v6530_v22 }
 0x8e0   :  { %6900 = vtanh.f32 %v3275_v15 }
 0x8e1   :  { %6902 = vpow2.f32 %v6531_v26 }
 0x8e8   :  { %v6897_v11 = vpop.eup %6896 }
 0x8e9   :  { %v3285_v27 = vadd.f32 1.0, %v6897_v11  ;;  %v6899_v29 = vpop.eup %6898 }
 0x8ea   :  { %v3286_v30 = vadd.f32 1.0, %v6899_v29  ;;  %v6901_v31 = vpop.eup %6900 }
 0x8eb   :  { %6904 = vrcp.f32 %v3285_v27  ;;  %v6903_v32 = vpop.eup %6902 }
 0x8ec   :  { %6906 = vrcp.f32 %v3286_v30  ;;  %v3287_v54 = vadd.f32 1.0, %v6903_v32 }
 0x8ee   :  { %6908 = vrcp.f32 %v3287_v54 }
 0x8f5   :  { %v6905_v41 = vpop.eup %6904 }
 0x8f6   :  { %v3296_v17 = vmul.f32 %v6905_v41, %v6901_v31  ;;  %v6907_v35 = vpop.eup %6906 }
 0x8f7   :  { %v3295_v53 = vmul.f32 %v6907_v35, %v2987_v20 }
 0x8f8   :  { %v6909_v58 = vpop.eup %6908 }
 0x8f9   :  { %v3297_v55 = vadd.f32 %v3296_v17, %v3295_v53 }
 0x8fb   :  { %6910 = vtanh.f32 %v3297_v55 }
 0x905   :  { %v6911_v56 = vpop.eup %6910 }
 0x906   :  { %v3299_v57 = vmul.f32 %v6911_v56, %v6909_v58 }
 0x908   :  { %v8456_v48 = vpack.c.bf16 %v3299_v57, %v2989_v37 }
 0x909   :  { %7398 = dma.done.wait [#allocation10], 4096 }
 0x90a   :  { %7399 = vsyncadd [#allocation10], 4294963200 }
 0x90b   :  { %7400 = dma.done.wait [#allocation10 + $0x1], 4096 }
 0x90c   :  { %7401 = vsyncadd [#allocation10 + $0x1], 4294963200 }
 0x90d   :  { %7402 = dma.done.wait [#allocation10 + $0x2], 64 }
 0x90e   :  { %7403 = vsyncadd [#allocation10 + $0x2], 4294967232  ;;  %3409 = vmatprep.mubr.bf16.mxu0 %v9642_v52  ;;  %3482 = vmatprep.mubr.bf16.mxu1 %v9642_v52  ;;  %v3324_v6 = vld [vmem:[#allocation4 + $0x8] sm:$0xff]  ;;  %v3326_v8 = vld [vmem:[#allocation4 + $0x18] sm:$0xff] }
 0x90f   :  { %v3323_v59 = vld [vmem:[#allocation4] sm:$0xff]  ;;  %3377 = vmatprep.subr.bf16.mxu0 %v3324_v6  ;;  %3450 = vmatprep.subr.bf16.mxu1 %v3326_v8  ;;  %v3325_v60 = vld [vmem:[#allocation4 + $0x10] sm:$0xff]  ;;  %v3328_v0 = vld [vmem:[#allocation4 + $0x28] sm:$0xff] }
 0x910   :  { %v3330_v2 = vld [vmem:[#allocation4 + $0x38] sm:$0xff]  ;;  %3378 = vmatpush1.bf16.msra.mxu0 %v3323_v59  ;;  %3451 = vmatpush1.bf16.msra.mxu1 %v3325_v60  ;;  %v3327_v5 = vld [vmem:[#allocation4 + $0x20] sm:$0xff]  ;;  %v3329_v50 = vld [vmem:[#allocation4 + $0x30] sm:$0xff] }
 0x911   :  { %3379 = vmatprep.subr.bf16.mxu0 %v3328_v0  ;;  %3452 = vmatprep.subr.bf16.mxu1 %v3330_v2  ;;  %v3332_v13 = vld [vmem:[#allocation4 + $0x48] sm:$0xff]  ;;  %v3334_v61 = vld [vmem:[#allocation4 + $0x58] sm:$0xff]  ;;  %v3331_v51 = vld [vmem:[#allocation4 + $0x40] sm:$0xff] }
 0x912   :  { %v3333_v25 = vld [vmem:[#allocation4 + $0x50] sm:$0xff]  ;;  %v3336_v63 = vld [vmem:[#allocation4 + $0x68] sm:$0xff]  ;;  %v3338_v14 = vld [vmem:[#allocation4 + $0x78] sm:$0xff] }
 0x913   :  { %v3335_v62 = vld [vmem:[#allocation4 + $0x60] sm:$0xff]  ;;  %v3337_v3 = vld [vmem:[#allocation4 + $0x70] sm:$0xff]  ;;  %v3340_v49 = vld [vmem:[#allocation4 + $0x88] sm:$0xff] }
 0x914   :  { %3380 = vmatpush1.bf16.msra.mxu0 %v3327_v5  ;;  %3453 = vmatpush1.bf16.msra.mxu1 %v3329_v50  ;;  %v3342_v47 = vld [vmem:[#allocation4 + $0x98] sm:$0xff]  ;;  %v3339_v4 = vld [vmem:[#allocation4 + $0x80] sm:$0xff]  ;;  %v3341_v7 = vld [vmem:[#allocation4 + $0x90] sm:$0xff] }
 0x915   :  { %3381 = vmatprep.subr.bf16.mxu0 %v3332_v13  ;;  %3454 = vmatprep.subr.bf16.mxu1 %v3334_v61  ;;  %v3344_v20 = vld [vmem:[#allocation4 + $0xa8] sm:$0xff]  ;;  %v3346_v23 = vld [vmem:[#allocation4 + $0xb8] sm:$0xff]  ;;  %v3343_v34 = vld [vmem:[#allocation4 + $0xa0] sm:$0xff] }
 0x916   :  { %v3345_v37 = vld [vmem:[#allocation4 + $0xb0] sm:$0xff]  ;;  %v3348_v38 = vld [vmem:[#allocation4 + $0xc8] sm:$0xff]  ;;  %v3350_v39 = vld [vmem:[#allocation4 + $0xd8] sm:$0xff] }
 0x917   :  { %v3347_v40 = vld [vmem:[#allocation4 + $0xc0] sm:$0xff]  ;;  %v3349_v42 = vld [vmem:[#allocation4 + $0xd0] sm:$0xff]  ;;  %v3352_v44 = vld [vmem:[#allocation4 + $0xe8] sm:$0xff] }
 0x918   :  { %3382 = vmatpush1.bf16.msra.mxu0 %v3331_v51  ;;  %3455 = vmatpush1.bf16.msra.mxu1 %v3333_v25  ;;  %v3354_v45 = vld [vmem:[#allocation4 + $0xf8] sm:$0xff]  ;;  %v3351_v28 = vld [vmem:[#allocation4 + $0xe0] sm:$0xff]  ;;  %v3353_v9 = vld [vmem:[#allocation4 + $0xf0] sm:$0xff] }
 0x919   :  { %3383 = vmatprep.subr.bf16.mxu0 %v3336_v63  ;;  %3456 = vmatprep.subr.bf16.mxu1 %v3338_v14  ;;  %v8460_v36 = vld [vmem:[#allocation5 + $0x8] sm:$0xff]  ;;  %v8462_v46 = vld [vmem:[#allocation5 + $0x18] sm:$0xff]  ;;  %v8466_v10 = vld [vmem:[#allocation5] sm:$0xff] }
 0x91a   :  { %v8468_v12 = vld [vmem:[#allocation5 + $0x10] sm:$0xff]  ;;  %v8470_v15 = vld [vmem:[#allocation5 + $0x28] sm:$0xff]  ;;  %v8472_v16 = vld [vmem:[#allocation5 + $0x38] sm:$0xff] }
 0x91b   :  { %v8480_v18 = vld [vmem:[#allocation5 + $0x20] sm:$0xff]  ;;  %v8482_v43 = vld [vmem:[#allocation5 + $0x30] sm:$0xff]  ;;  %v8486_v24 = vld [vmem:[#allocation5 + $0x48] sm:$0xff] }
 0x91c   :  { %3384 = vmatpush1.bf16.msra.mxu0 %v3335_v62  ;;  %3457 = vmatpush1.bf16.msra.mxu1 %v3337_v3  ;;  %v8488_v21 = vld [vmem:[#allocation5 + $0x58] sm:$0xff]  ;;  %v8496_v22 = vld [vmem:[#allocation5 + $0x50] sm:$0xff]  ;;  %v8498_v26 = vld [vmem:[#allocation5 + $0x68] sm:$0xff] }
 0x91d   :  { %3385 = vmatprep.subr.bf16.mxu0 %v3340_v49  ;;  %3458 = vmatprep.subr.bf16.mxu1 %v3342_v47  ;;  %v8500_v11 = vld [vmem:[#allocation5 + $0x78] sm:$0xff]  ;;  %v8508_v27 = vld [vmem:[#allocation5 + $0x60] sm:$0xff]  ;;  %v8510_v29 = vld [vmem:[#allocation5 + $0x70] sm:$0xff] }
 0x91e   :  { %v8514_v30 = vld [vmem:[#allocation5 + $0x88] sm:$0xff]  ;;  %v8516_v31 = vld [vmem:[#allocation5 + $0x98] sm:$0xff]  ;;  %v8524_v32 = vld [vmem:[#allocation5 + $0x90] sm:$0xff] }
 0x91f   :  { %v8526_v41 = vld [vmem:[#allocation5 + $0xa8] sm:$0xff]  ;;  %v8528_v17 = vld [vmem:[#allocation5 + $0xb8] sm:$0xff]  ;;  %v8536_v35 = vld [vmem:[#allocation5 + $0xa0] sm:$0xff] }
 0x920   :  { %3386 = vmatpush1.bf16.msra.mxu0 %v3339_v4  ;;  %3459 = vmatpush1.bf16.msra.mxu1 %v3341_v7  ;;  %v8538_v54 = vld [vmem:[#allocation5 + $0xb0] sm:$0xff]  ;;  %v8542_v53 = vld [vmem:[#allocation5 + $0xc8] sm:$0xff]  ;;  %v8544_v55 = vld [vmem:[#allocation5 + $0xd8] sm:$0xff] }
 0x921   :  { %3387 = vmatprep.subr.bf16.mxu0 %v3344_v20  ;;  %3460 = vmatprep.subr.bf16.mxu1 %v3346_v23  ;;  %v8552_v58 = vld [vmem:[#allocation5 + $0xd0] sm:$0xff]  ;;  %v8554_v56 = vld [vmem:[#allocation5 + $0xe8] sm:$0xff]  ;;  %v8556_v57 = vld [vmem:[#allocation5 + $0xf8] sm:$0xff] }
 0x922   :  { %v8564_v6 = vld [vmem:[#allocation5 + $0xe0] sm:$0xff]  ;;  %v8566_v8 = vld [vmem:[#allocation5 + $0xf0] sm:$0xff]  ;;  %v9665_v5 = vld [vmem:[#allocation45_spill] sm:$0xff] }
 0x923   :  { %v9664_v59 = vld [vmem:[#allocation44_spill] sm:$0xff]  ;;  %v9666_v13 = vld [vmem:[#allocation46_spill] sm:$0xff]  ;;  %v9667_v63 = vld [vmem:[#allocation47_spill] sm:$0xff] }
 0x924   :  { %3388 = vmatpush1.bf16.msra.mxu0 %v3343_v34  ;;  %3461 = vmatpush1.bf16.msra.mxu1 %v3345_v37 }
 0x925   :  { %3389 = vmatprep.subr.bf16.mxu0 %v3348_v38  ;;  %3462 = vmatprep.subr.bf16.mxu1 %v3350_v39 }
 0x928   :  { %3390 = vmatpush1.bf16.msra.mxu0 %v3347_v40  ;;  %3463 = vmatpush1.bf16.msra.mxu1 %v3349_v42 }
 0x929   :  { %3391 = vmatprep.subr.bf16.mxu0 %v3352_v44  ;;  %3464 = vmatprep.subr.bf16.mxu1 %v3354_v45 }
 0x92c   :  { %3392 = vmatpush1.bf16.msra.mxu0 %v3351_v28  ;;  %3465 = vmatpush1.bf16.msra.mxu1 %v3353_v9 }
 0x92d   :  { %3591 = vmatprep.subr.bf16.mxu0 %v8460_v36  ;;  %3632 = vmatprep.subr.bf16.mxu1 %v8462_v46 }
 0x92f   :  { %3410 = vmatmul.mubr.bf16.vlgmr.msra.gmra.mrb[48].mxu0 %v8155_v1  ;;  %3483 = vmatmul.mubr.bf16.vlgmr.msra.gmra.mrb[48].mxu1 %v8155_v1  ;;  %v8494_v1 = vld [vmem:[#allocation5 + $0x40] sm:$0xff] }
 0x930   :  { %3592 = vmatpush1.bf16.msra.mxu0 %v8466_v10  ;;  %3633 = vmatpush1.bf16.msra.mxu1 %v8468_v12 }
 0x931   :  { %3593 = vmatprep.subr.bf16.mxu0 %v8470_v15  ;;  %3634 = vmatprep.subr.bf16.mxu1 %v8472_v16 }
 0x932   :  { %3419 = vmatprep.mubr.bf16.mxu0 %v9642_v52  ;;  %3492 = vmatprep.mubr.bf16.mxu1 %v9642_v52 }
 0x934   :  { %3594 = vmatpush1.bf16.msra.mxu0 %v8480_v18  ;;  %3635 = vmatpush1.bf16.msra.mxu1 %v8482_v43 }
 0x935   :  { %3595 = vmatprep.subr.bf16.mxu0 %v8486_v24  ;;  %3636 = vmatprep.subr.bf16.mxu1 %v8488_v21 }
 0x937   :  { %3420 = vmatmul.mubr.bf16.gmra.mrb[52].mxu0 %v8310_v19  ;;  %3493 = vmatmul.mubr.bf16.gmra.mrb[52].mxu1 %v8310_v19  ;;  %v8522_v19 = vld [vmem:[#allocation5 + $0x80] sm:$0xff] }
 0x938   :  { %3596 = vmatpush1.bf16.msra.mxu0 %v8494_v1  ;;  %3637 = vmatpush1.bf16.msra.mxu1 %v8496_v22 }
 0x939   :  { %3597 = vmatprep.subr.bf16.mxu0 %v8498_v26  ;;  %3638 = vmatprep.subr.bf16.mxu1 %v8500_v11 }
 0x93a   :  { %3429 = vmatprep.mubr.bf16.mxu0 %v9642_v52  ;;  %3502 = vmatprep.mubr.bf16.mxu1 %v9642_v52 }
 0x93c   :  { %3598 = vmatpush1.bf16.msra.mxu0 %v8508_v27  ;;  %3639 = vmatpush1.bf16.msra.mxu1 %v8510_v29 }
 0x93d   :  { %3599 = vmatprep.subr.bf16.mxu0 %v8514_v30  ;;  %3640 = vmatprep.subr.bf16.mxu1 %v8516_v31 }
 0x93f   :  { %3430 = vmatmul.mubr.bf16.gmra.mrb[56].mxu0 %v8401_v33  ;;  %3503 = vmatmul.mubr.bf16.gmra.mrb[56].mxu1 %v8401_v33  ;;  %v8550_v33 = vld [vmem:[#allocation5 + $0xc0] sm:$0xff] }
 0x940   :  { %3600 = vmatpush1.bf16.msra.mxu0 %v8522_v19  ;;  %3641 = vmatpush1.bf16.msra.mxu1 %v8524_v32 }
 0x941   :  { %3601 = vmatprep.subr.bf16.mxu0 %v8526_v41  ;;  %3642 = vmatprep.subr.bf16.mxu1 %v8528_v17 }
 0x942   :  { %3439 = vmatprep.mubr.bf16.mxu0 %v9642_v52  ;;  %3512 = vmatprep.mubr.bf16.mxu1 %v9642_v52 }
 0x944   :  { %3602 = vmatpush1.bf16.msra.mxu0 %v8536_v35  ;;  %3643 = vmatpush1.bf16.msra.mxu1 %v8538_v54 }
 0x945   :  { %3603 = vmatprep.subr.bf16.mxu0 %v8542_v53  ;;  %3644 = vmatprep.subr.bf16.mxu1 %v8544_v55 }
 0x947   :  { %3440 = vmatmul.mubr.bf16.gmra.mrb[60].mxu0 %v8456_v48  ;;  %3513 = vmatmul.mubr.bf16.gmra.mrb[60].mxu1 %v8456_v48  ;;  %v3355_v48 = vld [vmem:[#allocation6] sm:$0xf] }
 0x948   :  { %3604 = vmatpush1.bf16.msra.mxu0 %v8550_v33  ;;  %3645 = vmatpush1.bf16.msra.mxu1 %v8552_v58  ;;  %v8611_v60 = vrot.slane %v3355_v48, %v9664_v59  ;;  %v8618_v50 = vrot.slane %v3355_v48, %v9665_v5  ;;  %v3360_v61 = vrot.slane %v3355_v48, %v9666_v13 }
 0x949   :  { %3605 = vmatprep.subr.bf16.mxu0 %v8554_v56  ;;  %3646 = vmatprep.subr.bf16.mxu1 %v8556_v57  ;;  %v3364_v14 = vrot.slane %v3355_v48, %v9667_v63 }
 0x94a   :  { %3623 = vmatprep.mubr.bf16.mxu0 %v9642_v52  ;;  %3664 = vmatprep.mubr.bf16.mxu1 %v9642_v52 }
 0x94c   :  { %3606 = vmatpush1.bf16.msra.mxu0 %v8564_v6  ;;  %3647 = vmatpush1.bf16.msra.mxu1 %v8566_v8 }
 0x94d   :  { %3739 = vmatprep.subr.bf16.mxu0 %v8460_v36  ;;  %3780 = vmatprep.subr.bf16.mxu1 %v8462_v46 }
 0x94f   :  { %3624 = vmatmul.mubr.bf16.vlgmr.msra.gmra.mrb[64].mxu0 %v9642_v52  ;;  %3665 = vmatmul.mubr.bf16.vlgmr.msra.gmra.mrb[64].mxu1 %v9642_v52 }
 0x950   :  { %3740 = vmatpush1.bf16.msra.mxu0 %v8466_v10  ;;  %3781 = vmatpush1.bf16.msra.mxu1 %v8468_v12 }
 0x951   :  { %3741 = vmatprep.subr.bf16.mxu0 %v8470_v15  ;;  %3782 = vmatprep.subr.bf16.mxu1 %v8472_v16 }
 0x952   :  { %3771 = vmatprep.mubr.bf16.mxu0 %v9642_v52  ;;  %3812 = vmatprep.mubr.bf16.mxu1 %v9642_v52 }
 0x954   :  { %3742 = vmatpush1.bf16.msra.mxu0 %v8480_v18  ;;  %3783 = vmatpush1.bf16.msra.mxu1 %v8482_v43 }
 0x955   :  { %3743 = vmatprep.subr.bf16.mxu0 %v8486_v24  ;;  %3784 = vmatprep.subr.bf16.mxu1 %v8488_v21 }
 0x958   :  { %3744 = vmatpush1.bf16.msra.mxu0 %v8494_v1  ;;  %3785 = vmatpush1.bf16.msra.mxu1 %v8496_v22 }
 0x959   :  { %3745 = vmatprep.subr.bf16.mxu0 %v8498_v26  ;;  %3786 = vmatprep.subr.bf16.mxu1 %v8500_v11 }
 0x95c   :  { %3746 = vmatpush1.bf16.msra.mxu0 %v8508_v27  ;;  %3787 = vmatpush1.bf16.msra.mxu1 %v8510_v29 }
 0x95d   :  { %3747 = vmatprep.subr.bf16.mxu0 %v8514_v30  ;;  %3788 = vmatprep.subr.bf16.mxu1 %v8516_v31 }
 0x960   :  { %3748 = vmatpush1.bf16.msra.mxu0 %v8522_v19  ;;  %3789 = vmatpush1.bf16.msra.mxu1 %v8524_v32 }
 0x961   :  { %3749 = vmatprep.subr.bf16.mxu0 %v8526_v41  ;;  %3790 = vmatprep.subr.bf16.mxu1 %v8528_v17 }
 0x964   :  { %3750 = vmatpush1.bf16.msra.mxu0 %v8536_v35  ;;  %3791 = vmatpush1.bf16.msra.mxu1 %v8538_v54 }
 0x965   :  { %3751 = vmatprep.subr.bf16.mxu0 %v8542_v53  ;;  %3792 = vmatprep.subr.bf16.mxu1 %v8544_v55 }
 0x968   :  { %3752 = vmatpush1.bf16.msra.mxu0 %v8550_v33  ;;  %3793 = vmatpush1.bf16.msra.mxu1 %v8552_v58 }
 0x969   :  { %3753 = vmatprep.subr.bf16.mxu0 %v8554_v56  ;;  %3794 = vmatprep.subr.bf16.mxu1 %v8556_v57 }
 0x96c   :  { %3754 = vmatpush1.bf16.msra.mxu0 %v8564_v6  ;;  %3795 = vmatpush1.bf16.msra.mxu1 %v8566_v8 }
 0x96d   :  { %3887 = vmatprep.subr.bf16.mxu0 %v8460_v36  ;;  %3928 = vmatprep.subr.bf16.mxu1 %v8462_v46 }
 0xa02   :  { %v8613_v0 = vpop.f32.mrb[48].mxu0  ;;  %v8615_v2 = vpop.f32.mrb[48].mxu1 }
 0xa03   :  { %v3413_v51 = vpop.f32.mrb[49].mxu0  ;;  %v3486_v25 = vpop.f32.mrb[49].mxu1 }
 0xa04   :  { %v3415_v62 = vpop.f32.mrb[50].mxu0  ;;  %v3488_v3 = vpop.f32.mrb[50].mxu1 }
 0xa05   :  { %v8622_v49 = vadd.f32 %v3415_v62, %v3360_v61  ;;  %v3417_v47 = vpop.f32.mrb[51].mxu0  ;;  %v8625_v4 = vadd.f32 %v3488_v3, %v8611_v60  ;;  %v3490_v7 = vpop.f32.mrb[51].mxu1 }
 0xa06   :  { %v8627_v20 = vadd.f32 %v3417_v47, %v3364_v14  ;;  %v8630_v23 = vadd.f32 %v3490_v7, %v8618_v50 }
 0xa0a   :  { %v3421_v34 = vpop.f32.mrb[52].mxu0  ;;  %v3494_v37 = vpop.f32.mrb[52].mxu1 }
 0xa0b   :  { %v8632_v38 = vadd.f32 %v3421_v34, %v3360_v61  ;;  %v3423_v39 = vpop.f32.mrb[53].mxu0  ;;  %v8635_v40 = vadd.f32 %v3494_v37, %v8611_v60  ;;  %v3496_v42 = vpop.f32.mrb[53].mxu1 }
 0xa0c   :  { %v8637_v44 = vadd.f32 %v3423_v39, %v3364_v14  ;;  %v3425_v45 = vpop.f32.mrb[54].mxu0  ;;  %v8640_v28 = vadd.f32 %v3496_v42, %v8618_v50  ;;  %v3498_v9 = vpop.f32.mrb[54].mxu1 }
 0xa0d   :  { %v8642_v48 = vadd.f32 %v3425_v45, %v3360_v61  ;;  %v3427_v62 = vpop.f32.mrb[55].mxu0  ;;  %v8645_v3 = vadd.f32 %v3498_v9, %v8611_v60  ;;  %v3500_v47 = vpop.f32.mrb[55].mxu1 }
 0xa0e   :  { %9668 = vst [vmem:[#allocation48_spill] sm:$0xff] %v8637_v44  ;;  %9669 = vst [vmem:[#allocation49_spill] sm:$0xff] %v8640_v28  ;;  %v8647_v7 = vadd.f32 %v3427_v62, %v3364_v14  ;;  %v8650_v34 = vadd.f32 %v3500_v47, %v8618_v50 }
 0xa0f   :  { %9670 = vst [vmem:[#allocation50_spill] sm:$0xff] %v8642_v48  ;;  %9671 = vst [vmem:[#allocation51_spill] sm:$0xff] %v8645_v3 }
 0xa10   :  { %9672 = vst [vmem:[#allocation52_spill] sm:$0xff] %v8647_v7  ;;  %9673 = vst [vmem:[#allocation53_spill] sm:$0xff] %v8650_v34 }
 0xa12   :  { %v3431_v37 = vpop.f32.mrb[56].mxu0  ;;  %v3504_v39 = vpop.f32.mrb[56].mxu1 }
 0xa13   :  { %v8652_v63 = vadd.f32 %v3431_v37, %v3360_v61  ;;  %v3433_v13 = vpop.f32.mrb[57].mxu0  ;;  %v8655_v42 = vadd.f32 %v3504_v39, %v8611_v60  ;;  %v3506_v45 = vpop.f32.mrb[57].mxu1 }
 0xa14   :  { %v8657_v5 = vadd.f32 %v3433_v13, %v3364_v14  ;;  %v3435_v59 = vpop.f32.mrb[58].mxu0  ;;  %v8660_v9 = vadd.f32 %v3506_v45, %v8618_v50  ;;  %v3508_v62 = vpop.f32.mrb[58].mxu1 }
 0xa15   :  { %9674 = vst [vmem:[#allocation54_spill] sm:$0xff] %v8652_v63  ;;  %9675 = vst [vmem:[#allocation55_spill] sm:$0xff] %v8655_v42  ;;  %v8662_v7 = vadd.f32 %v3435_v59, %v3360_v61  ;;  %v3437_v47 = vpop.f32.mrb[59].mxu0  ;;  %v8665_v34 = vadd.f32 %v3508_v62, %v8611_v60  ;;  %v3510_v37 = vpop.f32.mrb[59].mxu1 }
 0xa16   :  { %9676 = vst [vmem:[#allocation56_spill] sm:$0xff] %v8657_v5  ;;  %9677 = vst [vmem:[#allocation57_spill] sm:$0xff] %v8660_v9  ;;  %v8667_v63 = vadd.f32 %v3437_v47, %v3364_v14  ;;  %v8670_v39 = vadd.f32 %v3510_v37, %v8618_v50 }
 0xa17   :  { %9678 = vst [vmem:[#allocation58_spill] sm:$0xff] %v8662_v7  ;;  %9679 = vst [vmem:[#allocation59_spill] sm:$0xff] %v8665_v34 }
 0xa18   :  { %9680 = vst [vmem:[#allocation60_spill] sm:$0xff] %v8667_v63  ;;  %9681 = vst [vmem:[#allocation61_spill] sm:$0xff] %v8670_v39 }
 0xa1a   :  { %v3441_v42 = vpop.f32.mrb[60].mxu0  ;;  %v3514_v13 = vpop.f32.mrb[60].mxu1 }
 0xa1b   :  { %v8672_v5 = vadd.f32 %v3441_v42, %v3360_v61  ;;  %v3443_v3 = vpop.f32.mrb[61].mxu0  ;;  %v8675_v45 = vadd.f32 %v3514_v13, %v8611_v60  ;;  %v3516_v59 = vpop.f32.mrb[61].mxu1 }
 0xa1c   :  { %v8677_v7 = vadd.f32 %v3443_v3, %v3364_v14  ;;  %v3445_v9 = vpop.f32.mrb[62].mxu0  ;;  %v8680_v62 = vadd.f32 %v3516_v59, %v8618_v50  ;;  %v3518_v47 = vpop.f32.mrb[62].mxu1  ;;  %v3412_v3 = vadd.f32 %v8613_v0, %v3360_v61  ;;  %v3414_v59 = vadd.f32 %v3413_v51, %v3364_v14 }
 0xa1d   :  { %9682 = vst [vmem:[#allocation62_spill] sm:$0xff] %v8672_v5  ;;  %9683 = vst [vmem:[#allocation63_spill] sm:$0xff] %v8675_v45  ;;  %v8682_v63 = vadd.f32 %v3445_v9, %v3360_v61  ;;  %v3447_v37 = vpop.f32.mrb[63].mxu0  ;;  %v8685_v39 = vadd.f32 %v3518_v47, %v8611_v60  ;;  %v3520_v42 = vpop.f32.mrb[63].mxu1 }
 0xa1e   :  { %9684 = vst [vmem:[#allocation64_spill] sm:$0xff] %v8677_v7  ;;  %9685 = vst [vmem:[#allocation65_spill] sm:$0xff] %v8680_v62  ;;  %v8687_v5 = vadd.f32 %v3447_v37, %v3364_v14  ;;  %v8690_v13 = vadd.f32 %v3520_v42, %v8618_v50  ;;  %v3485_v7 = vadd.f32 %v8615_v2, %v8611_v60 }
 0xa1f   :  { %9686 = vst [vmem:[#allocation66_spill] sm:$0xff] %v8682_v63  ;;  %9687 = vst [vmem:[#allocation67_spill] sm:$0xff] %v8685_v39  ;;  %v3487_v62 = vadd.f32 %v3486_v25, %v8618_v50 }
 0xa20   :  { %9688 = vst [vmem:[#allocation68_spill] sm:$0xff] %v8687_v5  ;;  %9689 = vst [vmem:[#allocation69_spill] sm:$0xff] %v8690_v13 }
 0xa22   :  { %v3625_v9 = vpop.f32.mrb[64].mxu0  ;;  %v3666_v63 = vpop.f32.mrb[64].mxu1 }
 0xa23   :  { %v3673_v45 = vadd.f32 %v3625_v9, %v3412_v3  ;;  %v3675_v34 = vadd.f32 %v3666_v63, %v3485_v7  ;;  %v3627_v47 = vpop.f32.mrb[65].mxu0  ;;  %v3668_v39 = vpop.f32.mrb[65].mxu1 }
 0xa24   :  { %v3674_v48 = vadd.f32 %v3627_v47, %v3414_v59  ;;  %v3676_v37 = vadd.f32 %v3668_v39, %v3487_v62  ;;  %v3629_v5 = vpop.f32.mrb[66].mxu0  ;;  %v3670_v28 = vpop.f32.mrb[66].mxu1 }
 0xa25   :  { %v6532_v42 = vmul.f32 -1.442695, %v3673_v45  ;;  %v3630_v13 = vpop.f32.mrb[67].mxu0  ;;  %v3671_v44 = vpop.f32.mrb[67].mxu1  ;;  %v6534_v60 = vmul.f32 -1.442695, %v3675_v34 }
 0xa26   :  { %v6533_v0 = vmul.f32 -1.442695, %v3674_v48 }
 0xa27   :  { %6912 = vpow2.f32 %v6532_v42 }
 0xa28   :  { %6914 = vpow2.f32 %v6533_v0 }
 0xa29   :  { %6916 = vtanh.f32 %v3676_v37 }
 0xa2a   :  { %6918 = vpow2.f32 %v6534_v60 }
 0xa31   :  { %v6913_v2 = vpop.eup %6912 }
 0xa32   :  { %v3686_v61 = vadd.f32 1.0, %v6913_v2  ;;  %v6915_v50 = vpop.eup %6914 }
 0xa33   :  { %v3687_v51 = vadd.f32 1.0, %v6915_v50  ;;  %v6917_v25 = vpop.eup %6916 }
 0xa34   :  { %6920 = vrcp.f32 %v3686_v61  ;;  %v6919_v63 = vpop.eup %6918 }
 0xa35   :  { %6922 = vrcp.f32 %v3687_v51  ;;  %v3688_v7 = vadd.f32 1.0, %v6919_v63 }
 0xa37   :  { %6924 = vrcp.f32 %v3688_v7 }
 0xa3e   :  { %v6921_v14 = vpop.eup %6920 }
 0xa3f   :  { %v3697_v5 = vmul.f32 %v6921_v14, %v6917_v25  ;;  %v6923_v28 = vpop.eup %6922 }
 0xa40   :  { %v3696_v39 = vmul.f32 0.0, %v6923_v28 }
 0xa41   :  { %v6925_v48 = vpop.eup %6924 }
 0xa42   :  { %v8696_v44 = vadd.f32 %v3697_v5, %v3696_v39 }
 0xa44   :  { %6926 = vtanh.f32 %v8696_v44 }
 0xa4e   :  { %v6927_v34 = vpop.eup %6926 }
 0xa4f   :  { %v8699_v45 = vmul.f32 %v6927_v34, %v6925_v48 }
 0xa51   :  { %v3706_v62 = vpack.c.bf16 %v8699_v45, %v8699_v45 }
 0xa53   :  { %3772 = vmatmul.mubr.bf16.vlgmr.msra.gmra.mrb[68].mxu0 %v3706_v62  ;;  %3813 = vmatmul.mubr.bf16.vlgmr.msra.gmra.mrb[68].mxu1 %v3706_v62 }
 0xa54   :  { %3888 = vmatpush1.bf16.msra.mxu0 %v8466_v10  ;;  %3929 = vmatpush1.bf16.msra.mxu1 %v8468_v12 }
 0xa55   :  { %3889 = vmatprep.subr.bf16.mxu0 %v8470_v15  ;;  %3930 = vmatprep.subr.bf16.mxu1 %v8472_v16 }
 0xa56   :  { %3919 = vmatprep.mubr.bf16.mxu0 %v9642_v52  ;;  %3960 = vmatprep.mubr.bf16.mxu1 %v9642_v52 }
 0xa58   :  { %3890 = vmatpush1.bf16.msra.mxu0 %v8480_v18  ;;  %3931 = vmatpush1.bf16.msra.mxu1 %v8482_v43 }
 0xa59   :  { %3891 = vmatprep.subr.bf16.mxu0 %v8486_v24  ;;  %3932 = vmatprep.subr.bf16.mxu1 %v8488_v21 }
 0xa5c   :  { %3892 = vmatpush1.bf16.msra.mxu0 %v8494_v1  ;;  %3933 = vmatpush1.bf16.msra.mxu1 %v8496_v22 }
 0xa5d   :  { %3893 = vmatprep.subr.bf16.mxu0 %v8498_v26  ;;  %3934 = vmatprep.subr.bf16.mxu1 %v8500_v11 }
 0xa60   :  { %3894 = vmatpush1.bf16.msra.mxu0 %v8508_v27  ;;  %3935 = vmatpush1.bf16.msra.mxu1 %v8510_v29 }
 0xa61   :  { %3895 = vmatprep.subr.bf16.mxu0 %v8514_v30  ;;  %3936 = vmatprep.subr.bf16.mxu1 %v8516_v31 }
 0xa64   :  { %3896 = vmatpush1.bf16.msra.mxu0 %v8522_v19  ;;  %3937 = vmatpush1.bf16.msra.mxu1 %v8524_v32 }
 0xa65   :  { %3897 = vmatprep.subr.bf16.mxu0 %v8526_v41  ;;  %3938 = vmatprep.subr.bf16.mxu1 %v8528_v17 }
 0xa68   :  { %3898 = vmatpush1.bf16.msra.mxu0 %v8536_v35  ;;  %3939 = vmatpush1.bf16.msra.mxu1 %v8538_v54 }
 0xa69   :  { %3899 = vmatprep.subr.bf16.mxu0 %v8542_v53  ;;  %3940 = vmatprep.subr.bf16.mxu1 %v8544_v55 }
 0xa6c   :  { %3900 = vmatpush1.bf16.msra.mxu0 %v8550_v33  ;;  %3941 = vmatpush1.bf16.msra.mxu1 %v8552_v58 }
 0xa6d   :  { %3901 = vmatprep.subr.bf16.mxu0 %v8554_v56  ;;  %3942 = vmatprep.subr.bf16.mxu1 %v8556_v57 }
 0xa70   :  { %3902 = vmatpush1.bf16.msra.mxu0 %v8564_v6  ;;  %3943 = vmatpush1.bf16.msra.mxu1 %v8566_v8 }
 0xa71   :  { %4035 = vmatprep.subr.bf16.mxu0 %v8460_v36  ;;  %4076 = vmatprep.subr.bf16.mxu1 %v8462_v46 }
 0xb26   :  { %v3773_v13 = vpop.f32.mrb[68].mxu0  ;;  %v3814_v3 = vpop.f32.mrb[68].mxu1 }
 0xb27   :  { %v3821_v59 = vadd.f32 %v3773_v13, %v8622_v49  ;;  %v3823_v9 = vadd.f32 %v3814_v3, %v8625_v4  ;;  %v3775_v47 = vpop.f32.mrb[69].mxu0  ;;  %v3816_v37 = vpop.f32.mrb[69].mxu1 }
 0xb28   :  { %v3822_v42 = vadd.f32 %v3775_v47, %v8627_v20  ;;  %v3824_v0 = vadd.f32 %v3816_v37, %v8630_v23  ;;  %v3777_v60 = vpop.f32.mrb[70].mxu0  ;;  %v3818_v2 = vpop.f32.mrb[70].mxu1 }
 0xb29   :  { %v6535_v61 = vmul.f32 -1.442695, %v3821_v59  ;;  %v3778_v50 = vpop.f32.mrb[71].mxu0  ;;  %v3819_v51 = vpop.f32.mrb[71].mxu1  ;;  %v6537_v63 = vmul.f32 -1.442695, %v3823_v9 }
 0xb2a   :  { %v6536_v25 = vmul.f32 -1.442695, %v3822_v42  ;;  %v9690_v2 = vld [vmem:[#allocation48_spill] sm:$0xff]  ;;  %v9691_v50 = vld [vmem:[#allocation49_spill] sm:$0xff] }
 0xb2b   :  { %6928 = vpow2.f32 %v6535_v61 }
 0xb2c   :  { %6930 = vpow2.f32 %v6536_v25 }
 0xb2d   :  { %6932 = vtanh.f32 %v3824_v0 }
 0xb2e   :  { %6934 = vpow2.f32 %v6537_v63 }
 0xb35   :  { %v6929_v14 = vpop.eup %6928 }
 0xb36   :  { %v3834_v5 = vadd.f32 1.0, %v6929_v14  ;;  %v6931_v49 = vpop.eup %6930 }
 0xb37   :  { %v3835_v4 = vadd.f32 1.0, %v6931_v49  ;;  %v6933_v20 = vpop.eup %6932 }
 0xb38   :  { %6936 = vrcp.f32 %v3834_v5  ;;  %v6935_v28 = vpop.eup %6934 }
 0xb39   :  { %6938 = vrcp.f32 %v3835_v4  ;;  %v3836_v48 = vadd.f32 1.0, %v6935_v28 }
 0xb3b   :  { %6940 = vrcp.f32 %v3836_v48 }
 0xb42   :  { %v6937_v23 = vpop.eup %6936 }
 0xb43   :  { %v3845_v7 = vmul.f32 %v6937_v23, %v6933_v20  ;;  %v6939_v39 = vpop.eup %6938 }
 0xb44   :  { %v3844_v34 = vmul.f32 %v6939_v39, %v8696_v44 }
 0xb45   :  { %v6941_v13 = vpop.eup %6940 }
 0xb46   :  { %v8742_v62 = vadd.f32 %v3845_v7, %v3844_v34 }
 0xb48   :  { %6942 = vtanh.f32 %v8742_v62 }
 0xb52   :  { %v6943_v3 = vpop.eup %6942 }
 0xb53   :  { %v3848_v59 = vmul.f32 %v6943_v3, %v6941_v13 }
 0xb55   :  { %v3854_v9 = vpack.c.bf16 %v3848_v59, %v3848_v59  ;;  %v8746_v47 = vpack.c.bf16 %v3848_v59, %v8699_v45 }
 0xb57   :  { %3920 = vmatmul.mubr.bf16.vlgmr.msra.gmra.mrb[72].mxu0 %v3854_v9  ;;  %3961 = vmatmul.mubr.bf16.vlgmr.msra.gmra.mrb[72].mxu1 %v3854_v9 }
 0xb58   :  { %4036 = vmatpush1.bf16.msra.mxu0 %v8466_v10  ;;  %4077 = vmatpush1.bf16.msra.mxu1 %v8468_v12 }
 0xb59   :  { %4037 = vmatprep.subr.bf16.mxu0 %v8470_v15  ;;  %4078 = vmatprep.subr.bf16.mxu1 %v8472_v16 }
 0xb5a   :  { %4067 = vmatprep.mubr.bf16.mxu0 %v9642_v52  ;;  %4108 = vmatprep.mubr.bf16.mxu1 %v9642_v52 }
 0xb5c   :  { %4038 = vmatpush1.bf16.msra.mxu0 %v8480_v18  ;;  %4079 = vmatpush1.bf16.msra.mxu1 %v8482_v43 }
 0xb5d   :  { %4039 = vmatprep.subr.bf16.mxu0 %v8486_v24  ;;  %4080 = vmatprep.subr.bf16.mxu1 %v8488_v21 }
 0xb60   :  { %4040 = vmatpush1.bf16.msra.mxu0 %v8494_v1  ;;  %4081 = vmatpush1.bf16.msra.mxu1 %v8496_v22 }
 0xb61   :  { %4041 = vmatprep.subr.bf16.mxu0 %v8498_v26  ;;  %4082 = vmatprep.subr.bf16.mxu1 %v8500_v11 }
 0xb64   :  { %4042 = vmatpush1.bf16.msra.mxu0 %v8508_v27  ;;  %4083 = vmatpush1.bf16.msra.mxu1 %v8510_v29 }
 0xb65   :  { %4043 = vmatprep.subr.bf16.mxu0 %v8514_v30  ;;  %4084 = vmatprep.subr.bf16.mxu1 %v8516_v31 }
 0xb68   :  { %4044 = vmatpush1.bf16.msra.mxu0 %v8522_v19  ;;  %4085 = vmatpush1.bf16.msra.mxu1 %v8524_v32 }
 0xb69   :  { %4045 = vmatprep.subr.bf16.mxu0 %v8526_v41  ;;  %4086 = vmatprep.subr.bf16.mxu1 %v8528_v17 }
 0xb6c   :  { %4046 = vmatpush1.bf16.msra.mxu0 %v8536_v35  ;;  %4087 = vmatpush1.bf16.msra.mxu1 %v8538_v54 }
 0xb6d   :  { %4047 = vmatprep.subr.bf16.mxu0 %v8542_v53  ;;  %4088 = vmatprep.subr.bf16.mxu1 %v8544_v55 }
 0xb70   :  { %4048 = vmatpush1.bf16.msra.mxu0 %v8550_v33  ;;  %4089 = vmatpush1.bf16.msra.mxu1 %v8552_v58 }
 0xb71   :  { %4049 = vmatprep.subr.bf16.mxu0 %v8554_v56  ;;  %4090 = vmatprep.subr.bf16.mxu1 %v8556_v57 }
 0xb74   :  { %4050 = vmatpush1.bf16.msra.mxu0 %v8564_v6  ;;  %4091 = vmatpush1.bf16.msra.mxu1 %v8566_v8 }
 0xb75   :  { %4183 = vmatprep.subr.bf16.mxu0 %v8460_v36  ;;  %4224 = vmatprep.subr.bf16.mxu1 %v8462_v46 }
 0xc2a   :  { %v3921_v44 = vpop.f32.mrb[72].mxu0  ;;  %v3962_v45 = vpop.f32.mrb[72].mxu1 }
 0xc2b   :  { %v3969_v37 = vadd.f32 %v3921_v44, %v8632_v38  ;;  %v3971_v42 = vadd.f32 %v3962_v45, %v8635_v40  ;;  %v3923_v0 = vpop.f32.mrb[73].mxu0  ;;  %v3964_v60 = vpop.f32.mrb[73].mxu1 }
 0xc2c   :  { %v3970_v61 = vadd.f32 %v3923_v0, %v9690_v2  ;;  %v3972_v51 = vadd.f32 %v3964_v60, %v9691_v50  ;;  %v3925_v25 = vpop.f32.mrb[74].mxu0  ;;  %v3966_v63 = vpop.f32.mrb[74].mxu1  ;;  %v8841_v50 = vld [vmem:[#allocation5 + $0x18] sm:$0xff] }
 0xc2d   :  { %v6538_v14 = vmul.f32 -1.442695, %v3969_v37  ;;  %v3926_v5 = vpop.f32.mrb[75].mxu0  ;;  %v3967_v49 = vpop.f32.mrb[75].mxu1  ;;  %v6540_v46 = vmul.f32 -1.442695, %v3971_v42 }
 0xc2e   :  { %v6539_v36 = vmul.f32 -1.442695, %v3970_v61  ;;  %v8839_v61 = vld [vmem:[#allocation5 + $0x8] sm:$0xff]  ;;  %v8847_v25 = vld [vmem:[#allocation5 + $0x10] sm:$0xff]  ;;  %v8857_v5 = vld [vmem:[#allocation5 + $0x20] sm:$0xff] }
 0xc2f   :  { %6944 = vpow2.f32 %v6538_v14  ;;  %v8851_v63 = vld [vmem:[#allocation5 + $0x28] sm:$0xff]  ;;  %v8853_v14 = vld [vmem:[#allocation5 + $0x38] sm:$0xff]  ;;  %v8859_v49 = vld [vmem:[#allocation5 + $0x30] sm:$0xff] }
 0xc30   :  { %6946 = vpow2.f32 %v6539_v36  ;;  %v8863_v36 = vld [vmem:[#allocation5 + $0x48] sm:$0xff] }
 0xc31   :  { %6948 = vtanh.f32 %v3972_v51  ;;  %v8845_v51 = vld [vmem:[#allocation5] sm:$0xff] }
 0xc32   :  { %6950 = vpow2.f32 %v6540_v46  ;;  %v8865_v46 = vld [vmem:[#allocation5 + $0x58] sm:$0xff] }
 0xc39   :  { %v6945_v4 = vpop.eup %6944 }
 0xc3a   :  { %v3982_v20 = vadd.f32 1.0, %v6945_v4  ;;  %v6947_v38 = vpop.eup %6946  ;;  %v8869_v4 = vld [vmem:[#allocation5 + $0x40] sm:$0xff] }
 0xc3b   :  { %v3983_v40 = vadd.f32 1.0, %v6947_v38  ;;  %v6949_v28 = vpop.eup %6948  ;;  %v8875_v38 = vld [vmem:[#allocation5 + $0x68] sm:$0xff] }
 0xc3c   :  { %6952 = vrcp.f32 %v3982_v20  ;;  %v6951_v23 = vpop.eup %6950  ;;  %v8871_v20 = vld [vmem:[#allocation5 + $0x50] sm:$0xff] }
 0xc3d   :  { %6954 = vrcp.f32 %v3983_v40  ;;  %v3984_v34 = vadd.f32 1.0, %v6951_v23  ;;  %v8877_v40 = vld [vmem:[#allocation5 + $0x78] sm:$0xff]  ;;  %v8883_v23 = vld [vmem:[#allocation5 + $0x70] sm:$0xff] }
 0xc3f   :  { %6956 = vrcp.f32 %v3984_v34  ;;  %v8895_v34 = vld [vmem:[#allocation5 + $0x90] sm:$0xff] }
 0xc46   :  { %v6953_v7 = vpop.eup %6952 }
 0xc47   :  { %v3993_v39 = vmul.f32 %v6953_v7, %v6949_v28  ;;  %v6955_v48 = vpop.eup %6954  ;;  %v8881_v28 = vld [vmem:[#allocation5 + $0x60] sm:$0xff]  ;;  %v8887_v7 = vld [vmem:[#allocation5 + $0x88] sm:$0xff] }
 0xc48   :  { %v3992_v13 = vmul.f32 %v6955_v48, %v8742_v62  ;;  %v8893_v48 = vld [vmem:[#allocation5 + $0x80] sm:$0xff] }
 0xc49   :  { %v6957_v59 = vpop.eup %6956 }
 0xc4a   :  { %v8787_v3 = vadd.f32 %v3993_v39, %v3992_v13  ;;  %v8889_v39 = vld [vmem:[#allocation5 + $0x98] sm:$0xff]  ;;  %v8899_v13 = vld [vmem:[#allocation5 + $0xa8] sm:$0xff] }
 0xc4c   :  { %6958 = vtanh.f32 %v8787_v3 }
 0xc56   :  { %v6959_v9 = vpop.eup %6958 }
 0xc57   :  { %v8790_v44 = vmul.f32 %v6959_v9, %v6957_v59  ;;  %v8905_v59 = vld [vmem:[#allocation5 + $0xa0] sm:$0xff]  ;;  %v8907_v9 = vld [vmem:[#allocation5 + $0xb0] sm:$0xff] }
 0xc59   :  { %v4002_v45 = vpack.c.bf16 %v8790_v44, %v8790_v44 }
 0xc5b   :  { %4068 = vmatmul.mubr.bf16.vlgmr.msra.gmra.mrb[76].mxu0 %v4002_v45  ;;  %4109 = vmatmul.mubr.bf16.vlgmr.msra.gmra.mrb[76].mxu1 %v4002_v45  ;;  %v8911_v45 = vld [vmem:[#allocation5 + $0xd8] sm:$0xff] }
 0xc5c   :  { %4184 = vmatpush1.bf16.msra.mxu0 %v8466_v10  ;;  %4225 = vmatpush1.bf16.msra.mxu1 %v8468_v12 }
 0xc5d   :  { %4185 = vmatprep.subr.bf16.mxu0 %v8470_v15  ;;  %4226 = vmatprep.subr.bf16.mxu1 %v8472_v16  ;;  %v9692_v15 = vld [vmem:[#allocation50_spill] sm:$0xff] }
 0xc5e   :  { %4215 = vmatprep.mubr.bf16.mxu0 %v9642_v52  ;;  %4256 = vmatprep.mubr.bf16.mxu1 %v9642_v52 }
 0xc60   :  { %4186 = vmatpush1.bf16.msra.mxu0 %v8480_v18  ;;  %4227 = vmatpush1.bf16.msra.mxu1 %v8482_v43  ;;  %v9693_v18 = vld [vmem:[#allocation51_spill] sm:$0xff] }
 0xc61   :  { %4187 = vmatprep.subr.bf16.mxu0 %v8486_v24  ;;  %4228 = vmatprep.subr.bf16.mxu1 %v8488_v21 }
 0xc64   :  { %4188 = vmatpush1.bf16.msra.mxu0 %v8494_v1  ;;  %4229 = vmatpush1.bf16.msra.mxu1 %v8496_v22  ;;  %v9694_v1 = vld [vmem:[#allocation52_spill] sm:$0xff] }
 0xc65   :  { %4189 = vmatprep.subr.bf16.mxu0 %v8498_v26  ;;  %4230 = vmatprep.subr.bf16.mxu1 %v8500_v11  ;;  %v9695_v26 = vld [vmem:[#allocation53_spill] sm:$0xff] }
 0xc68   :  { %4190 = vmatpush1.bf16.msra.mxu0 %v8508_v27  ;;  %4231 = vmatpush1.bf16.msra.mxu1 %v8510_v29 }
 0xc69   :  { %4191 = vmatprep.subr.bf16.mxu0 %v8514_v30  ;;  %4232 = vmatprep.subr.bf16.mxu1 %v8516_v31 }
 0xc6c   :  { %4192 = vmatpush1.bf16.msra.mxu0 %v8522_v19  ;;  %4233 = vmatpush1.bf16.msra.mxu1 %v8524_v32 }
 0xc6d   :  { %4193 = vmatprep.subr.bf16.mxu0 %v8526_v41  ;;  %4234 = vmatprep.subr.bf16.mxu1 %v8528_v17 }
 0xc70   :  { %4194 = vmatpush1.bf16.msra.mxu0 %v8536_v35  ;;  %4235 = vmatpush1.bf16.msra.mxu1 %v8538_v54 }
 0xc71   :  { %4195 = vmatprep.subr.bf16.mxu0 %v8542_v53  ;;  %4236 = vmatprep.subr.bf16.mxu1 %v8544_v55 }
 0xc74   :  { %4196 = vmatpush1.bf16.msra.mxu0 %v8550_v33  ;;  %4237 = vmatpush1.bf16.msra.mxu1 %v8552_v58 }
 0xc75   :  { %4197 = vmatprep.subr.bf16.mxu0 %v8554_v56  ;;  %4238 = vmatprep.subr.bf16.mxu1 %v8556_v57 }
 0xc78   :  { %4198 = vmatpush1.bf16.msra.mxu0 %v8564_v6  ;;  %4239 = vmatpush1.bf16.msra.mxu1 %v8566_v8 }
 0xc79   :  { %4331 = vmatprep.subr.bf16.mxu0 %v8839_v61  ;;  %4372 = vmatprep.subr.bf16.mxu1 %v8841_v50 }
 0xd2e   :  { %v4069_v10 = vpop.f32.mrb[76].mxu0  ;;  %v4110_v12 = vpop.f32.mrb[76].mxu1 }
 0xd2f   :  { %v4117_v16 = vadd.f32 %v4069_v10, %v9692_v15  ;;  %v4119_v43 = vadd.f32 %v4110_v12, %v9693_v18  ;;  %v4071_v24 = vpop.f32.mrb[77].mxu0  ;;  %v4112_v21 = vpop.f32.mrb[77].mxu1  ;;  %v8917_v10 = vld [vmem:[#allocation5 + $0xc0] sm:$0xff]  ;;  %v8919_v12 = vld [vmem:[#allocation5 + $0xd0] sm:$0xff]  ;;  %v8921_v15 = vld [vmem:[#allocation5 + $0xe8] sm:$0xff] }
 0xd30   :  { %v4118_v22 = vadd.f32 %v4071_v24, %v9694_v1  ;;  %v4120_v11 = vadd.f32 %v4112_v21, %v9695_v26  ;;  %v4073_v27 = vpop.f32.mrb[78].mxu0  ;;  %v4114_v29 = vpop.f32.mrb[78].mxu1  ;;  %v8929_v18 = vld [vmem:[#allocation5 + $0xe0] sm:$0xff]  ;;  %v9697_v26 = vld [vmem:[#allocation55_spill] sm:$0xff] }
 0xd31   :  { %v6541_v30 = vmul.f32 -1.442695, %v4117_v16  ;;  %v4074_v31 = vpop.f32.mrb[79].mxu0  ;;  %v4115_v19 = vpop.f32.mrb[79].mxu1  ;;  %v6543_v41 = vmul.f32 -1.442695, %v4119_v43 }
 0xd32   :  { %v6542_v32 = vmul.f32 -1.442695, %v4118_v22  ;;  %v8923_v16 = vld [vmem:[#allocation5 + $0xf8] sm:$0xff]  ;;  %v8931_v43 = vld [vmem:[#allocation5 + $0xf0] sm:$0xff]  ;;  %v9696_v1 = vld [vmem:[#allocation54_spill] sm:$0xff] }
 0xd33   :  { %6960 = vpow2.f32 %v6541_v30  ;;  %v9698_v30 = vld [vmem:[#allocation56_spill] sm:$0xff]  ;;  %v9699_v19 = vld [vmem:[#allocation57_spill] sm:$0xff] }
 0xd34   :  { %6962 = vpow2.f32 %v6542_v32 }
 0xd35   :  { %6964 = vtanh.f32 %v4120_v11 }
 0xd36   :  { %6966 = vpow2.f32 %v6543_v41 }
 0xd3d   :  { %v6961_v17 = vpop.eup %6960 }
 0xd3e   :  { %v4130_v35 = vadd.f32 1.0, %v6961_v17  ;;  %v6963_v54 = vpop.eup %6962 }
 0xd3f   :  { %v4131_v53 = vadd.f32 1.0, %v6963_v54  ;;  %v6965_v55 = vpop.eup %6964 }
 0xd40   :  { %6968 = vrcp.f32 %v4130_v35  ;;  %v6967_v33 = vpop.eup %6966 }
 0xd41   :  { %6970 = vrcp.f32 %v4131_v53  ;;  %v4132_v6 = vadd.f32 1.0, %v6967_v33 }
 0xd43   :  { %6972 = vrcp.f32 %v4132_v6 }
 0xd4a   :  { %v6969_v58 = vpop.eup %6968 }
 0xd4b   :  { %v4141_v56 = vmul.f32 %v6969_v58, %v6965_v55  ;;  %v6971_v57 = vpop.eup %6970 }
 0xd4c   :  { %v4140_v8 = vmul.f32 %v6971_v57, %v8787_v3  ;;  %v8901_v3 = vld [vmem:[#allocation5 + $0xb8] sm:$0xff] }
 0xd4d   :  { %v6973_v37 = vpop.eup %6972 }
 0xd4e   :  { %v8831_v62 = vadd.f32 %v4141_v56, %v4140_v8 }
 0xd50   :  { %6974 = vtanh.f32 %v8831_v62 }
 0xd5a   :  { %v6975_v42 = vpop.eup %6974 }
 0xd5b   :  { %v4144_v0 = vmul.f32 %v6975_v42, %v6973_v37 }
 0xd5d   :  { %v4150_v60 = vpack.c.bf16 %v4144_v0, %v4144_v0  ;;  %v8835_v2 = vpack.c.bf16 %v4144_v0, %v8790_v44  ;;  %v8909_v44 = vld [vmem:[#allocation5 + $0xc8] sm:$0xff] }
 0xd5f   :  { %4216 = vmatmul.mubr.bf16.vlgmr.msra.gmra.mrb[80].mxu0 %v4150_v60  ;;  %4257 = vmatmul.mubr.bf16.vlgmr.msra.gmra.mrb[80].mxu1 %v4150_v60 }
 0xd60   :  { %4363 = vmatprep.mubr.bf16.mxu0 %v9642_v52  ;;  %4404 = vmatprep.mubr.bf16.mxu1 %v9642_v52 }
 0xd61   :  { %4332 = vmatpush1.bf16.msra.mxu0 %v8845_v51  ;;  %4373 = vmatpush1.bf16.msra.mxu1 %v8847_v25 }
 0xd62   :  { %4333 = vmatprep.subr.bf16.mxu0 %v8851_v63  ;;  %4374 = vmatprep.subr.bf16.mxu1 %v8853_v14 }
 0xd65   :  { %4334 = vmatpush1.bf16.msra.mxu0 %v8857_v5  ;;  %4375 = vmatpush1.bf16.msra.mxu1 %v8859_v49 }
 0xd66   :  { %4335 = vmatprep.subr.bf16.mxu0 %v8863_v36  ;;  %4376 = vmatprep.subr.bf16.mxu1 %v8865_v46 }
 0xd69   :  { %4336 = vmatpush1.bf16.msra.mxu0 %v8869_v4  ;;  %4377 = vmatpush1.bf16.msra.mxu1 %v8871_v20 }
 0xd6a   :  { %4337 = vmatprep.subr.bf16.mxu0 %v8875_v38  ;;  %4378 = vmatprep.subr.bf16.mxu1 %v8877_v40 }
 0xd6d   :  { %4338 = vmatpush1.bf16.msra.mxu0 %v8881_v28  ;;  %4379 = vmatpush1.bf16.msra.mxu1 %v8883_v23 }
 0xd6e   :  { %4339 = vmatprep.subr.bf16.mxu0 %v8887_v7  ;;  %4380 = vmatprep.subr.bf16.mxu1 %v8889_v39 }
 0xd71   :  { %4340 = vmatpush1.bf16.msra.mxu0 %v8893_v48  ;;  %4381 = vmatpush1.bf16.msra.mxu1 %v8895_v34 }
 0xd72   :  { %4341 = vmatprep.subr.bf16.mxu0 %v8899_v13  ;;  %4382 = vmatprep.subr.bf16.mxu1 %v8901_v3 }
 0xd75   :  { %4342 = vmatpush1.bf16.msra.mxu0 %v8905_v59  ;;  %4383 = vmatpush1.bf16.msra.mxu1 %v8907_v9 }
 0xd76   :  { %4343 = vmatprep.subr.bf16.mxu0 %v8909_v44  ;;  %4384 = vmatprep.subr.bf16.mxu1 %v8911_v45 }
 0xd79   :  { %4344 = vmatpush1.bf16.msra.mxu0 %v8917_v10  ;;  %4385 = vmatpush1.bf16.msra.mxu1 %v8919_v12 }
 0xd7a   :  { %4345 = vmatprep.subr.bf16.mxu0 %v8921_v15  ;;  %4386 = vmatprep.subr.bf16.mxu1 %v8923_v16 }
 0xd7d   :  { %4346 = vmatpush1.bf16.msra.mxu0 %v8929_v18  ;;  %4387 = vmatpush1.bf16.msra.mxu1 %v8931_v43 }
 0xd7e   :  { %4479 = vmatprep.subr.bf16.mxu0 %v8839_v61  ;;  %4520 = vmatprep.subr.bf16.mxu1 %v8841_v50 }
 0xe32   :  { %v4217_v24 = vpop.f32.mrb[80].mxu0  ;;  %v4258_v21 = vpop.f32.mrb[80].mxu1 }
 0xe33   :  { %v4265_v22 = vadd.f32 %v4217_v24, %v9696_v1  ;;  %v4267_v11 = vadd.f32 %v4258_v21, %v9697_v26  ;;  %v4219_v27 = vpop.f32.mrb[81].mxu0  ;;  %v4260_v29 = vpop.f32.mrb[81].mxu1 }
 0xe34   :  { %v4266_v31 = vadd.f32 %v4219_v27, %v9698_v30  ;;  %v4268_v32 = vadd.f32 %v4260_v29, %v9699_v19  ;;  %v4221_v41 = vpop.f32.mrb[82].mxu0  ;;  %v4262_v17 = vpop.f32.mrb[82].mxu1  ;;  %v9700_v30 = vld [vmem:[#allocation58_spill] sm:$0xff]  ;;  %v9701_v19 = vld [vmem:[#allocation59_spill] sm:$0xff] }
 0xe35   :  { %v6544_v35 = vmul.f32 -1.442695, %v4265_v22  ;;  %v4222_v54 = vpop.f32.mrb[83].mxu0  ;;  %v4263_v53 = vpop.f32.mrb[83].mxu1  ;;  %v6546_v33 = vmul.f32 -1.442695, %v4267_v11 }
 0xe36   :  { %v6545_v55 = vmul.f32 -1.442695, %v4266_v31  ;;  %v9703_v53 = vld [vmem:[#allocation61_spill] sm:$0xff] }
 0xe37   :  { %6976 = vpow2.f32 %v6544_v35  ;;  %v9702_v35 = vld [vmem:[#allocation60_spill] sm:$0xff] }
 0xe38   :  { %6978 = vpow2.f32 %v6545_v55 }
 0xe39   :  { %6980 = vtanh.f32 %v4268_v32 }
 0xe3a   :  { %6982 = vpow2.f32 %v6546_v33 }
 0xe41   :  { %v6977_v58 = vpop.eup %6976 }
 0xe42   :  { %v4278_v56 = vadd.f32 1.0, %v6977_v58  ;;  %v6979_v57 = vpop.eup %6978 }
 0xe43   :  { %v4279_v6 = vadd.f32 1.0, %v6979_v57  ;;  %v6981_v8 = vpop.eup %6980 }
 0xe44   :  { %6984 = vrcp.f32 %v4278_v56  ;;  %v6983_v37 = vpop.eup %6982 }
 0xe45   :  { %6986 = vrcp.f32 %v4279_v6  ;;  %v4280_v24 = vadd.f32 1.0, %v6983_v37 }
 0xe47   :  { %6988 = vrcp.f32 %v4280_v24 }
 0xe4e   :  { %v6985_v42 = vpop.eup %6984 }
 0xe4f   :  { %v4289_v0 = vmul.f32 %v6985_v42, %v6981_v8  ;;  %v6987_v60 = vpop.eup %6986 }
 0xe50   :  { %v4288_v21 = vmul.f32 %v6987_v60, %v8831_v62 }
 0xe51   :  { %v6989_v22 = vpop.eup %6988 }
 0xe52   :  { %v8942_v1 = vadd.f32 %v4289_v0, %v4288_v21 }
 0xe54   :  { %6990 = vtanh.f32 %v8942_v1 }
 0xe5e   :  { %v6991_v26 = vpop.eup %6990 }
 0xe5f   :  { %v8945_v11 = vmul.f32 %v6991_v26, %v6989_v22 }
 0xe61   :  { %v4298_v27 = vpack.c.bf16 %v8945_v11, %v8945_v11 }
 0xe63   :  { %4364 = vmatmul.mubr.bf16.vlgmr.msra.gmra.mrb[84].mxu0 %v4298_v27  ;;  %4405 = vmatmul.mubr.bf16.vlgmr.msra.gmra.mrb[84].mxu1 %v4298_v27 }
 0xe64   :  { %4480 = vmatpush1.bf16.msra.mxu0 %v8845_v51  ;;  %4521 = vmatpush1.bf16.msra.mxu1 %v8847_v25 }
 0xe65   :  { %4481 = vmatprep.subr.bf16.mxu0 %v8851_v63  ;;  %4522 = vmatprep.subr.bf16.mxu1 %v8853_v14 }
 0xe66   :  { %4511 = vmatprep.mubr.bf16.mxu0 %v9642_v52  ;;  %4552 = vmatprep.mubr.bf16.mxu1 %v9642_v52 }
 0xe68   :  { %4482 = vmatpush1.bf16.msra.mxu0 %v8857_v5  ;;  %4523 = vmatpush1.bf16.msra.mxu1 %v8859_v49 }
 0xe69   :  { %4483 = vmatprep.subr.bf16.mxu0 %v8863_v36  ;;  %4524 = vmatprep.subr.bf16.mxu1 %v8865_v46 }
 0xe6c   :  { %4484 = vmatpush1.bf16.msra.mxu0 %v8869_v4  ;;  %4525 = vmatpush1.bf16.msra.mxu1 %v8871_v20 }
 0xe6d   :  { %4485 = vmatprep.subr.bf16.mxu0 %v8875_v38  ;;  %4526 = vmatprep.subr.bf16.mxu1 %v8877_v40 }
 0xe70   :  { %4486 = vmatpush1.bf16.msra.mxu0 %v8881_v28  ;;  %4527 = vmatpush1.bf16.msra.mxu1 %v8883_v23 }
 0xe71   :  { %4487 = vmatprep.subr.bf16.mxu0 %v8887_v7  ;;  %4528 = vmatprep.subr.bf16.mxu1 %v8889_v39 }
 0xe74   :  { %4488 = vmatpush1.bf16.msra.mxu0 %v8893_v48  ;;  %4529 = vmatpush1.bf16.msra.mxu1 %v8895_v34 }
 0xe75   :  { %4489 = vmatprep.subr.bf16.mxu0 %v8899_v13  ;;  %4530 = vmatprep.subr.bf16.mxu1 %v8901_v3 }
 0xe78   :  { %4490 = vmatpush1.bf16.msra.mxu0 %v8905_v59  ;;  %4531 = vmatpush1.bf16.msra.mxu1 %v8907_v9 }
 0xe79   :  { %4491 = vmatprep.subr.bf16.mxu0 %v8909_v44  ;;  %4532 = vmatprep.subr.bf16.mxu1 %v8911_v45 }
 0xe7c   :  { %4492 = vmatpush1.bf16.msra.mxu0 %v8917_v10  ;;  %4533 = vmatpush1.bf16.msra.mxu1 %v8919_v12 }
 0xe7d   :  { %4493 = vmatprep.subr.bf16.mxu0 %v8921_v15  ;;  %4534 = vmatprep.subr.bf16.mxu1 %v8923_v16 }
 0xe80   :  { %4494 = vmatpush1.bf16.msra.mxu0 %v8929_v18  ;;  %4535 = vmatpush1.bf16.msra.mxu1 %v8931_v43 }
 0xe81   :  { %4627 = vmatprep.subr.bf16.mxu0 %v8839_v61  ;;  %4668 = vmatprep.subr.bf16.mxu1 %v8841_v50 }
 0xf36   :  { %v4365_v62 = vpop.f32.mrb[84].mxu0  ;;  %v4406_v29 = vpop.f32.mrb[84].mxu1 }
 0xf37   :  { %v4413_v31 = vadd.f32 %v4365_v62, %v9700_v30  ;;  %v4415_v32 = vadd.f32 %v4406_v29, %v9701_v19  ;;  %v4367_v41 = vpop.f32.mrb[85].mxu0  ;;  %v4408_v17 = vpop.f32.mrb[85].mxu1 }
 0xf38   :  { %v4414_v54 = vadd.f32 %v4367_v41, %v9702_v35  ;;  %v4416_v55 = vadd.f32 %v4408_v17, %v9703_v53  ;;  %v4369_v33 = vpop.f32.mrb[86].mxu0  ;;  %v4410_v58 = vpop.f32.mrb[86].mxu1 }
 0xf39   :  { %v6547_v56 = vmul.f32 -1.442695, %v4413_v31  ;;  %v4370_v57 = vpop.f32.mrb[87].mxu0  ;;  %v4411_v6 = vpop.f32.mrb[87].mxu1  ;;  %v6549_v50 = vmul.f32 -1.442695, %v4415_v32 }
 0xf3a   :  { %v6548_v61 = vmul.f32 -1.442695, %v4414_v54  ;;  %v9708_v33 = vld [vmem:[#allocation66_spill] sm:$0xff] }
 0xf3b   :  { %6992 = vpow2.f32 %v6547_v56  ;;  %v9709_v56 = vld [vmem:[#allocation67_spill] sm:$0xff] }
 0xf3c   :  { %6994 = vpow2.f32 %v6548_v61 }
 0xf3d   :  { %6996 = vtanh.f32 %v4416_v55 }
 0xf3e   :  { %6998 = vpow2.f32 %v6549_v50  ;;  %v9710_v50 = vld [vmem:[#allocation68_spill] sm:$0xff] }
 0xf45   :  { %v6993_v8 = vpop.eup %6992 }
 0xf46   :  { %v4426_v37 = vadd.f32 1.0, %v6993_v8  ;;  %v6995_v42 = vpop.eup %6994 }
 0xf47   :  { %v4427_v0 = vadd.f32 1.0, %v6995_v42  ;;  %v6997_v60 = vpop.eup %6996 }
 0xf48   :  { %7000 = vrcp.f32 %v4426_v37  ;;  %v6999_v24 = vpop.eup %6998  ;;  %v9711_v37 = vld [vmem:[#allocation69_spill] sm:$0xff] }
 0xf49   :  { %7002 = vrcp.f32 %v4427_v0  ;;  %v4428_v27 = vadd.f32 1.0, %v6999_v24 }
 0xf4b   :  { %7004 = vrcp.f32 %v4428_v27 }
 0xf52   :  { %v7001_v21 = vpop.eup %7000 }
 0xf53   :  { %v4437_v22 = vmul.f32 %v7001_v21, %v6997_v60  ;;  %v7003_v26 = vpop.eup %7002 }
 0xf54   :  { %v4436_v62 = vmul.f32 %v7003_v26, %v8942_v1 }
 0xf55   :  { %v7005_v30 = vpop.eup %7004 }
 0xf56   :  { %v8988_v29 = vadd.f32 %v4437_v22, %v4436_v62 }
 0xf58   :  { %7006 = vtanh.f32 %v8988_v29 }
 0xf62   :  { %v7007_v31 = vpop.eup %7006 }
 0xf63   :  { %v4440_v19 = vmul.f32 %v7007_v31, %v7005_v30 }
 0xf65   :  { %v4446_v32 = vpack.c.bf16 %v4440_v19, %v4440_v19  ;;  %v8992_v41 = vpack.c.bf16 %v4440_v19, %v8945_v11 }
 0xf67   :  { %4512 = vmatmul.mubr.bf16.vlgmr.msra.gmra.mrb[88].mxu0 %v4446_v32  ;;  %4553 = vmatmul.mubr.bf16.vlgmr.msra.gmra.mrb[88].mxu1 %v4446_v32 }
 0xf68   :  { %4628 = vmatpush1.bf16.msra.mxu0 %v8845_v51  ;;  %4669 = vmatpush1.bf16.msra.mxu1 %v8847_v25 }
 0xf69   :  { %4629 = vmatprep.subr.bf16.mxu0 %v8851_v63  ;;  %4670 = vmatprep.subr.bf16.mxu1 %v8853_v14  ;;  %v9704_v63 = vld [vmem:[#allocation62_spill] sm:$0xff] }
 0xf6a   :  { %4659 = vmatprep.mubr.bf16.mxu0 %v9642_v52  ;;  %4700 = vmatprep.mubr.bf16.mxu1 %v9642_v52 }
 0xf6c   :  { %4630 = vmatpush1.bf16.msra.mxu0 %v8857_v5  ;;  %4671 = vmatpush1.bf16.msra.mxu1 %v8859_v49  ;;  %v9705_v5 = vld [vmem:[#allocation63_spill] sm:$0xff] }
 0xf6d   :  { %4631 = vmatprep.subr.bf16.mxu0 %v8863_v36  ;;  %4672 = vmatprep.subr.bf16.mxu1 %v8865_v46 }
 0xf70   :  { %4632 = vmatpush1.bf16.msra.mxu0 %v8869_v4  ;;  %4673 = vmatpush1.bf16.msra.mxu1 %v8871_v20  ;;  %v9706_v4 = vld [vmem:[#allocation64_spill] sm:$0xff] }
 0xf71   :  { %4633 = vmatprep.subr.bf16.mxu0 %v8875_v38  ;;  %4674 = vmatprep.subr.bf16.mxu1 %v8877_v40  ;;  %v9707_v38 = vld [vmem:[#allocation65_spill] sm:$0xff] }
 0xf74   :  { %4634 = vmatpush1.bf16.msra.mxu0 %v8881_v28  ;;  %4675 = vmatpush1.bf16.msra.mxu1 %v8883_v23 }
 0xf75   :  { %4635 = vmatprep.subr.bf16.mxu0 %v8887_v7  ;;  %4676 = vmatprep.subr.bf16.mxu1 %v8889_v39 }
 0xf78   :  { %4636 = vmatpush1.bf16.msra.mxu0 %v8893_v48  ;;  %4677 = vmatpush1.bf16.msra.mxu1 %v8895_v34 }
 0xf79   :  { %4637 = vmatprep.subr.bf16.mxu0 %v8899_v13  ;;  %4678 = vmatprep.subr.bf16.mxu1 %v8901_v3 }
 0xf7c   :  { %4638 = vmatpush1.bf16.msra.mxu0 %v8905_v59  ;;  %4679 = vmatpush1.bf16.msra.mxu1 %v8907_v9 }
 0xf7d   :  { %4639 = vmatprep.subr.bf16.mxu0 %v8909_v44  ;;  %4680 = vmatprep.subr.bf16.mxu1 %v8911_v45 }
 0xf80   :  { %4640 = vmatpush1.bf16.msra.mxu0 %v8917_v10  ;;  %4681 = vmatpush1.bf16.msra.mxu1 %v8919_v12 }
 0xf81   :  { %4641 = vmatprep.subr.bf16.mxu0 %v8921_v15  ;;  %4682 = vmatprep.subr.bf16.mxu1 %v8923_v16 }
 0xf84   :  { %4642 = vmatpush1.bf16.msra.mxu0 %v8929_v18  ;;  %4683 = vmatpush1.bf16.msra.mxu1 %v8931_v43 }
0x103a   :  { %v4513_v51 = vpop.f32.mrb[88].mxu0  ;;  %v4554_v25 = vpop.f32.mrb[88].mxu1 }
0x103b   :  { %v4561_v14 = vadd.f32 %v4513_v51, %v9704_v63  ;;  %v4563_v49 = vadd.f32 %v4554_v25, %v9705_v5  ;;  %v4515_v36 = vpop.f32.mrb[89].mxu0  ;;  %v4556_v46 = vpop.f32.mrb[89].mxu1 }
0x103c   :  { %v4562_v20 = vadd.f32 %v4515_v36, %v9706_v4  ;;  %v4564_v40 = vadd.f32 %v4556_v46, %v9707_v38  ;;  %v4517_v28 = vpop.f32.mrb[90].mxu0  ;;  %v4558_v23 = vpop.f32.mrb[90].mxu1 }
0x103d   :  { %v6550_v7 = vmul.f32 -1.442695, %v4561_v14  ;;  %v4518_v39 = vpop.f32.mrb[91].mxu0  ;;  %v4559_v48 = vpop.f32.mrb[91].mxu1  ;;  %v6552_v13 = vmul.f32 -1.442695, %v4563_v49 }
0x103e   :  { %v6551_v34 = vmul.f32 -1.442695, %v4562_v20 }
0x103f   :  { %7008 = vpow2.f32 %v6550_v7 }
0x1040   :  { %7010 = vpow2.f32 %v6551_v34 }
0x1041   :  { %7012 = vtanh.f32 %v4564_v40 }
0x1042   :  { %7014 = vpow2.f32 %v6552_v13 }
0x1049   :  { %v7009_v3 = vpop.eup %7008 }
0x104a   :  { %v4574_v59 = vadd.f32 1.0, %v7009_v3  ;;  %v7011_v9 = vpop.eup %7010 }
0x104b   :  { %v4575_v44 = vadd.f32 1.0, %v7011_v9  ;;  %v7013_v45 = vpop.eup %7012 }
0x104c   :  { %7016 = vrcp.f32 %v4574_v59  ;;  %v7015_v10 = vpop.eup %7014 }
0x104d   :  { %7018 = vrcp.f32 %v4575_v44  ;;  %v4576_v18 = vadd.f32 1.0, %v7015_v10 }
0x104f   :  { %7020 = vrcp.f32 %v4576_v18 }
0x1056   :  { %v7017_v12 = vpop.eup %7016 }
0x1057   :  { %v4585_v15 = vmul.f32 %v7017_v12, %v7013_v45  ;;  %v7019_v16 = vpop.eup %7018 }
0x1058   :  { %v4584_v43 = vmul.f32 %v7019_v16, %v8988_v29 }
0x1059   :  { %v7021_v11 = vpop.eup %7020 }
0x105a   :  { %v4586_v1 = vadd.f32 %v4585_v15, %v4584_v43 }
0x105c   :  { %7022 = vtanh.f32 %v4586_v1 }
0x1066   :  { %v7023_v17 = vpop.eup %7022 }
0x1067   :  { %v4588_v35 = vmul.f32 %v7023_v17, %v7021_v11 }
0x1069   :  { %v4594_v54 = vpack.c.bf16 %v4588_v35, %v4588_v35 }
0x106b   :  { %4660 = vmatmul.mubr.bf16.vlgmr.msra.gmra.mrb[92].mxu0 %v4594_v54  ;;  %4701 = vmatmul.mubr.bf16.vlgmr.msra.gmra.mrb[92].mxu1 %v4594_v54 }
0x113e   :  { %v4661_v53 = vpop.f32.mrb[92].mxu0  ;;  %v4702_v55 = vpop.f32.mrb[92].mxu1 }
0x113f   :  { %v4709_v58 = vadd.f32 %v4661_v53, %v9708_v33  ;;  %v4711_v57 = vadd.f32 %v4702_v55, %v9709_v56  ;;  %v4663_v6 = vpop.f32.mrb[93].mxu0  ;;  %v4704_v61 = vpop.f32.mrb[93].mxu1 }
0x1140   :  { %v4710_v8 = vadd.f32 %v4663_v6, %v9710_v50  ;;  %v4712_v42 = vadd.f32 %v4704_v61, %v9711_v37  ;;  %v4665_v0 = vpop.f32.mrb[94].mxu0  ;;  %v4706_v60 = vpop.f32.mrb[94].mxu1 }
0x1141   :  { %v6553_v24 = vmul.f32 -1.442695, %v4709_v58  ;;  %v4666_v21 = vpop.f32.mrb[95].mxu0  ;;  %v4707_v22 = vpop.f32.mrb[95].mxu1  ;;  %v6555_v27 = vmul.f32 -1.442695, %v4711_v57 }
0x1142   :  { %v6554_v26 = vmul.f32 -1.442695, %v4710_v8 }
0x1143   :  { %7024 = vpow2.f32 %v6553_v24 }
0x1144   :  { %7026 = vpow2.f32 %v6554_v26 }
0x1145   :  { %7028 = vtanh.f32 %v4712_v42 }
0x1146   :  { %7030 = vpow2.f32 %v6555_v27 }
0x114d   :  { %v7025_v62 = vpop.eup %7024 }
0x114e   :  { %v4722_v29 = vadd.f32 1.0, %v7025_v62  ;;  %v7027_v30 = vpop.eup %7026 }
0x114f   :  { %v4723_v31 = vadd.f32 1.0, %v7027_v30  ;;  %v7029_v19 = vpop.eup %7028 }
0x1150   :  { %7032 = vrcp.f32 %v4722_v29  ;;  %v7031_v32 = vpop.eup %7030 }
0x1151   :  { %7034 = vrcp.f32 %v4723_v31  ;;  %v4724_v14 = vadd.f32 1.0, %v7031_v32 }
0x1153   :  { %7036 = vrcp.f32 %v4724_v14 }
0x115a   :  { %v7033_v51 = vpop.eup %7032 }
0x115b   :  { %v4733_v25 = vmul.f32 %v7033_v51, %v7029_v19  ;;  %v7035_v63 = vpop.eup %7034 }
0x115c   :  { %v4732_v5 = vmul.f32 %v7035_v63, %v4586_v1 }
0x115d   :  { %v7037_v36 = vpop.eup %7036 }
0x115e   :  { %v4734_v49 = vadd.f32 %v4733_v25, %v4732_v5 }
0x1160   :  { %7038 = vtanh.f32 %v4734_v49 }
0x116a   :  { %v7039_v46 = vpop.eup %7038 }
0x116b   :  { %v4736_v4 = vmul.f32 %v7039_v46, %v7037_v36 }
0x116d   :  { %v9035_v20 = vpack.c.bf16 %v4736_v4, %v4588_v35 }
0x116e   :  { %7404 = dma.done.wait [#allocation10 + $0x3], 4096 }
0x116f   :  { %7405 = vsyncadd [#allocation10 + $0x3], 4294963200 }
0x1170   :  { %7406 = dma.done.wait [#allocation10 + $0x4], 4096 }
0x1171   :  { %7407 = vsyncadd [#allocation10 + $0x4], 4294963200 }
0x1172   :  { %7408 = dma.done.wait [#allocation10 + $0x5], 64 }
0x1173   :  { %7409 = vsyncadd [#allocation10 + $0x5], 4294967232  ;;  %4842 = vmatprep.mubr.bf16.mxu0 %v9642_v52  ;;  %4915 = vmatprep.mubr.bf16.mxu1 %v9642_v52  ;;  %v4757_v38 = vld [vmem:[#allocation7 + $0x8] sm:$0xff]  ;;  %v4759_v40 = vld [vmem:[#allocation7 + $0x18] sm:$0xff]  ;;  %vm7436_vm1 = vmmov 0   ;;  %vm6051_vm2 = vcmask 523264  }
0x1174   :  { %v4756_v28 = vld [vmem:[#allocation7] sm:$0xff]  ;;  %4810 = vmatprep.subr.bf16.mxu0 %v4757_v38  ;;  %4883 = vmatprep.subr.bf16.mxu1 %v4759_v40  ;;  %v4758_v23 = vld [vmem:[#allocation7 + $0x10] sm:$0xff]  ;;  %v4761_v7 = vld [vmem:[#allocation7 + $0x28] sm:$0xff] }
0x1175   :  { %v4763_v39 = vld [vmem:[#allocation7 + $0x38] sm:$0xff]  ;;  %4811 = vmatpush1.bf16.msra.mxu0 %v4756_v28  ;;  %4884 = vmatpush1.bf16.msra.mxu1 %v4758_v23  ;;  %v4760_v48 = vld [vmem:[#allocation7 + $0x20] sm:$0xff]  ;;  %v4762_v34 = vld [vmem:[#allocation7 + $0x30] sm:$0xff] }
0x1176   :  { %4812 = vmatprep.subr.bf16.mxu0 %v4761_v7  ;;  %4885 = vmatprep.subr.bf16.mxu1 %v4763_v39  ;;  %v4765_v13 = vld [vmem:[#allocation7 + $0x48] sm:$0xff]  ;;  %v4767_v3 = vld [vmem:[#allocation7 + $0x58] sm:$0xff]  ;;  %v4764_v59 = vld [vmem:[#allocation7 + $0x40] sm:$0xff] }
0x1177   :  { %v4766_v9 = vld [vmem:[#allocation7 + $0x50] sm:$0xff]  ;;  %v4769_v44 = vld [vmem:[#allocation7 + $0x68] sm:$0xff]  ;;  %v4771_v45 = vld [vmem:[#allocation7 + $0x78] sm:$0xff] }
0x1178   :  { %v4768_v10 = vld [vmem:[#allocation7 + $0x60] sm:$0xff]  ;;  %v4770_v12 = vld [vmem:[#allocation7 + $0x70] sm:$0xff]  ;;  %v4773_v15 = vld [vmem:[#allocation7 + $0x88] sm:$0xff] }
0x1179   :  { %4813 = vmatpush1.bf16.msra.mxu0 %v4760_v48  ;;  %4886 = vmatpush1.bf16.msra.mxu1 %v4762_v34  ;;  %v4775_v16 = vld [vmem:[#allocation7 + $0x98] sm:$0xff]  ;;  %v4772_v18 = vld [vmem:[#allocation7 + $0x80] sm:$0xff]  ;;  %v4774_v43 = vld [vmem:[#allocation7 + $0x90] sm:$0xff] }
0x117a   :  { %4814 = vmatprep.subr.bf16.mxu0 %v4765_v13  ;;  %4887 = vmatprep.subr.bf16.mxu1 %v4767_v3  ;;  %v4777_v1 = vld [vmem:[#allocation7 + $0xa8] sm:$0xff]  ;;  %v4779_v11 = vld [vmem:[#allocation7 + $0xb8] sm:$0xff]  ;;  %v4776_v17 = vld [vmem:[#allocation7 + $0xa0] sm:$0xff] }
0x117b   :  { %v4778_v35 = vld [vmem:[#allocation7 + $0xb0] sm:$0xff]  ;;  %v4781_v54 = vld [vmem:[#allocation7 + $0xc8] sm:$0xff]  ;;  %v4783_v53 = vld [vmem:[#allocation7 + $0xd8] sm:$0xff] }
0x117c   :  { %v4780_v55 = vld [vmem:[#allocation7 + $0xc0] sm:$0xff]  ;;  %v4782_v33 = vld [vmem:[#allocation7 + $0xd0] sm:$0xff]  ;;  %v4785_v58 = vld [vmem:[#allocation7 + $0xe8] sm:$0xff] }
0x117d   :  { %4815 = vmatpush1.bf16.msra.mxu0 %v4764_v59  ;;  %4888 = vmatpush1.bf16.msra.mxu1 %v4766_v9  ;;  %v4787_v56 = vld [vmem:[#allocation7 + $0xf8] sm:$0xff]  ;;  %v4784_v57 = vld [vmem:[#allocation7 + $0xe0] sm:$0xff]  ;;  %v4786_v6 = vld [vmem:[#allocation7 + $0xf0] sm:$0xff] }
0x117e   :  { %4816 = vmatprep.subr.bf16.mxu0 %v4769_v44  ;;  %4889 = vmatprep.subr.bf16.mxu1 %v4771_v45  ;;  %v9039_v61 = vld [vmem:[#allocation8 + $0x8] sm:$0xff]  ;;  %v9041_v50 = vld [vmem:[#allocation8 + $0x18] sm:$0xff]  ;;  %v9045_v8 = vld [vmem:[#allocation8] sm:$0xff] }
0x117f   :  { %v9047_v37 = vld [vmem:[#allocation8 + $0x10] sm:$0xff]  ;;  %v9049_v42 = vld [vmem:[#allocation8 + $0x28] sm:$0xff]  ;;  %v9051_v0 = vld [vmem:[#allocation8 + $0x38] sm:$0xff] }
0x1180   :  { %v9059_v60 = vld [vmem:[#allocation8 + $0x20] sm:$0xff]  ;;  %v9061_v24 = vld [vmem:[#allocation8 + $0x30] sm:$0xff]  ;;  %v9065_v21 = vld [vmem:[#allocation8 + $0x48] sm:$0xff] }
0x1181   :  { %4817 = vmatpush1.bf16.msra.mxu0 %v4768_v10  ;;  %4890 = vmatpush1.bf16.msra.mxu1 %v4770_v12  ;;  %v9067_v22 = vld [vmem:[#allocation8 + $0x58] sm:$0xff]  ;;  %v9075_v26 = vld [vmem:[#allocation8 + $0x50] sm:$0xff]  ;;  %v9077_v27 = vld [vmem:[#allocation8 + $0x68] sm:$0xff] }
0x1182   :  { %4818 = vmatprep.subr.bf16.mxu0 %v4773_v15  ;;  %4891 = vmatprep.subr.bf16.mxu1 %v4775_v16  ;;  %v9079_v62 = vld [vmem:[#allocation8 + $0x78] sm:$0xff]  ;;  %v9087_v29 = vld [vmem:[#allocation8 + $0x60] sm:$0xff]  ;;  %v9089_v30 = vld [vmem:[#allocation8 + $0x70] sm:$0xff] }
0x1183   :  { %v9093_v31 = vld [vmem:[#allocation8 + $0x88] sm:$0xff]  ;;  %v9095_v19 = vld [vmem:[#allocation8 + $0x98] sm:$0xff]  ;;  %v9103_v32 = vld [vmem:[#allocation8 + $0x90] sm:$0xff] }
0x1184   :  { %v9105_v51 = vld [vmem:[#allocation8 + $0xa8] sm:$0xff]  ;;  %v9107_v25 = vld [vmem:[#allocation8 + $0xb8] sm:$0xff]  ;;  %v9115_v63 = vld [vmem:[#allocation8 + $0xa0] sm:$0xff] }
0x1185   :  { %4819 = vmatpush1.bf16.msra.mxu0 %v4772_v18  ;;  %4892 = vmatpush1.bf16.msra.mxu1 %v4774_v43  ;;  %v9117_v14 = vld [vmem:[#allocation8 + $0xb0] sm:$0xff]  ;;  %v9121_v5 = vld [vmem:[#allocation8 + $0xc8] sm:$0xff]  ;;  %v9123_v49 = vld [vmem:[#allocation8 + $0xd8] sm:$0xff] }
0x1186   :  { %4820 = vmatprep.subr.bf16.mxu0 %v4777_v1  ;;  %4893 = vmatprep.subr.bf16.mxu1 %v4779_v11  ;;  %v9131_v36 = vld [vmem:[#allocation8 + $0xd0] sm:$0xff]  ;;  %v9133_v46 = vld [vmem:[#allocation8 + $0xe8] sm:$0xff]  ;;  %v9135_v4 = vld [vmem:[#allocation8 + $0xf8] sm:$0xff] }
0x1187   :  { %v9143_v38 = vld [vmem:[#allocation8 + $0xe0] sm:$0xff]  ;;  %v9145_v40 = vld [vmem:[#allocation8 + $0xf0] sm:$0xff] }
0x1188   :  { %v9712_v28 = vld [vmem:[#allocation44_spill] sm:$0xff]  ;;  %v9713_v48 = vld [vmem:[#allocation45_spill] sm:$0xff]  ;;  %v9714_v13 = vld [vmem:[#allocation46_spill] sm:$0xff] }
0x1189   :  { %4821 = vmatpush1.bf16.msra.mxu0 %v4776_v17  ;;  %4894 = vmatpush1.bf16.msra.mxu1 %v4778_v35  ;;  %v9715_v44 = vld [vmem:[#allocation47_spill] sm:$0xff] }
0x118a   :  { %4822 = vmatprep.subr.bf16.mxu0 %v4781_v54  ;;  %4895 = vmatprep.subr.bf16.mxu1 %v4783_v53 }
0x118d   :  { %4823 = vmatpush1.bf16.msra.mxu0 %v4780_v55  ;;  %4896 = vmatpush1.bf16.msra.mxu1 %v4782_v33 }
0x118e   :  { %4824 = vmatprep.subr.bf16.mxu0 %v4785_v58  ;;  %4897 = vmatprep.subr.bf16.mxu1 %v4787_v56 }
0x1191   :  { %4825 = vmatpush1.bf16.msra.mxu0 %v4784_v57  ;;  %4898 = vmatpush1.bf16.msra.mxu1 %v4786_v6 }
0x1192   :  { %5024 = vmatprep.subr.bf16.mxu0 %v9039_v61  ;;  %5065 = vmatprep.subr.bf16.mxu1 %v9041_v50 }
0x1194   :  { %4843 = vmatmul.mubr.bf16.vlgmr.msra.gmra.mrb[96].mxu0 %v8746_v47  ;;  %4916 = vmatmul.mubr.bf16.vlgmr.msra.gmra.mrb[96].mxu1 %v8746_v47  ;;  %v9073_v47 = vld [vmem:[#allocation8 + $0x40] sm:$0xff] }
0x1195   :  { %5025 = vmatpush1.bf16.msra.mxu0 %v9045_v8  ;;  %5066 = vmatpush1.bf16.msra.mxu1 %v9047_v37 }
0x1196   :  { %5026 = vmatprep.subr.bf16.mxu0 %v9049_v42  ;;  %5067 = vmatprep.subr.bf16.mxu1 %v9051_v0 }
0x1197   :  { %4852 = vmatprep.mubr.bf16.mxu0 %v9642_v52  ;;  %4925 = vmatprep.mubr.bf16.mxu1 %v9642_v52 }
0x1199   :  { %5027 = vmatpush1.bf16.msra.mxu0 %v9059_v60  ;;  %5068 = vmatpush1.bf16.msra.mxu1 %v9061_v24 }
0x119a   :  { %5028 = vmatprep.subr.bf16.mxu0 %v9065_v21  ;;  %5069 = vmatprep.subr.bf16.mxu1 %v9067_v22 }
0x119c   :  { %4853 = vmatmul.mubr.bf16.gmra.mrb[100].mxu0 %v8835_v2  ;;  %4926 = vmatmul.mubr.bf16.gmra.mrb[100].mxu1 %v8835_v2  ;;  %v9101_v2 = vld [vmem:[#allocation8 + $0x80] sm:$0xff] }
0x119d   :  { %5029 = vmatpush1.bf16.msra.mxu0 %v9073_v47  ;;  %5070 = vmatpush1.bf16.msra.mxu1 %v9075_v26 }
0x119e   :  { %5030 = vmatprep.subr.bf16.mxu0 %v9077_v27  ;;  %5071 = vmatprep.subr.bf16.mxu1 %v9079_v62 }
0x119f   :  { %4862 = vmatprep.mubr.bf16.mxu0 %v9642_v52  ;;  %4935 = vmatprep.mubr.bf16.mxu1 %v9642_v52 }
0x11a1   :  { %5031 = vmatpush1.bf16.msra.mxu0 %v9087_v29  ;;  %5072 = vmatpush1.bf16.msra.mxu1 %v9089_v30 }
0x11a2   :  { %5032 = vmatprep.subr.bf16.mxu0 %v9093_v31  ;;  %5073 = vmatprep.subr.bf16.mxu1 %v9095_v19 }
0x11a4   :  { %4863 = vmatmul.mubr.bf16.gmra.mrb[104].mxu0 %v8992_v41  ;;  %4936 = vmatmul.mubr.bf16.gmra.mrb[104].mxu1 %v8992_v41  ;;  %v9129_v41 = vld [vmem:[#allocation8 + $0xc0] sm:$0xff] }
0x11a5   :  { %5033 = vmatpush1.bf16.msra.mxu0 %v9101_v2  ;;  %5074 = vmatpush1.bf16.msra.mxu1 %v9103_v32 }
0x11a6   :  { %5034 = vmatprep.subr.bf16.mxu0 %v9105_v51  ;;  %5075 = vmatprep.subr.bf16.mxu1 %v9107_v25 }
0x11a7   :  { %4872 = vmatprep.mubr.bf16.mxu0 %v9642_v52  ;;  %4945 = vmatprep.mubr.bf16.mxu1 %v9642_v52 }
0x11a9   :  { %5035 = vmatpush1.bf16.msra.mxu0 %v9115_v63  ;;  %5076 = vmatpush1.bf16.msra.mxu1 %v9117_v14 }
0x11aa   :  { %5036 = vmatprep.subr.bf16.mxu0 %v9121_v5  ;;  %5077 = vmatprep.subr.bf16.mxu1 %v9123_v49 }
0x11ac   :  { %4873 = vmatmul.mubr.bf16.gmra.mrb[108].mxu0 %v9035_v20  ;;  %4946 = vmatmul.mubr.bf16.gmra.mrb[108].mxu1 %v9035_v20  ;;  %v4788_v20 = vld [vmem:[#allocation9] sm:$0xf] }
0x11ad   :  { %5037 = vmatpush1.bf16.msra.mxu0 %v9129_v41  ;;  %5078 = vmatpush1.bf16.msra.mxu1 %v9131_v36  ;;  %v9190_v23 = vrot.slane %v4788_v20, %v9712_v28  ;;  %v9197_v34 = vrot.slane %v4788_v20, %v9713_v48  ;;  %v4793_v3 = vrot.slane %v4788_v20, %v9714_v13 }
0x11ae   :  { %5038 = vmatprep.subr.bf16.mxu0 %v9133_v46  ;;  %5079 = vmatprep.subr.bf16.mxu1 %v9135_v4  ;;  %v4797_v45 = vrot.slane %v4788_v20, %v9715_v44 }
0x11af   :  { %5056 = vmatprep.mubr.bf16.mxu0 %v9642_v52  ;;  %5097 = vmatprep.mubr.bf16.mxu1 %v9642_v52 }
0x11b1   :  { %5039 = vmatpush1.bf16.msra.mxu0 %v9143_v38  ;;  %5080 = vmatpush1.bf16.msra.mxu1 %v9145_v40 }
0x11b2   :  { %5139 = vmatprep.subr.bf16.mxu0 %v9039_v61  ;;  %5180 = vmatprep.subr.bf16.mxu1 %v9041_v50 }
0x11b4   :  { %5057 = vmatmul.mubr.bf16.vlgmr.msra.gmra.mrb[112].mxu0 %v9642_v52  ;;  %5098 = vmatmul.mubr.bf16.vlgmr.msra.gmra.mrb[112].mxu1 %v9642_v52 }
0x11b5   :  { %5140 = vmatpush1.bf16.msra.mxu0 %v9045_v8  ;;  %5181 = vmatpush1.bf16.msra.mxu1 %v9047_v37 }
0x11b6   :  { %5141 = vmatprep.subr.bf16.mxu0 %v9049_v42  ;;  %5182 = vmatprep.subr.bf16.mxu1 %v9051_v0 }
0x11b7   :  { %5171 = vmatprep.mubr.bf16.mxu0 %v9642_v52  ;;  %5212 = vmatprep.mubr.bf16.mxu1 %v9642_v52 }
0x11b9   :  { %5142 = vmatpush1.bf16.msra.mxu0 %v9059_v60  ;;  %5183 = vmatpush1.bf16.msra.mxu1 %v9061_v24 }
0x11ba   :  { %5143 = vmatprep.subr.bf16.mxu0 %v9065_v21  ;;  %5184 = vmatprep.subr.bf16.mxu1 %v9067_v22 }
0x11bd   :  { %5144 = vmatpush1.bf16.msra.mxu0 %v9073_v47  ;;  %5185 = vmatpush1.bf16.msra.mxu1 %v9075_v26 }
0x11be   :  { %5145 = vmatprep.subr.bf16.mxu0 %v9077_v27  ;;  %5186 = vmatprep.subr.bf16.mxu1 %v9079_v62 }
0x11c1   :  { %5146 = vmatpush1.bf16.msra.mxu0 %v9087_v29  ;;  %5187 = vmatpush1.bf16.msra.mxu1 %v9089_v30 }
0x11c2   :  { %5147 = vmatprep.subr.bf16.mxu0 %v9093_v31  ;;  %5188 = vmatprep.subr.bf16.mxu1 %v9095_v19 }
0x11c5   :  { %5148 = vmatpush1.bf16.msra.mxu0 %v9101_v2  ;;  %5189 = vmatpush1.bf16.msra.mxu1 %v9103_v32 }
0x11c6   :  { %5149 = vmatprep.subr.bf16.mxu0 %v9105_v51  ;;  %5190 = vmatprep.subr.bf16.mxu1 %v9107_v25 }
0x11c9   :  { %5150 = vmatpush1.bf16.msra.mxu0 %v9115_v63  ;;  %5191 = vmatpush1.bf16.msra.mxu1 %v9117_v14 }
0x11ca   :  { %5151 = vmatprep.subr.bf16.mxu0 %v9121_v5  ;;  %5192 = vmatprep.subr.bf16.mxu1 %v9123_v49 }
0x11cd   :  { %5152 = vmatpush1.bf16.msra.mxu0 %v9129_v41  ;;  %5193 = vmatpush1.bf16.msra.mxu1 %v9131_v36 }
0x11ce   :  { %5153 = vmatprep.subr.bf16.mxu0 %v9133_v46  ;;  %5194 = vmatprep.subr.bf16.mxu1 %v9135_v4 }
0x11d1   :  { %5154 = vmatpush1.bf16.msra.mxu0 %v9143_v38  ;;  %5195 = vmatpush1.bf16.msra.mxu1 %v9145_v40 }
0x11d2   :  { %5254 = vmatprep.subr.bf16.mxu0 %v9039_v61  ;;  %5295 = vmatprep.subr.bf16.mxu1 %v9041_v50 }
0x1267   :  { %v9192_v7 = vpop.f32.mrb[96].mxu0  ;;  %v9194_v39 = vpop.f32.mrb[96].mxu1 }
0x1268   :  { %v4846_v59 = vpop.f32.mrb[97].mxu0  ;;  %v4919_v9 = vpop.f32.mrb[97].mxu1 }
0x1269   :  { %v4848_v10 = vpop.f32.mrb[98].mxu0  ;;  %v4921_v12 = vpop.f32.mrb[98].mxu1 }
0x126a   :  { %v9201_v15 = vadd.f32 %v4848_v10, %v4793_v3  ;;  %v4850_v16 = vpop.f32.mrb[99].mxu0  ;;  %v9204_v18 = vadd.f32 %v4921_v12, %v9190_v23  ;;  %v4923_v43 = vpop.f32.mrb[99].mxu1 }
0x126b   :  { %v9206_v1 = vadd.f32 %v4850_v16, %v4797_v45  ;;  %v9209_v11 = vadd.f32 %v4923_v43, %v9197_v34 }
0x126f   :  { %v4854_v17 = vpop.f32.mrb[100].mxu0  ;;  %v4927_v35 = vpop.f32.mrb[100].mxu1 }
0x1270   :  { %v9211_v54 = vadd.f32 %v4854_v17, %v4793_v3  ;;  %v4856_v53 = vpop.f32.mrb[101].mxu0  ;;  %v9214_v55 = vadd.f32 %v4927_v35, %v9190_v23  ;;  %v4929_v33 = vpop.f32.mrb[101].mxu1 }
0x1271   :  { %v9216_v58 = vadd.f32 %v4856_v53, %v4797_v45  ;;  %v4858_v56 = vpop.f32.mrb[102].mxu0  ;;  %v9219_v57 = vadd.f32 %v4929_v33, %v9197_v34  ;;  %v4931_v6 = vpop.f32.mrb[102].mxu1 }
0x1272   :  { %v9221_v20 = vadd.f32 %v4858_v56, %v4793_v3  ;;  %v4860_v28 = vpop.f32.mrb[103].mxu0  ;;  %v9224_v48 = vadd.f32 %v4931_v6, %v9190_v23  ;;  %v4933_v13 = vpop.f32.mrb[103].mxu1 }
0x1273   :  { %9716 = vst [vmem:[#allocation48_spill] sm:$0xff] %v9216_v58  ;;  %9717 = vst [vmem:[#allocation49_spill] sm:$0xff] %v9219_v57  ;;  %v9226_v44 = vadd.f32 %v4860_v28, %v4797_v45  ;;  %v9229_v10 = vadd.f32 %v4933_v13, %v9197_v34 }
0x1274   :  { %9718 = vst [vmem:[#allocation50_spill] sm:$0xff] %v9221_v20  ;;  %9719 = vst [vmem:[#allocation51_spill] sm:$0xff] %v9224_v48 }
0x1275   :  { %9720 = vst [vmem:[#allocation52_spill] sm:$0xff] %v9226_v44  ;;  %9721 = vst [vmem:[#allocation53_spill] sm:$0xff] %v9229_v10 }
0x1277   :  { %v4864_v12 = vpop.f32.mrb[104].mxu0  ;;  %v4937_v16 = vpop.f32.mrb[104].mxu1 }
0x1278   :  { %v9231_v43 = vadd.f32 %v4864_v12, %v4793_v3  ;;  %v4866_v17 = vpop.f32.mrb[105].mxu0  ;;  %v9234_v35 = vadd.f32 %v4937_v16, %v9190_v23  ;;  %v4939_v53 = vpop.f32.mrb[105].mxu1 }
0x1279   :  { %v9236_v33 = vadd.f32 %v4866_v17, %v4797_v45  ;;  %v4868_v56 = vpop.f32.mrb[106].mxu0  ;;  %v9239_v6 = vadd.f32 %v4939_v53, %v9197_v34  ;;  %v4941_v28 = vpop.f32.mrb[106].mxu1 }
0x127a   :  { %9722 = vst [vmem:[#allocation54_spill] sm:$0xff] %v9231_v43  ;;  %9723 = vst [vmem:[#allocation55_spill] sm:$0xff] %v9234_v35  ;;  %v9241_v44 = vadd.f32 %v4868_v56, %v4793_v3  ;;  %v4870_v13 = vpop.f32.mrb[107].mxu0  ;;  %v9244_v10 = vadd.f32 %v4941_v28, %v9190_v23  ;;  %v4943_v12 = vpop.f32.mrb[107].mxu1 }
0x127b   :  { %9724 = vst [vmem:[#allocation56_spill] sm:$0xff] %v9236_v33  ;;  %9725 = vst [vmem:[#allocation57_spill] sm:$0xff] %v9239_v6  ;;  %v9246_v43 = vadd.f32 %v4870_v13, %v4797_v45  ;;  %v9249_v16 = vadd.f32 %v4943_v12, %v9197_v34 }
0x127c   :  { %9726 = vst [vmem:[#allocation58_spill] sm:$0xff] %v9241_v44  ;;  %9727 = vst [vmem:[#allocation59_spill] sm:$0xff] %v9244_v10 }
0x127d   :  { %9728 = vst [vmem:[#allocation60_spill] sm:$0xff] %v9246_v43  ;;  %9729 = vst [vmem:[#allocation61_spill] sm:$0xff] %v9249_v16 }
0x127f   :  { %v4874_v35 = vpop.f32.mrb[108].mxu0  ;;  %v4947_v17 = vpop.f32.mrb[108].mxu1 }
0x1280   :  { %v9251_v33 = vadd.f32 %v4874_v35, %v4793_v3  ;;  %v4876_v48 = vpop.f32.mrb[109].mxu0  ;;  %v9254_v53 = vadd.f32 %v4947_v17, %v9190_v23  ;;  %v4949_v56 = vpop.f32.mrb[109].mxu1 }
0x1281   :  { %v9256_v44 = vadd.f32 %v4876_v48, %v4797_v45  ;;  %v4878_v6 = vpop.f32.mrb[110].mxu0  ;;  %v9259_v28 = vadd.f32 %v4949_v56, %v9197_v34  ;;  %v4951_v13 = vpop.f32.mrb[110].mxu1  ;;  %v4845_v48 = vadd.f32 %v9192_v7, %v4793_v3  ;;  %v4847_v56 = vadd.f32 %v4846_v59, %v4797_v45 }
0x1282   :  { %9730 = vst [vmem:[#allocation62_spill] sm:$0xff] %v9251_v33  ;;  %9731 = vst [vmem:[#allocation63_spill] sm:$0xff] %v9254_v53  ;;  %v9261_v43 = vadd.f32 %v4878_v6, %v4793_v3  ;;  %v4880_v12 = vpop.f32.mrb[111].mxu0  ;;  %v9264_v16 = vadd.f32 %v4951_v13, %v9190_v23  ;;  %v4953_v35 = vpop.f32.mrb[111].mxu1 }
0x1283   :  { %9732 = vst [vmem:[#allocation64_spill] sm:$0xff] %v9256_v44  ;;  %9733 = vst [vmem:[#allocation65_spill] sm:$0xff] %v9259_v28  ;;  %v9266_v33 = vadd.f32 %v4880_v12, %v4797_v45  ;;  %v9269_v17 = vadd.f32 %v4953_v35, %v9197_v34  ;;  %v4918_v44 = vadd.f32 %v9194_v39, %v9190_v23 }
0x1284   :  { %9734 = vst [vmem:[#allocation66_spill] sm:$0xff] %v9261_v43  ;;  %9735 = vst [vmem:[#allocation67_spill] sm:$0xff] %v9264_v16  ;;  %v4920_v28 = vadd.f32 %v4919_v9, %v9197_v34 }
0x1285   :  { %9736 = vst [vmem:[#allocation68_spill] sm:$0xff] %v9266_v33  ;;  %9737 = vst [vmem:[#allocation69_spill] sm:$0xff] %v9269_v17 }
0x1287   :  { %v5058_v6 = vpop.f32.mrb[112].mxu0  ;;  %v5099_v43 = vpop.f32.mrb[112].mxu1 }
0x1288   :  { %v5106_v53 = vadd.f32 %v5058_v6, %v4845_v48  ;;  %v5108_v10 = vadd.f32 %v5099_v43, %v4918_v44  ;;  %v5060_v13 = vpop.f32.mrb[113].mxu0  ;;  %v5101_v16 = vpop.f32.mrb[113].mxu1 }
0x1289   :  { %v5107_v20 = vadd.f32 %v5060_v13, %v4847_v56  ;;  %v5109_v12 = vadd.f32 %v5101_v16, %v4920_v28  ;;  %v5062_v33 = vpop.f32.mrb[114].mxu0  ;;  %v5103_v57 = vpop.f32.mrb[114].mxu1 }
0x128a   :  { %v6556_v35 = vmul.f32 -1.442695, %v5106_v53  ;;  %v5063_v17 = vpop.f32.mrb[115].mxu0  ;;  %v5104_v58 = vpop.f32.mrb[115].mxu1  ;;  %v6558_v23 = vmul.f32 -1.442695, %v5108_v10 }
0x128b   :  { %v6557_v7 = vmul.f32 -1.442695, %v5107_v20 }
0x128c   :  { %7052 = vpow2.f32 %v6556_v35 }
0x128d   :  { %7054 = vpow2.f32 %v6557_v7 }
0x128e   :  { %7056 = vtanh.f32 %v5109_v12 }
0x128f   :  { %7058 = vpow2.f32 %v6558_v23 }
0x1296   :  { %v7053_v39 = vpop.eup %7052 }
0x1297   :  { %v5119_v3 = vadd.f32 1.0, %v7053_v39  ;;  %v7055_v34 = vpop.eup %7054 }
0x1298   :  { %v5120_v59 = vadd.f32 1.0, %v7055_v34  ;;  %v7057_v9 = vpop.eup %7056 }
0x1299   :  { %7060 = vrcp.f32 %v5119_v3  ;;  %v7059_v45 = vpop.eup %7058 }
0x129a   :  { %7062 = vrcp.f32 %v5120_v59  ;;  %v5121_v33 = vadd.f32 1.0, %v7059_v45 }
0x129c   :  { %7064 = vrcp.f32 %v5121_v33 }
0x12a3   :  { %v7061_v44 = vpop.eup %7060 }
0x12a4   :  { %v5130_v43 = vmul.f32 %v7061_v44, %v7057_v9  ;;  %v7063_v57 = vpop.eup %7062 }
0x12a5   :  { %v5129_v16 = vmul.f32 0.0, %v7063_v57 }
0x12a6   :  { %v7065_v20 = vpop.eup %7064 }
0x12a7   :  { %v9275_v58 = vadd.f32 %v5130_v43, %v5129_v16 }
0x12a9   :  { %7066 = vtanh.f32 %v9275_v58 }
0x12b3   :  { %v7067_v10 = vpop.eup %7066 }
0x12b4   :  { %v5133_v53 = vmul.f32 %v7067_v10, %v7065_v20 }
0x12b6   :  { %v5138_v28 = vpack.c.bf16 %v5133_v53, %v5133_v53 }
0x12b8   :  { %5172 = vmatmul.mubr.bf16.vlgmr.msra.gmra.mrb[116].mxu0 %v5138_v28  ;;  %5213 = vmatmul.mubr.bf16.vlgmr.msra.gmra.mrb[116].mxu1 %v5138_v28 }
0x12b9   :  { %5255 = vmatpush1.bf16.msra.mxu0 %v9045_v8  ;;  %5296 = vmatpush1.bf16.msra.mxu1 %v9047_v37 }
0x12ba   :  { %5256 = vmatprep.subr.bf16.mxu0 %v9049_v42  ;;  %5297 = vmatprep.subr.bf16.mxu1 %v9051_v0 }
0x12bb   :  { %5286 = vmatprep.mubr.bf16.mxu0 %v9642_v52  ;;  %5327 = vmatprep.mubr.bf16.mxu1 %v9642_v52 }
0x12bd   :  { %5257 = vmatpush1.bf16.msra.mxu0 %v9059_v60  ;;  %5298 = vmatpush1.bf16.msra.mxu1 %v9061_v24 }
0x12be   :  { %5258 = vmatprep.subr.bf16.mxu0 %v9065_v21  ;;  %5299 = vmatprep.subr.bf16.mxu1 %v9067_v22 }
0x12c1   :  { %5259 = vmatpush1.bf16.msra.mxu0 %v9073_v47  ;;  %5300 = vmatpush1.bf16.msra.mxu1 %v9075_v26 }
0x12c2   :  { %5260 = vmatprep.subr.bf16.mxu0 %v9077_v27  ;;  %5301 = vmatprep.subr.bf16.mxu1 %v9079_v62 }
0x12c5   :  { %5261 = vmatpush1.bf16.msra.mxu0 %v9087_v29  ;;  %5302 = vmatpush1.bf16.msra.mxu1 %v9089_v30 }
0x12c6   :  { %5262 = vmatprep.subr.bf16.mxu0 %v9093_v31  ;;  %5303 = vmatprep.subr.bf16.mxu1 %v9095_v19 }
0x12c9   :  { %5263 = vmatpush1.bf16.msra.mxu0 %v9101_v2  ;;  %5304 = vmatpush1.bf16.msra.mxu1 %v9103_v32 }
0x12ca   :  { %5264 = vmatprep.subr.bf16.mxu0 %v9105_v51  ;;  %5305 = vmatprep.subr.bf16.mxu1 %v9107_v25 }
0x12cd   :  { %5265 = vmatpush1.bf16.msra.mxu0 %v9115_v63  ;;  %5306 = vmatpush1.bf16.msra.mxu1 %v9117_v14 }
0x12ce   :  { %5266 = vmatprep.subr.bf16.mxu0 %v9121_v5  ;;  %5307 = vmatprep.subr.bf16.mxu1 %v9123_v49 }
0x12d1   :  { %5267 = vmatpush1.bf16.msra.mxu0 %v9129_v41  ;;  %5308 = vmatpush1.bf16.msra.mxu1 %v9131_v36 }
0x12d2   :  { %5268 = vmatprep.subr.bf16.mxu0 %v9133_v46  ;;  %5309 = vmatprep.subr.bf16.mxu1 %v9135_v4 }
0x12d5   :  { %5269 = vmatpush1.bf16.msra.mxu0 %v9143_v38  ;;  %5310 = vmatpush1.bf16.msra.mxu1 %v9145_v40 }
0x12d6   :  { %5369 = vmatprep.subr.bf16.mxu0 %v9039_v61  ;;  %5410 = vmatprep.subr.bf16.mxu1 %v9041_v50 }
0x138b   :  { %v5173_v17 = vpop.f32.mrb[116].mxu0  ;;  %v5214_v48 = vpop.f32.mrb[116].mxu1 }
0x138c   :  { %v5221_v56 = vadd.f32 %v5173_v17, %v9201_v15  ;;  %v5223_v6 = vadd.f32 %v5214_v48, %v9204_v18  ;;  %v5175_v13 = vpop.f32.mrb[117].mxu0  ;;  %v5216_v12 = vpop.f32.mrb[117].mxu1 }
0x138d   :  { %v5222_v35 = vadd.f32 %v5175_v13, %v9206_v1  ;;  %v5224_v7 = vadd.f32 %v5216_v12, %v9209_v11  ;;  %v5177_v23 = vpop.f32.mrb[118].mxu0  ;;  %v5218_v39 = vpop.f32.mrb[118].mxu1 }
0x138e   :  { %v6559_v3 = vmul.f32 -1.442695, %v5221_v56  ;;  %v5178_v34 = vpop.f32.mrb[119].mxu0  ;;  %v5219_v59 = vpop.f32.mrb[119].mxu1  ;;  %v6561_v45 = vmul.f32 -1.442695, %v5223_v6 }
0x138f   :  { %v6560_v9 = vmul.f32 -1.442695, %v5222_v35  ;;  %v9738_v23 = vld [vmem:[#allocation48_spill] sm:$0xff] }
0x1390   :  { %7068 = vpow2.f32 %v6559_v3  ;;  %v9739_v3 = vld [vmem:[#allocation49_spill] sm:$0xff] }
0x1391   :  { %7070 = vpow2.f32 %v6560_v9 }
0x1392   :  { %7072 = vtanh.f32 %v5224_v7 }
0x1393   :  { %7074 = vpow2.f32 %v6561_v45 }
0x139a   :  { %v7069_v44 = vpop.eup %7068 }
0x139b   :  { %v5234_v43 = vadd.f32 1.0, %v7069_v44  ;;  %v7071_v15 = vpop.eup %7070 }
0x139c   :  { %v5235_v18 = vadd.f32 1.0, %v7071_v15  ;;  %v7073_v1 = vpop.eup %7072 }
0x139d   :  { %7076 = vrcp.f32 %v5234_v43  ;;  %v7075_v57 = vpop.eup %7074 }
0x139e   :  { %7078 = vrcp.f32 %v5235_v18  ;;  %v5236_v20 = vadd.f32 1.0, %v7075_v57 }
0x13a0   :  { %7080 = vrcp.f32 %v5236_v20 }
0x13a7   :  { %v7077_v11 = vpop.eup %7076 }
0x13a8   :  { %v5245_v33 = vmul.f32 %v7077_v11, %v7073_v1  ;;  %v7079_v16 = vpop.eup %7078 }
0x13a9   :  { %v5244_v10 = vmul.f32 %v7079_v16, %v9275_v58 }
0x13aa   :  { %v7081_v28 = vpop.eup %7080 }
0x13ab   :  { %v9317_v53 = vadd.f32 %v5245_v33, %v5244_v10 }
0x13ad   :  { %7082 = vtanh.f32 %v9317_v53 }
0x13b7   :  { %v7083_v17 = vpop.eup %7082 }
0x13b8   :  { %v5248_v48 = vmul.f32 %v7083_v17, %v7081_v28 }
0x13ba   :  { %v5253_v56 = vpack.c.bf16 %v5248_v48, %v5248_v48 }
0x13bc   :  { %5287 = vmatmul.mubr.bf16.vlgmr.msra.gmra.mrb[120].mxu0 %v5253_v56  ;;  %5328 = vmatmul.mubr.bf16.vlgmr.msra.gmra.mrb[120].mxu1 %v5253_v56 }
0x13bd   :  { %5370 = vmatpush1.bf16.msra.mxu0 %v9045_v8  ;;  %5411 = vmatpush1.bf16.msra.mxu1 %v9047_v37 }
0x13be   :  { %5371 = vmatprep.subr.bf16.mxu0 %v9049_v42  ;;  %5412 = vmatprep.subr.bf16.mxu1 %v9051_v0 }
0x13bf   :  { %5401 = vmatprep.mubr.bf16.mxu0 %v9642_v52  ;;  %5442 = vmatprep.mubr.bf16.mxu1 %v9642_v52 }
0x13c1   :  { %5372 = vmatpush1.bf16.msra.mxu0 %v9059_v60  ;;  %5413 = vmatpush1.bf16.msra.mxu1 %v9061_v24 }
0x13c2   :  { %5373 = vmatprep.subr.bf16.mxu0 %v9065_v21  ;;  %5414 = vmatprep.subr.bf16.mxu1 %v9067_v22 }
0x13c5   :  { %5374 = vmatpush1.bf16.msra.mxu0 %v9073_v47  ;;  %5415 = vmatpush1.bf16.msra.mxu1 %v9075_v26 }
0x13c6   :  { %5375 = vmatprep.subr.bf16.mxu0 %v9077_v27  ;;  %5416 = vmatprep.subr.bf16.mxu1 %v9079_v62 }
0x13c9   :  { %5376 = vmatpush1.bf16.msra.mxu0 %v9087_v29  ;;  %5417 = vmatpush1.bf16.msra.mxu1 %v9089_v30 }
0x13ca   :  { %5377 = vmatprep.subr.bf16.mxu0 %v9093_v31  ;;  %5418 = vmatprep.subr.bf16.mxu1 %v9095_v19 }
0x13cd   :  { %5378 = vmatpush1.bf16.msra.mxu0 %v9101_v2  ;;  %5419 = vmatpush1.bf16.msra.mxu1 %v9103_v32 }
0x13ce   :  { %5379 = vmatprep.subr.bf16.mxu0 %v9105_v51  ;;  %5420 = vmatprep.subr.bf16.mxu1 %v9107_v25 }
0x13d1   :  { %5380 = vmatpush1.bf16.msra.mxu0 %v9115_v63  ;;  %5421 = vmatpush1.bf16.msra.mxu1 %v9117_v14 }
0x13d2   :  { %5381 = vmatprep.subr.bf16.mxu0 %v9121_v5  ;;  %5422 = vmatprep.subr.bf16.mxu1 %v9123_v49 }
0x13d5   :  { %5382 = vmatpush1.bf16.msra.mxu0 %v9129_v41  ;;  %5423 = vmatpush1.bf16.msra.mxu1 %v9131_v36 }
0x13d6   :  { %5383 = vmatprep.subr.bf16.mxu0 %v9133_v46  ;;  %5424 = vmatprep.subr.bf16.mxu1 %v9135_v4 }
0x13d9   :  { %5384 = vmatpush1.bf16.msra.mxu0 %v9143_v38  ;;  %5425 = vmatpush1.bf16.msra.mxu1 %v9145_v40 }
0x13da   :  { %5484 = vmatprep.subr.bf16.mxu0 %v9039_v61  ;;  %5525 = vmatprep.subr.bf16.mxu1 %v9041_v50 }
0x148f   :  { %v5288_v58 = vpop.f32.mrb[120].mxu0  ;;  %v5329_v6 = vpop.f32.mrb[120].mxu1 }
0x1490   :  { %v5336_v13 = vadd.f32 %v5288_v58, %v9211_v54  ;;  %v5338_v12 = vadd.f32 %v5329_v6, %v9214_v55  ;;  %v5290_v35 = vpop.f32.mrb[121].mxu0  ;;  %v5331_v7 = vpop.f32.mrb[121].mxu1 }
0x1491   :  { %v5337_v39 = vadd.f32 %v5290_v35, %v9738_v23  ;;  %v5339_v34 = vadd.f32 %v5331_v7, %v9739_v3  ;;  %v5292_v59 = vpop.f32.mrb[122].mxu0  ;;  %v5333_v9 = vpop.f32.mrb[122].mxu1  ;;  %v9740_v35 = vld [vmem:[#allocation50_spill] sm:$0xff]  ;;  %v9741_v23 = vld [vmem:[#allocation51_spill] sm:$0xff] }
0x1492   :  { %v6562_v45 = vmul.f32 -1.442695, %v5336_v13  ;;  %v5293_v44 = vpop.f32.mrb[123].mxu0  ;;  %v5334_v43 = vpop.f32.mrb[123].mxu1  ;;  %v6564_v18 = vmul.f32 -1.442695, %v5338_v12 }
0x1493   :  { %v6563_v15 = vmul.f32 -1.442695, %v5337_v39  ;;  %v9742_v59 = vld [vmem:[#allocation52_spill] sm:$0xff] }
0x1494   :  { %7084 = vpow2.f32 %v6562_v45  ;;  %v9743_v45 = vld [vmem:[#allocation53_spill] sm:$0xff] }
0x1495   :  { %7086 = vpow2.f32 %v6563_v15 }
0x1496   :  { %7088 = vtanh.f32 %v5339_v34 }
0x1497   :  { %7090 = vpow2.f32 %v6564_v18 }
0x149e   :  { %v7085_v1 = vpop.eup %7084 }
0x149f   :  { %v5349_v57 = vadd.f32 1.0, %v7085_v1  ;;  %v7087_v54 = vpop.eup %7086 }
0x14a0   :  { %v5350_v55 = vadd.f32 1.0, %v7087_v54  ;;  %v7089_v11 = vpop.eup %7088 }
0x14a1   :  { %7092 = vrcp.f32 %v5349_v57  ;;  %v7091_v33 = vpop.eup %7090 }
0x14a2   :  { %7094 = vrcp.f32 %v5350_v55  ;;  %v5351_v28 = vadd.f32 1.0, %v7091_v33 }
0x14a4   :  { %7096 = vrcp.f32 %v5351_v28 }
0x14ab   :  { %v7093_v16 = vpop.eup %7092 }
0x14ac   :  { %v5360_v20 = vmul.f32 %v7093_v16, %v7089_v11  ;;  %v7095_v10 = vpop.eup %7094 }
0x14ad   :  { %v5359_v17 = vmul.f32 %v7095_v10, %v9317_v53 }
0x14ae   :  { %v7097_v56 = vpop.eup %7096 }
0x14af   :  { %v9359_v48 = vadd.f32 %v5360_v20, %v5359_v17 }
0x14b1   :  { %7098 = vtanh.f32 %v9359_v48 }
0x14bb   :  { %v7099_v58 = vpop.eup %7098 }
0x14bc   :  { %v5363_v6 = vmul.f32 %v7099_v58, %v7097_v56 }
0x14be   :  { %v5368_v13 = vpack.c.bf16 %v5363_v6, %v5363_v6 }
0x14c0   :  { %5402 = vmatmul.mubr.bf16.vlgmr.msra.gmra.mrb[124].mxu0 %v5368_v13  ;;  %5443 = vmatmul.mubr.bf16.vlgmr.msra.gmra.mrb[124].mxu1 %v5368_v13 }
0x14c1   :  { %5485 = vmatpush1.bf16.msra.mxu0 %v9045_v8  ;;  %5526 = vmatpush1.bf16.msra.mxu1 %v9047_v37 }
0x14c2   :  { %5486 = vmatprep.subr.bf16.mxu0 %v9049_v42  ;;  %5527 = vmatprep.subr.bf16.mxu1 %v9051_v0 }
0x14c3   :  { %5516 = vmatprep.mubr.bf16.mxu0 %v9642_v52  ;;  %5557 = vmatprep.mubr.bf16.mxu1 %v9642_v52 }
0x14c5   :  { %5487 = vmatpush1.bf16.msra.mxu0 %v9059_v60  ;;  %5528 = vmatpush1.bf16.msra.mxu1 %v9061_v24 }
0x14c6   :  { %5488 = vmatprep.subr.bf16.mxu0 %v9065_v21  ;;  %5529 = vmatprep.subr.bf16.mxu1 %v9067_v22 }
0x14c9   :  { %5489 = vmatpush1.bf16.msra.mxu0 %v9073_v47  ;;  %5530 = vmatpush1.bf16.msra.mxu1 %v9075_v26 }
0x14ca   :  { %5490 = vmatprep.subr.bf16.mxu0 %v9077_v27  ;;  %5531 = vmatprep.subr.bf16.mxu1 %v9079_v62 }
0x14cd   :  { %5491 = vmatpush1.bf16.msra.mxu0 %v9087_v29  ;;  %5532 = vmatpush1.bf16.msra.mxu1 %v9089_v30 }
0x14ce   :  { %5492 = vmatprep.subr.bf16.mxu0 %v9093_v31  ;;  %5533 = vmatprep.subr.bf16.mxu1 %v9095_v19 }
0x14d1   :  { %5493 = vmatpush1.bf16.msra.mxu0 %v9101_v2  ;;  %5534 = vmatpush1.bf16.msra.mxu1 %v9103_v32 }
0x14d2   :  { %5494 = vmatprep.subr.bf16.mxu0 %v9105_v51  ;;  %5535 = vmatprep.subr.bf16.mxu1 %v9107_v25 }
0x14d5   :  { %5495 = vmatpush1.bf16.msra.mxu0 %v9115_v63  ;;  %5536 = vmatpush1.bf16.msra.mxu1 %v9117_v14 }
0x14d6   :  { %5496 = vmatprep.subr.bf16.mxu0 %v9121_v5  ;;  %5537 = vmatprep.subr.bf16.mxu1 %v9123_v49 }
0x14d9   :  { %5497 = vmatpush1.bf16.msra.mxu0 %v9129_v41  ;;  %5538 = vmatpush1.bf16.msra.mxu1 %v9131_v36 }
0x14da   :  { %5498 = vmatprep.subr.bf16.mxu0 %v9133_v46  ;;  %5539 = vmatprep.subr.bf16.mxu1 %v9135_v4 }
0x14dd   :  { %5499 = vmatpush1.bf16.msra.mxu0 %v9143_v38  ;;  %5540 = vmatpush1.bf16.msra.mxu1 %v9145_v40 }
0x14de   :  { %5599 = vmatprep.subr.bf16.mxu0 %v9039_v61  ;;  %5640 = vmatprep.subr.bf16.mxu1 %v9041_v50 }
0x1593   :  { %v5403_v53 = vpop.f32.mrb[124].mxu0  ;;  %v5444_v12 = vpop.f32.mrb[124].mxu1 }
0x1594   :  { %v5451_v7 = vadd.f32 %v5403_v53, %v9740_v35  ;;  %v5453_v39 = vadd.f32 %v5444_v12, %v9741_v23  ;;  %v5405_v3 = vpop.f32.mrb[125].mxu0  ;;  %v5446_v34 = vpop.f32.mrb[125].mxu1 }
0x1595   :  { %v5452_v9 = vadd.f32 %v5405_v3, %v9742_v59  ;;  %v5454_v44 = vadd.f32 %v5446_v34, %v9743_v45  ;;  %v5407_v43 = vpop.f32.mrb[126].mxu0  ;;  %v5448_v15 = vpop.f32.mrb[126].mxu1 }
0x1596   :  { %v6565_v18 = vmul.f32 -1.442695, %v5451_v7  ;;  %v5408_v1 = vpop.f32.mrb[127].mxu0  ;;  %v5449_v57 = vpop.f32.mrb[127].mxu1  ;;  %v6567_v55 = vmul.f32 -1.442695, %v5453_v39 }
0x1597   :  { %v6566_v54 = vmul.f32 -1.442695, %v5452_v9 }
0x1598   :  { %7100 = vpow2.f32 %v6565_v18 }
0x1599   :  { %7102 = vpow2.f32 %v6566_v54 }
0x159a   :  { %7104 = vtanh.f32 %v5454_v44 }
0x159b   :  { %7106 = vpow2.f32 %v6567_v55 }
0x15a2   :  { %v7101_v11 = vpop.eup %7100 }
0x15a3   :  { %v5464_v33 = vadd.f32 1.0, %v7101_v11  ;;  %v7103_v16 = vpop.eup %7102 }
0x15a4   :  { %v5465_v20 = vadd.f32 1.0, %v7103_v16  ;;  %v7105_v10 = vpop.eup %7104 }
0x15a5   :  { %7108 = vrcp.f32 %v5464_v33  ;;  %v7107_v28 = vpop.eup %7106 }
0x15a6   :  { %7110 = vrcp.f32 %v5465_v20  ;;  %v5466_v6 = vadd.f32 1.0, %v7107_v28 }
0x15a8   :  { %7112 = vrcp.f32 %v5466_v6  ;;  %v9455_v6 = vld [vmem:[#allocation8 + $0x38] sm:$0xff] }
0x15af   :  { %v7109_v17 = vpop.eup %7108 }
0x15b0   :  { %v5475_v56 = vmul.f32 %v7109_v17, %v7105_v10  ;;  %v7111_v58 = vpop.eup %7110  ;;  %v9446_v17 = vld [vmem:[#allocation8] sm:$0xff] }
0x15b1   :  { %v5474_v13 = vmul.f32 %v7111_v58, %v9359_v48  ;;  %v9452_v58 = vld [vmem:[#allocation8 + $0x28] sm:$0xff] }
0x15b2   :  { %v7113_v12 = vpop.eup %7112 }
0x15b3   :  { %v9401_v53 = vadd.f32 %v5475_v56, %v5474_v13  ;;  %v9449_v56 = vld [vmem:[#allocation8 + $0x10] sm:$0xff]  ;;  %v9460_v13 = vld [vmem:[#allocation8 + $0x20] sm:$0xff] }
0x15b5   :  { %7114 = vtanh.f32 %v9401_v53 }
0x15bf   :  { %v7115_v35 = vpop.eup %7114 }
0x15c0   :  { %v5478_v7 = vmul.f32 %v7115_v35, %v7113_v12  ;;  %v9466_v12 = vld [vmem:[#allocation8 + $0x48] sm:$0xff]  ;;  %v9469_v35 = vld [vmem:[#allocation8 + $0x58] sm:$0xff] }
0x15c2   :  { %v5483_v23 = vpack.c.bf16 %v5478_v7, %v5478_v7  ;;  %v9472_v7 = vld [vmem:[#allocation8 + $0x40] sm:$0xff] }
0x15c4   :  { %5517 = vmatmul.mubr.bf16.vlgmr.msra.gmra.mrb[128].mxu0 %v5483_v23  ;;  %5558 = vmatmul.mubr.bf16.vlgmr.msra.gmra.mrb[128].mxu1 %v5483_v23  ;;  %v9475_v23 = vld [vmem:[#allocation8 + $0x50] sm:$0xff] }
0x15c5   :  { %5600 = vmatpush1.bf16.msra.mxu0 %v9045_v8  ;;  %5641 = vmatpush1.bf16.msra.mxu1 %v9047_v37 }
0x15c6   :  { %5601 = vmatprep.subr.bf16.mxu0 %v9049_v42  ;;  %5642 = vmatprep.subr.bf16.mxu1 %v9051_v0  ;;  %v9744_v42 = vld [vmem:[#allocation54_spill] sm:$0xff] }
0x15c7   :  { %5631 = vmatprep.mubr.bf16.mxu0 %v9642_v52  ;;  %5672 = vmatprep.mubr.bf16.mxu1 %v9642_v52 }
0x15c9   :  { %5602 = vmatpush1.bf16.msra.mxu0 %v9059_v60  ;;  %5643 = vmatpush1.bf16.msra.mxu1 %v9061_v24  ;;  %v9745_v60 = vld [vmem:[#allocation55_spill] sm:$0xff] }
0x15ca   :  { %5603 = vmatprep.subr.bf16.mxu0 %v9065_v21  ;;  %5644 = vmatprep.subr.bf16.mxu1 %v9067_v22 }
0x15cd   :  { %5604 = vmatpush1.bf16.msra.mxu0 %v9073_v47  ;;  %5645 = vmatpush1.bf16.msra.mxu1 %v9075_v26  ;;  %v9746_v47 = vld [vmem:[#allocation56_spill] sm:$0xff] }
0x15ce   :  { %5605 = vmatprep.subr.bf16.mxu0 %v9077_v27  ;;  %5646 = vmatprep.subr.bf16.mxu1 %v9079_v62  ;;  %v9747_v27 = vld [vmem:[#allocation57_spill] sm:$0xff] }
0x15d1   :  { %5606 = vmatpush1.bf16.msra.mxu0 %v9087_v29  ;;  %5647 = vmatpush1.bf16.msra.mxu1 %v9089_v30 }
0x15d2   :  { %5607 = vmatprep.subr.bf16.mxu0 %v9093_v31  ;;  %5648 = vmatprep.subr.bf16.mxu1 %v9095_v19 }
0x15d5   :  { %5608 = vmatpush1.bf16.msra.mxu0 %v9101_v2  ;;  %5649 = vmatpush1.bf16.msra.mxu1 %v9103_v32 }
0x15d6   :  { %5609 = vmatprep.subr.bf16.mxu0 %v9105_v51  ;;  %5650 = vmatprep.subr.bf16.mxu1 %v9107_v25 }
0x15d9   :  { %5610 = vmatpush1.bf16.msra.mxu0 %v9115_v63  ;;  %5651 = vmatpush1.bf16.msra.mxu1 %v9117_v14 }
0x15da   :  { %5611 = vmatprep.subr.bf16.mxu0 %v9121_v5  ;;  %5652 = vmatprep.subr.bf16.mxu1 %v9123_v49 }
0x15dd   :  { %5612 = vmatpush1.bf16.msra.mxu0 %v9129_v41  ;;  %5653 = vmatpush1.bf16.msra.mxu1 %v9131_v36 }
0x15de   :  { %5613 = vmatprep.subr.bf16.mxu0 %v9133_v46  ;;  %5654 = vmatprep.subr.bf16.mxu1 %v9135_v4 }
0x15e1   :  { %5614 = vmatpush1.bf16.msra.mxu0 %v9143_v38  ;;  %5655 = vmatpush1.bf16.msra.mxu1 %v9145_v40 }
0x15e2   :  { %5714 = vmatprep.subr.bf16.mxu0 %v9039_v61  ;;  %5755 = vmatprep.subr.bf16.mxu1 %v9041_v50 }
0x1697   :  { %v5518_v8 = vpop.f32.mrb[128].mxu0  ;;  %v5559_v37 = vpop.f32.mrb[128].mxu1 }
0x1698   :  { %v5566_v0 = vadd.f32 %v5518_v8, %v9744_v42  ;;  %v5568_v24 = vadd.f32 %v5559_v37, %v9745_v60  ;;  %v5520_v21 = vpop.f32.mrb[129].mxu0  ;;  %v5561_v22 = vpop.f32.mrb[129].mxu1  ;;  %v9478_v8 = vld [vmem:[#allocation8 + $0x68] sm:$0xff]  ;;  %v9481_v37 = vld [vmem:[#allocation8 + $0x78] sm:$0xff] }
0x1699   :  { %v5567_v26 = vadd.f32 %v5520_v21, %v9746_v47  ;;  %v5569_v62 = vadd.f32 %v5561_v22, %v9747_v27  ;;  %v5522_v48 = vpop.f32.mrb[130].mxu0  ;;  %v5563_v39 = vpop.f32.mrb[130].mxu1 }
0x169a   :  { %v6568_v3 = vmul.f32 -1.442695, %v5566_v0  ;;  %v5523_v34 = vpop.f32.mrb[131].mxu0  ;;  %v5564_v59 = vpop.f32.mrb[131].mxu1  ;;  %v6570_v50 = vmul.f32 -1.442695, %v5568_v24 }
0x169b   :  { %v6569_v61 = vmul.f32 -1.442695, %v5567_v26 }
0x169c   :  { %7116 = vpow2.f32 %v6568_v3 }
0x169d   :  { %7118 = vpow2.f32 %v6569_v61 }
0x169e   :  { %7120 = vtanh.f32 %v5569_v62 }
0x169f   :  { %7122 = vpow2.f32 %v6570_v50 }
0x16a6   :  { %v7117_v9 = vpop.eup %7116 }
0x16a7   :  { %v5579_v45 = vadd.f32 1.0, %v7117_v9  ;;  %v7119_v44 = vpop.eup %7118 }
0x16a8   :  { %v5580_v43 = vadd.f32 1.0, %v7119_v44  ;;  %v7121_v15 = vpop.eup %7120  ;;  %v7196_v44 = vld [vmem:[#allocation8 + $0x60] sm:$0xff] }
0x16a9   :  { %7124 = vrcp.f32 %v5579_v45  ;;  %v7123_v18 = vpop.eup %7122 }
0x16aa   :  { %7126 = vrcp.f32 %v5580_v43  ;;  %v5581_v55 = vadd.f32 1.0, %v7123_v18  ;;  %v7197_v43 = vld [vmem:[#allocation8 + $0x70] sm:$0xff]  ;;  %v7200_v18 = vld [vmem:[#allocation8 + $0x80] sm:$0xff] }
0x16ac   :  { %7128 = vrcp.f32 %v5581_v55  ;;  %v7204_v55 = vld [vmem:[#allocation8 + $0xa0] sm:$0xff] }
0x16b3   :  { %v7125_v1 = vpop.eup %7124 }
0x16b4   :  { %v5590_v57 = vmul.f32 %v7125_v1, %v7121_v15  ;;  %v7127_v54 = vpop.eup %7126  ;;  %v7199_v15 = vld [vmem:[#allocation8 + $0x98] sm:$0xff]  ;;  %v7201_v1 = vld [vmem:[#allocation8 + $0x90] sm:$0xff] }
0x16b5   :  { %v5589_v11 = vmul.f32 %v7127_v54, %v9401_v53  ;;  %v9463_v53 = vld [vmem:[#allocation8 + $0x30] sm:$0xff]  ;;  %v7203_v54 = vld [vmem:[#allocation8 + $0xb8] sm:$0xff] }
0x16b6   :  { %v7129_v16 = vpop.eup %7128 }
0x16b7   :  { %v9443_v33 = vadd.f32 %v5590_v57, %v5589_v11  ;;  %v7202_v57 = vld [vmem:[#allocation8 + $0xa8] sm:$0xff]  ;;  %v7205_v11 = vld [vmem:[#allocation8 + $0xb0] sm:$0xff] }
0x16b9   :  { %7130 = vtanh.f32 %v9443_v33 }
0x16c3   :  { %v7131_v20 = vpop.eup %7130 }
0x16c4   :  { %v5593_v10 = vmul.f32 %v7131_v20, %v7129_v16  ;;  %v7207_v16 = vld [vmem:[#allocation8 + $0xd8] sm:$0xff]  ;;  %v7208_v20 = vld [vmem:[#allocation8 + $0xc0] sm:$0xff] }
0x16c6   :  { %v5598_v28 = vpack.c.bf16 %v5593_v10, %v5593_v10  ;;  %v7209_v10 = vld [vmem:[#allocation8 + $0xd0] sm:$0xff] }
0x16c8   :  { %5632 = vmatmul.mubr.bf16.vlgmr.msra.gmra.mrb[132].mxu0 %v5598_v28  ;;  %5673 = vmatmul.mubr.bf16.vlgmr.msra.gmra.mrb[132].mxu1 %v5598_v28  ;;  %v7210_v28 = vld [vmem:[#allocation8 + $0xe8] sm:$0xff] }
0x16c9   :  { %5715 = vmatpush1.bf16.msra.mxu0 %v9446_v17  ;;  %5756 = vmatpush1.bf16.msra.mxu1 %v9449_v56 }
0x16ca   :  { %5716 = vmatprep.subr.bf16.mxu0 %v9452_v58  ;;  %5757 = vmatprep.subr.bf16.mxu1 %v9455_v6 }
0x16cb   :  { %5746 = vmatprep.mubr.bf16.mxu0 %v9642_v52  ;;  %5787 = vmatprep.mubr.bf16.mxu1 %v9642_v52 }
0x16cd   :  { %5717 = vmatpush1.bf16.msra.mxu0 %v9460_v13  ;;  %5758 = vmatpush1.bf16.msra.mxu1 %v9463_v53 }
0x16ce   :  { %5718 = vmatprep.subr.bf16.mxu0 %v9466_v12  ;;  %5759 = vmatprep.subr.bf16.mxu1 %v9469_v35 }
0x16d1   :  { %5719 = vmatpush1.bf16.msra.mxu0 %v9472_v7  ;;  %5760 = vmatpush1.bf16.msra.mxu1 %v9475_v23 }
0x16d2   :  { %5720 = vmatprep.subr.bf16.mxu0 %v9478_v8  ;;  %5761 = vmatprep.subr.bf16.mxu1 %v9481_v37 }
0x16d5   :  { %5721 = vmatpush1.bf16.msra.mxu0 %v9087_v29  ;;  %5762 = vmatpush1.bf16.msra.mxu1 %v9089_v30  ;;  %v7194_v29 = vld [vmem:[#allocation8 + $0x8] sm:$0xff]  ;;  %v7195_v30 = vld [vmem:[#allocation8 + $0x18] sm:$0xff] }
0x16d6   :  { %5722 = vmatprep.subr.bf16.mxu0 %v9093_v31  ;;  %5763 = vmatprep.subr.bf16.mxu1 %v9095_v19 }
0x16d9   :  { %5723 = vmatpush1.bf16.msra.mxu0 %v9101_v2  ;;  %5764 = vmatpush1.bf16.msra.mxu1 %v9103_v32  ;;  %v9748_v2 = vld [vmem:[#allocation58_spill] sm:$0xff] }
0x16da   :  { %5724 = vmatprep.subr.bf16.mxu0 %v9105_v51  ;;  %5765 = vmatprep.subr.bf16.mxu1 %v9107_v25  ;;  %v9749_v51 = vld [vmem:[#allocation59_spill] sm:$0xff] }
0x16dd   :  { %5725 = vmatpush1.bf16.msra.mxu0 %v9115_v63  ;;  %5766 = vmatpush1.bf16.msra.mxu1 %v9117_v14 }
0x16de   :  { %5726 = vmatprep.subr.bf16.mxu0 %v9121_v5  ;;  %5767 = vmatprep.subr.bf16.mxu1 %v9123_v49  ;;  %v9750_v5 = vld [vmem:[#allocation60_spill] sm:$0xff] }
0x16e1   :  { %5727 = vmatpush1.bf16.msra.mxu0 %v9129_v41  ;;  %5768 = vmatpush1.bf16.msra.mxu1 %v9131_v36  ;;  %v9751_v41 = vld [vmem:[#allocation61_spill] sm:$0xff] }
0x16e2   :  { %5728 = vmatprep.subr.bf16.mxu0 %v9133_v46  ;;  %5769 = vmatprep.subr.bf16.mxu1 %v9135_v4 }
0x16e5   :  { %5729 = vmatpush1.bf16.msra.mxu0 %v9143_v38  ;;  %5770 = vmatpush1.bf16.msra.mxu1 %v9145_v40 }
0x16e6   :  { %5829 = vmatprep.subr.bf16.mxu0 %v7194_v29  ;;  %5870 = vmatprep.subr.bf16.mxu1 %v7195_v30  ;;  %v9755_v30 = vld [vmem:[#allocation65_spill] sm:$0xff] }
0x179b   :  { %v5633_v31 = vpop.f32.mrb[132].mxu0  ;;  %v5674_v19 = vpop.f32.mrb[132].mxu1 }
0x179c   :  { %v5681_v32 = vadd.f32 %v5633_v31, %v9748_v2  ;;  %v5683_v25 = vadd.f32 %v5674_v19, %v9749_v51  ;;  %v5635_v63 = vpop.f32.mrb[133].mxu0  ;;  %v5676_v14 = vpop.f32.mrb[133].mxu1 }
0x179d   :  { %v5682_v49 = vadd.f32 %v5635_v63, %v9750_v5  ;;  %v5684_v36 = vadd.f32 %v5676_v14, %v9751_v41  ;;  %v5637_v46 = vpop.f32.mrb[134].mxu0  ;;  %v5678_v4 = vpop.f32.mrb[134].mxu1 }
0x179e   :  { %v6571_v38 = vmul.f32 -1.442695, %v5681_v32  ;;  %v5638_v40 = vpop.f32.mrb[135].mxu0  ;;  %v5679_v42 = vpop.f32.mrb[135].mxu1  ;;  %v6573_v60 = vmul.f32 -1.442695, %v5683_v25 }
0x179f   :  { %v6572_v0 = vmul.f32 -1.442695, %v5682_v49 }
0x17a0   :  { %7132 = vpow2.f32 %v6571_v38 }
0x17a1   :  { %7134 = vpow2.f32 %v6572_v0 }
0x17a2   :  { %7136 = vtanh.f32 %v5684_v36 }
0x17a3   :  { %7138 = vpow2.f32 %v6573_v60 }
0x17aa   :  { %v7133_v24 = vpop.eup %7132 }
0x17ab   :  { %v5694_v21 = vadd.f32 1.0, %v7133_v24  ;;  %v7135_v22 = vpop.eup %7134 }
0x17ac   :  { %v5695_v47 = vadd.f32 1.0, %v7135_v22  ;;  %v7137_v26 = vpop.eup %7136 }
0x17ad   :  { %7140 = vrcp.f32 %v5694_v21  ;;  %v7139_v27 = vpop.eup %7138 }
0x17ae   :  { %7142 = vrcp.f32 %v5695_v47  ;;  %v5696_v3 = vadd.f32 1.0, %v7139_v27  ;;  %v7040_v27 = vld [vmem:[%s9597_s10] sm:$0xff]  }
0x17b0   :  { %7144 = vrcp.f32 %v5696_v3  ;;  %v7043_v3 = vld [vmem:[%s9597_s10 + $0x18] sm:$0xff]  }
0x17b7   :  { %v7141_v62 = vpop.eup %7140 }
0x17b8   :  { %v5705_v48 = vmul.f32 %v7141_v62, %v7137_v26  ;;  %v7143_v39 = vpop.eup %7142  ;;  %v7435_v62 = vmov 0.0  }
0x17b9   :  { %v5704_v34 = vmul.f32 %v7143_v39, %v9443_v33  ;;  %v7206_v33 = vld [vmem:[#allocation8 + $0xc8] sm:$0xff] }
0x17ba   :  { %v7145_v61 = vpop.eup %7144  ;;  %v7042_v39 = vld [vmem:[%s9597_s10 + $0x10] sm:$0xff]  }
0x17bb   :  { %v9507_v59 = vadd.f32 %v5705_v48, %v5704_v34  ;;  %v7041_v48 = vld [vmem:[%s9597_s10 + $0x8] sm:$0xff]   ;;  %v7044_v34 = vld [vmem:[%s9597_s10 + $0x20] sm:$0xff]  }
0x17bd   :  { %7146 = vtanh.f32 %v9507_v59 }
0x17c7   :  { %v7147_v50 = vpop.eup %7146 }
0x17c8   :  { %v5708_v9 = vmul.f32 %v7147_v50, %v7145_v61  ;;  %v7046_v61 = vld [vmem:[%s9597_s10 + $0x30] sm:$0xff]   ;;  %v7047_v50 = vld [vmem:[%s9597_s10 + $0x38] sm:$0xff]  }
0x17ca   :  { %v5713_v45 = vpack.c.bf16 %v5708_v9, %v5708_v9 }
0x17cc   :  { %5747 = vmatmul.mubr.bf16.vlgmr.msra.gmra.mrb[136].mxu0 %v5713_v45  ;;  %5788 = vmatmul.mubr.bf16.vlgmr.msra.gmra.mrb[136].mxu1 %v5713_v45 }
0x17cd   :  { %5830 = vmatpush1.bf16.msra.mxu0 %v9446_v17  ;;  %5871 = vmatpush1.bf16.msra.mxu1 %v9449_v56  ;;  %v7211_v17 = vld [vmem:[#allocation8 + $0xf8] sm:$0xff]  ;;  %v7212_v56 = vld [vmem:[#allocation8 + $0xe0] sm:$0xff] }
0x17ce   :  { %5831 = vmatprep.subr.bf16.mxu0 %v9452_v58  ;;  %5872 = vmatprep.subr.bf16.mxu1 %v9455_v6  ;;  %v7213_v58 = vld [vmem:[#allocation8 + $0xf0] sm:$0xff] }
0x17cf   :  { %5861 = vmatprep.mubr.bf16.mxu0 %v9642_v52  ;;  %5902 = vmatprep.mubr.bf16.mxu1 %v9642_v52  ;;  %v7198_v52 = vld [vmem:[#allocation8 + $0x88] sm:$0xff] }
0x17d1   :  { %5832 = vmatpush1.bf16.msra.mxu0 %v9460_v13  ;;  %5873 = vmatpush1.bf16.msra.mxu1 %v9463_v53  ;;  %v9752_v53 = vld [vmem:[#allocation62_spill] sm:$0xff] }
0x17d2   :  { %5833 = vmatprep.subr.bf16.mxu0 %v9466_v12  ;;  %5874 = vmatprep.subr.bf16.mxu1 %v9469_v35  ;;  %v9753_v35 = vld [vmem:[#allocation63_spill] sm:$0xff] }
0x17d5   :  { %5834 = vmatpush1.bf16.msra.mxu0 %v9472_v7  ;;  %5875 = vmatpush1.bf16.msra.mxu1 %v9475_v23 }
0x17d6   :  { %5835 = vmatprep.subr.bf16.mxu0 %v9478_v8  ;;  %5876 = vmatprep.subr.bf16.mxu1 %v9481_v37  ;;  %v9754_v37 = vld [vmem:[#allocation64_spill] sm:$0xff] }
0x17d9   :  { %5836 = vmatpush1.bf16.msra.mxu0 %v7196_v44  ;;  %5877 = vmatpush1.bf16.msra.mxu1 %v7197_v43  ;;  %v9756_v44 = vld [vmem:[#allocation66_spill] sm:$0xff] }
0x17da   :  { %5837 = vmatprep.subr.bf16.mxu0 %v7198_v52  ;;  %5878 = vmatprep.subr.bf16.mxu1 %v7199_v15  ;;  %v9757_v52 = vld [vmem:[#allocation67_spill] sm:$0xff] }
0x17dd   :  { %5838 = vmatpush1.bf16.msra.mxu0 %v7200_v18  ;;  %5879 = vmatpush1.bf16.msra.mxu1 %v7201_v1 }
0x17de   :  { %5839 = vmatprep.subr.bf16.mxu0 %v7202_v57  ;;  %5880 = vmatprep.subr.bf16.mxu1 %v7203_v54  ;;  %v9758_v57 = vld [vmem:[#allocation68_spill] sm:$0xff] }
0x17e1   :  { %5840 = vmatpush1.bf16.msra.mxu0 %v7204_v55  ;;  %5881 = vmatpush1.bf16.msra.mxu1 %v7205_v11  ;;  %v9759_v55 = vld [vmem:[#allocation69_spill] sm:$0xff] }
0x17e2   :  { %5841 = vmatprep.subr.bf16.mxu0 %v7206_v33  ;;  %5882 = vmatprep.subr.bf16.mxu1 %v7207_v16 }
0x17e5   :  { %5842 = vmatpush1.bf16.msra.mxu0 %v7208_v20  ;;  %5883 = vmatpush1.bf16.msra.mxu1 %v7209_v10 }
0x17e6   :  { %5843 = vmatprep.subr.bf16.mxu0 %v7210_v28  ;;  %5884 = vmatprep.subr.bf16.mxu1 %v7211_v17 }
0x17e9   :  { %5844 = vmatpush1.bf16.msra.mxu0 %v7212_v56  ;;  %5885 = vmatpush1.bf16.msra.mxu1 %v7213_v58 }
0x17ea   :  { %6617 = vmatprep.subr.bf16.mxu0 %v7435_v62  ;;  %6637 = vmatprep.subr.bf16.mxu1 %v7435_v62 }
0x189f   :  { %v5748_v6 = vpop.f32.mrb[136].mxu0  ;;  %v5789_v13 = vpop.f32.mrb[136].mxu1 }
0x18a0   :  { %v5796_v12 = vadd.f32 %v5748_v6, %v9752_v53  ;;  %v5798_v7 = vadd.f32 %v5789_v13, %v9753_v35  ;;  %v5750_v23 = vpop.f32.mrb[137].mxu0  ;;  %v5791_v8 = vpop.f32.mrb[137].mxu1 }
0x18a1   :  { %v5797_v29 = vadd.f32 %v5750_v23, %v9754_v37  ;;  %v5799_v31 = vadd.f32 %v5791_v8, %v9755_v30  ;;  %v5752_v19 = vpop.f32.mrb[138].mxu0  ;;  %v5793_v2 = vpop.f32.mrb[138].mxu1 }
0x18a2   :  { %v6574_v32 = vmul.f32 -1.442695, %v5796_v12  ;;  %v5753_v51 = vpop.f32.mrb[139].mxu0  ;;  %v5794_v25 = vpop.f32.mrb[139].mxu1  ;;  %v6576_v14 = vmul.f32 -1.442695, %v5798_v7 }
0x18a3   :  { %v6575_v63 = vmul.f32 -1.442695, %v5797_v29  ;;  %v6580_v51 = vld [vmem:[%s9598_s11] ss:$0 sm:$0xff] }
0x18a4   :  { %7148 = vpow2.f32 %v6574_v32 }
0x18a5   :  { %7150 = vpow2.f32 %v6575_v63 }
0x18a6   :  { %7152 = vtanh.f32 %v5799_v31 }
0x18a7   :  { %7154 = vpow2.f32 %v6576_v14 }
0x18ae   :  { %v7149_v5 = vpop.eup %7148 }
0x18af   :  { %v5809_v49 = vadd.f32 1.0, %v7149_v5  ;;  %v7151_v41 = vpop.eup %7150 }
0x18b0   :  { %v5810_v36 = vadd.f32 1.0, %v7151_v41  ;;  %v7153_v46 = vpop.eup %7152 }
0x18b1   :  { %7156 = vrcp.f32 %v5809_v49  ;;  %v7155_v4 = vpop.eup %7154 }
0x18b2   :  { %7158 = vrcp.f32 %v5810_v36  ;;  %v5811_v0 = vadd.f32 1.0, %v7155_v4 }
0x18b4   :  { %7160 = vrcp.f32 %v5811_v0  ;;  %v7049_v0 = vld [vmem:[#allocation18 + $0x8] sm:$0xff]  }
0x18bb   :  { %v7157_v38 = vpop.eup %7156 }
0x18bc   :  { %v5820_v40 = vmul.f32 %v7157_v38, %v7153_v46  ;;  %v7159_v42 = vpop.eup %7158 }
0x18bd   :  { %v5819_v60 = vmul.f32 %v7159_v42, %v9507_v59  ;;  %v7045_v59 = vld [vmem:[%s9597_s10 + $0x28] sm:$0xff]  }
0x18be   :  { %v7161_v21 = vpop.eup %7160  ;;  %v7048_v42 = vld [vmem:[#allocation18] sm:$0xff]  }
0x18bf   :  { %v9529_v24 = vadd.f32 %v5820_v40, %v5819_v60  ;;  %v7050_v60 = vld [vmem:[#allocation18 + $0x10] sm:$0xff]  }
0x18c1   :  { %7162 = vtanh.f32 %v9529_v24 }
0x18cb   :  { %v7163_v22 = vpop.eup %7162 }
0x18cc   :  { %v5823_v47 = vmul.f32 %v7163_v22, %v7161_v21 }
0x18ce   :  { %v5828_v26 = vpack.c.bf16 %v5823_v47, %v5823_v47 }
0x18d0   :  { %5862 = vmatmul.mubr.bf16.vlgmr.msra.gmra.mrb[140].mxu0 %v5828_v26  ;;  %5903 = vmatmul.mubr.bf16.vlgmr.msra.gmra.mrb[140].mxu1 %v5828_v26 }
0x18d1   :  { %6618 = vmatpush3.bf16.msra.mxu0 %v7040_v27  ;;  %6633 = vmatprep.mubr.msk.bf16.mxu0 %vm7436_vm1, %v7435_v62  ;;  %v6589_v27 = vld [vmem:[%s9599_s12] ss:$0 sm:$0xff] }
0x18d2   :  { %6619 = vmatprep.subr.bf16.mxu0 %v7435_v62  ;;  %6645 = vmatprep.mubr.msk.bf16.mxu1 %vm7436_vm1, %v7435_v62 }
0x18d3   :  { %6638 = vmatpush3.bf16.msra.mxu1 %v7048_v42 }
0x18d4   :  { %6639 = vmatprep.subr.bf16.mxu1 %v7435_v62 }
0x18d5   :  { %6620 = vmatpush3.bf16.msra.mxu0 %v7041_v48 }
0x18d6   :  { %6621 = vmatprep.subr.bf16.mxu0 %v7435_v62 }
0x18d7   :  { %6640 = vmatpush3.bf16.msra.mxu1 %v7049_v0 }
0x18d8   :  { %6641 = vmatprep.subr.bf16.mxu1 %v7435_v62 }
0x18d9   :  { %6622 = vmatpush3.bf16.msra.mxu0 %v7042_v39  ;;  %v6590_v39 = vld [vmem:[#allocation16] ss:$0 sm:$0xff] }
0x18da   :  { %6623 = vmatprep.subr.bf16.mxu0 %v7435_v62 }
0x18db   :  { %6642 = vmatpush3.bf16.msra.mxu1 %v7050_v60 }
0x18dc   :  { %6643 = vmatprep.subr.bf16.mxu1 %v7435_v62 }
0x18dd   :  { %6624 = vmatpush3.bf16.msra.mxu0 %v7043_v3 }
0x18de   :  { %6625 = vmatprep.subr.bf16.mxu0 %v7435_v62 }
0x18e1   :  { %6626 = vmatpush3.bf16.msra.mxu0 %v7044_v34 }
0x18e2   :  { %6627 = vmatprep.subr.bf16.mxu0 %v7435_v62 }
0x18e5   :  { %6628 = vmatpush3.bf16.msra.mxu0 %v7045_v59 }
0x18e6   :  { %6629 = vmatprep.subr.bf16.mxu0 %v7435_v62 }
0x18e9   :  { %6630 = vmatpush3.bf16.msra.mxu0 %v7046_v61 }
0x18ea   :  { %6631 = vmatprep.subr.bf16.mxu0 %v7435_v62 }
0x18ed   :  { %6632 = vmatpush3.bf16.msra.mxu0 %v7047_v50  ;;  %v6591_v50 = vld [vmem:[#allocation19] ss:$0 sm:$0xff] }
0x19a3   :  { %v5863_v9 = vpop.f32.mrb[140].mxu0  ;;  %v5904_v45 = vpop.f32.mrb[140].mxu1 }
0x19a4   :  { %v5911_v43 = vadd.f32 %v5863_v9, %v9756_v44  ;;  %v5913_v15 = vadd.f32 %v5904_v45, %v9757_v52  ;;  %v5865_v18 = vpop.f32.mrb[141].mxu0  ;;  %v5906_v1 = vpop.f32.mrb[141].mxu1 }
0x19a5   :  { %v5912_v54 = vadd.f32 %v5865_v18, %v9758_v57  ;;  %v5914_v11 = vadd.f32 %v5906_v1, %v9759_v55  ;;  %v5867_v33 = vpop.f32.mrb[142].mxu0  ;;  %v5908_v16 = vpop.f32.mrb[142].mxu1 }
0x19a6   :  { %v6577_v20 = vmul.f32 -1.442695, %v5911_v43  ;;  %v5868_v10 = vpop.f32.mrb[143].mxu0  ;;  %v5909_v28 = vpop.f32.mrb[143].mxu1  ;;  %v6579_v56 = vmul.f32 -1.442695, %v5913_v15 }
0x19a7   :  { %v6578_v17 = vmul.f32 -1.442695, %v5912_v54 }
0x19a8   :  { %7164 = vpow2.f32 %v6577_v20 }
0x19a9   :  { %7166 = vpow2.f32 %v6578_v17 }
0x19aa   :  { %7168 = vtanh.f32 %v5914_v11 }
0x19ab   :  { %7170 = vpow2.f32 %v6579_v56 }
0x19b2   :  { %v7165_v58 = vpop.eup %7164 }
0x19b3   :  { %v5924_v6 = vadd.f32 1.0, %v7165_v58  ;;  %v7167_v13 = vpop.eup %7166 }
0x19b4   :  { %v5925_v53 = vadd.f32 1.0, %v7167_v13  ;;  %v7169_v12 = vpop.eup %7168 }
0x19b5   :  { %7172 = vrcp.f32 %v5924_v6  ;;  %v7171_v35 = vpop.eup %7170 }
0x19b6   :  { %7174 = vrcp.f32 %v5925_v53  ;;  %v5926_v37 = vadd.f32 1.0, %v7171_v35 }
0x19b8   :  { %7176 = vrcp.f32 %v5926_v37 }
0x19bf   :  { %v7173_v7 = vpop.eup %7172 }
0x19c0   :  { %v5935_v23 = vmul.f32 %v7173_v7, %v7169_v12  ;;  %v7175_v8 = vpop.eup %7174 }
0x19c1   :  { %v5934_v29 = vmul.f32 %v7175_v8, %v9529_v24  ;;  %v7051_v24 = vld [vmem:[#allocation18 + $0x18] sm:$0xff]  }
0x19c2   :  { %v7177_v31 = vpop.eup %7176  ;;  %6644 = vmatpush3.bf16.msra.mxu1 %v7051_v24 }
0x19c3   :  { %v5936_v30 = vadd.f32 %v5935_v23, %v5934_v29 }
0x19c5   :  { %7178 = vtanh.f32 %v5936_v30 }
0x19cf   :  { %v7179_v19 = vpop.eup %7178 }
0x19d0   :  { %v5938_v2 = vmul.f32 %v7179_v19, %v7177_v31 }
0x19d2   :  { %v5939_v32 = vpack.c.bf16 %v5938_v2, %v5938_v2 }
0x19d4   :  { %6634 = vmatmul.mubr.bf16.vlgmr.msra.gmra.mrb[144].mxu0 %v5939_v32 }
0x1aa7   :  { %v6045_v25 = vpop.f32.mrb[144].mxu0 }
0x1aa8   :  { %v6046_v63 = vadd.f32 %v6580_v51, %v6045_v25  ;;  %v6635_v14 = vpop.f32.mrb[145].mxu0 }
0x1aa9   :  { %v6048_v5 = vpop.f32.mrb[146].mxu0 }
0x1aaa   :  { %v6636_v49 = vpop.f32.mrb[147].mxu0  ;;  %v6052_v41 = vsel %vm6051_vm2, %v6046_v63, 0.0 }
0x1aab   :  { %6053 = vadd.xlane.f32.xlu0 %v6052_v41 }
0x1b38   :  { %v6054_v36 = vpop.xlane.xlu0 %6053 }
0x1b39   :  { %v6056_v46 = vmul.f32 0.015625, %v6054_v36 }
0x1b3b   :  { %v6057_v4 = vsub.f32 %v6046_v63, %v6056_v46 }
0x1b3d   :  { %v6058_v38 = vmul.f32 %v6057_v4, %v6057_v4 }
0x1b3f   :  { %v6059_v40 = vsel %vm6051_vm2, %v6058_v38, 0.0 }
0x1b40   :  { %6060 = vadd.xlane.f32.xlu0 %v6059_v40 }
0x1bcd   :  { %v6061_v21 = vpop.xlane.xlu0 %6060 }
0x1bce   :  { %v6062_v22 = vmul.f32 0.015625, %v6061_v21 }
0x1bd0   :  { %v6063_v47 = vadd.f32 1e-05, %v6062_v22 }
0x1bd2   :  { %7180 = vrsqrt.f32 %v6063_v47 }
0x1bdc   :  { %v7181_v26 = vpop.eup %7180 }
0x1bdd   :  { %v6065_v48 = vmul.f32 %v7181_v26, %v6057_v4 }
0x1bdf   :  { %v6073_v3 = vmul.f32 %v6589_v27, %v6065_v48 }
0x1be1   :  { %v6081_v34 = vadd.f32 %v6590_v39, %v6073_v3 }
0x1be3   :  { %v6082_v59 = vmax.f32 %v6081_v34, 0.0 }
0x1be5   :  { %v6083_v61 = vpack.c.bf16 %v6082_v59, %v6082_v59 }
0x1be7   :  { %6646 = vmatmul.mubr.msk.bf16.vlgmr.msra.gmra.mrb[144].mxu1 %vm6051_vm2, %v6083_v61 }
0x1cba   :  { %v6160_v62 = vpop.f32.mrb[144].mxu1 }
0x1cbb   :  { %v6161_v9 = vadd.f32 %v6591_v50, %v6160_v62  ;;  %v6647_v45 = vpop.f32.mrb[145].mxu1 }
0x1cbc   :  { %v6163_v44 = vpop.f32.mrb[146].mxu1 }
0x1cbd   :  { %6166 = vst [vmem:[%s9603_s16] sm:$0xff] %v6161_v9  ;;  %v6648_v43 = vpop.f32.mrb[147].mxu1 }
0x1cbe   :  { %6171 = vsyncpa [#allocation12], 1 }
0x1cbf   :  { %6172 = vsyncpa [#allocation14], 1 }
0x1cc0   :  { %6173 = vsyncpa [#allocation17], 1 }
0x1cc1   :  { %6174 = vsyncpa [#allocation20], 1 }
0x1cc2   :  { %6175 = vsyncmov [#allocation10] }
0x1cc5   :  { %s6176_s12 = vpop.sfrf %6175 }
0x1cc6   :  { %p6597_p8 = scmp.ne.s32.totalorder %s6176_s12, 0 }
0x1cc8   :  { %6180 = shalt.err (%p6597_p8)  }
0x1cc9   :  { %6182 = vsyncmov [#allocation10 + $0x1] }
0x1ccc   :  { %s6183_s7 = vpop.sfrf %6182 }
0x1ccd   :  { %p6598_p9 = scmp.ne.s32.totalorder %s6183_s7, 0 }
0x1ccf   :  { %6187 = shalt.err (%p6598_p9)  }
0x1cd0   :  { %6189 = vsyncmov [#allocation10 + $0x2] }
0x1cd3   :  { %s6190_s15 = vpop.sfrf %6189 }
0x1cd4   :  { %p6599_p10 = scmp.ne.s32.totalorder %s6190_s15, 0 }
0x1cd6   :  { %6194 = shalt.err (%p6599_p10)  }
0x1cd7   :  { %6196 = vsyncmov [#allocation10 + $0x3] }
0x1cda   :  { %s6197_s24 = vpop.sfrf %6196 }
0x1cdb   :  { %p6600_p11 = scmp.ne.s32.totalorder %s6197_s24, 0 }
0x1cdd   :  { %6201 = shalt.err (%p6600_p11)  }
0x1cde   :  { %6203 = vsyncmov [#allocation10 + $0x4] }
0x1ce1   :  { %s6204_s16 = vpop.sfrf %6203 }
0x1ce2   :  { %p6601_p12 = scmp.ne.s32.totalorder %s6204_s16, 0 }
0x1ce4   :  { %6208 = shalt.err (%p6601_p12)  }
0x1ce5   :  { %6210 = vsyncmov [#allocation10 + $0x5] }
0x1ce8   :  { %s6211_s5 = vpop.sfrf %6210 }
0x1ce9   :  { %p6602_p13 = scmp.ne.s32.totalorder %s6211_s5, 0 }
0x1ceb   :  { %6215 = shalt.err (%p6602_p13)  }

</bundles_post_ra>
